<compile_context>
chip_gen: v7x
topology: tpu7x:2x2x1
jax: 0.10.0
libtpu: 0.0.40
codegen_flags: <defaults>
</compile_context>

<pallas_src>
import math

import jax
import jax.numpy as jnp
from jax import lax
from jax.experimental import pallas as pl
from jax.experimental.pallas import tpu as pltpu

# ---- model constants (match the torch module construction) -----------------
D_MODEL = 768
DIM_U, DIM_S1, DIM_S2, DIM_S3 = 128, 64, 32, 16
CU_DIM = DIM_U + DIM_S1 + DIM_S2 + DIM_S3            # 240
HIDDEN = 512
NUM_U, NUM_S1, NUM_S2, NUM_S3 = 11, 7, 5, 4          # add_embeds
NUM_D0, NUM_D1 = 16, 12                              # num_embeds (dis_feats)
ADD_FEATS = (0, 1, 2, 3)
DIS_FEATS = (4, 5)
CON_FEATS = (6, 7)
SECOND_COL = 8
E_IN = 9
KSIZE = 3
N_CON = len(CON_FEATS)
SELU_ALPHA = 1.6732632423543772
SELU_SCALE = 1.0507009873554805
DIV_TERM = math.sqrt(1.0 / D_MODEL)

# ---- packed-layout constants ------------------------------------------------
ADD_ROWS = NUM_U + NUM_S1 + NUM_S2 + NUM_S3          # 27 one-hot rows (add feats)
ADD_ROWS_PAD = 32                                    # padded to a sublane multiple
DIS_ROWS = NUM_D0 + NUM_D1                           # 28
CONV_COLS = N_CON * KSIZE                            # 6
POST_ROWS = 48                                       # 28 dis + 6 conv + 14 zero pad
# Packed activation columns (single DMA):
#   [0:28] zeros (dis one-hot is ADDED here in-kernel, concat-free)
#   [28:34] im2col conv columns   [34:40] offset indices   [40] time  [41:48] zeros
ACT_W = POST_ROWS
COL_OFF = DIS_ROWS                                   # 28
IDX_U, IDX_S1, IDX_S2, IDX_S3 = 34, 35, 36, 37
IDX_D0, IDX_D1, IDX_T = 38, 39, 40
OFF_S1 = NUM_U                                       # one-hot row offsets added
OFF_S2 = NUM_U + NUM_S1                              # to the raw indices in the
OFF_S3 = NUM_U + NUM_S1 + NUM_S2                     # wrapper
OFF_D1 = NUM_D0

# TODO(synk): training-mode Dropout(0.3) and the reparameterize() noise path
# (torch.randn_like) are not implemented — inference mode only (rho == mu).


def _selu(x):
    return SELU_SCALE * jnp.where(
        x > 0.0, x, SELU_ALPHA * (jnp.exp(jnp.minimum(x, 0.0)) - 1.0))


# -----------------------------------------------------------------------------
# Fused kernel: embeddings + MLP2 + dis-embeds + conv + ContinuousEncoding
# -----------------------------------------------------------------------------
def _fused_kernel(act_ref, tadd_ref, w21_ref, tpost_ref, bias_ref, o_ref):
    a = act_ref[...]                                   # (M, 48) f32
    m = a.shape[0]

    def onehot(width, *cols):
        # Multi-hot over disjoint index ranges (ranges are disjoint by packing,
        # so OR == sum of the individual one-hots).  f32 output; 0/1 exact.
        pos = lax.broadcasted_iota(jnp.int32, (m, width), 1)
        hit = pos == a[:, cols[0]:cols[0] + 1].astype(jnp.int32)
        for c in cols[1:]:
            hit = hit | (pos == a[:, c:c + 1].astype(jnp.int32))
        return hit.astype(jnp.float32)

    # --- MLP branch: 4 embedding gathers + concat + fc1 fused into a single
    #     (M,32)@(32,512) one-hot matmul against the pre-fused bf16 slab.
    oh_add = onehot(ADD_ROWS_PAD, IDX_U, IDX_S1, IDX_S2, IDX_S3)
    h1 = jnp.dot(oh_add.astype(jnp.bfloat16), tadd_ref[...],
                 preferred_element_type=jnp.float32)
    h1 = _selu(h1 + bias_ref[0:1, 0:HIDDEN])           # Dropout: identity (eval)
    # mu = fc21(h1); reparameterize() returns mu in eval mode (fc22 unused).
    h = jnp.dot(h1.astype(jnp.bfloat16), w21_ref[...],
                preferred_element_type=jnp.float32)

    # --- post branch: BOTH dis-embedding gathers AND the k=3 conv in a single
    #     (M,48)@(48,768) matmul.  act columns 0:28 are zero, so adding the dis
    #     one-hot there builds the activation concat-free; columns 34:48
    #     (indices / time / pad) hit zero weight rows and contribute nothing.
    act_post = a + onehot(POST_ROWS, IDX_D0, IDX_D1)
    h = h + jnp.dot(act_post.astype(jnp.bfloat16), tpost_ref[...],
                    preferred_element_type=jnp.float32)

    # --- fc21 bias + conv bias (pre-summed) + ContinuousEncoding (all f32)
    t = a[:, IDX_T:IDX_T + 1]
    h = h + bias_ref[1:2, :]
    h = h + DIV_TERM * jnp.cos(t * bias_ref[2:3, :] + bias_ref[3:4, :])
    o_ref[...] = h


# -----------------------------------------------------------------------------
# One-time parameter packing (all transposes / fusions / casts hoisted here)
# -----------------------------------------------------------------------------
def pack_params(p):
    hp = lax.Precision.HIGHEST
    f32, bf16 = jnp.float32, jnp.bfloat16
    fc1_wt = p['fc1_w'].T                              # (240, 512)
    # gather -> concat -> fc1  ==  onehot @ (table @ W1_slice^T); fuse + concat.
    blocks, off = [], 0
    for tbl, dim in (('emb_u', DIM_U), ('emb_s1', DIM_S1),
                     ('emb_s2', DIM_S2), ('emb_s3', DIM_S3)):
        blocks.append(jnp.dot(p[tbl], fc1_wt[off:off + dim], precision=hp))
        off += dim
    t_add = jnp.concatenate(
        blocks + [jnp.zeros((ADD_ROWS_PAD - ADD_ROWS, HIDDEN), f32)], axis=0)
    # dis0 | dis1 | packed conv weight | zero pad -> one (48, 768) slab.
    conv_p = jnp.transpose(p['conv_w'], (1, 2, 0)).reshape(CONV_COLS, D_MODEL)
    t_post = jnp.concatenate(
        [p['dis0'], p['dis1'], conv_p,
         jnp.zeros((POST_ROWS - DIS_ROWS - CONV_COLS, D_MODEL), f32)], axis=0)
    # f32 bias/omega slab: [fc1_b (padded) | fc21_b + conv_b | omega | ce_bias]
    b1_pad = jnp.concatenate([p['fc1_b'], jnp.zeros((D_MODEL - HIDDEN,), f32)])
    bias_slab = jnp.stack(
        [b1_pad, p['fc21_b'] + p['conv_b'], p['omega'], p['ce_bias']], axis=0)
    return {'t_add': t_add.astype(bf16),               # (32, 512)  bf16
            'w21_t': p['fc21_w'].T.astype(bf16),       # (512, 768) bf16
            't_post': t_post.astype(bf16),             # (48, 768)  bf16
            'bias': bias_slab.astype(f32)}             # (4, 768)   f32


# -----------------------------------------------------------------------------
# Forward pass: thin wrapper -> single packed activation -> one pallas_call
# -----------------------------------------------------------------------------
def traj_conv_forward(x, q):
    B, L, _ = x.shape
    M = B * L
    xf = x.reshape(M, E_IN)
    # Raw indices -> offset indices matching the packed one-hot row layouts.
    offs = jnp.array([0.0, OFF_S1, OFF_S2, OFF_S3, 0.0, OFF_D1], jnp.float32)
    idx = xf[:, :6] + offs
    # im2col for the k=3 / pad=1 Conv1d over the sequence axis (per batch).
    xc = x[..., CON_FEATS[0]:CON_FEATS[-1] + 1]                 # (B, L, C)
    xpad = jnp.pad(xc, ((0, 0), (1, 1), (0, 0)))
    col = jnp.stack([xpad[:, t:t + L, :] for t in range(KSIZE)],
                    axis=3).reshape(M, CONV_COLS)               # (M, C*K)
    # Single packed activation (one DMA): zeros | col | idx | time | zeros.
    act = jnp.concatenate(
        [jnp.zeros((M, COL_OFF), jnp.float32), col, idx,
         xf[:, SECOND_COL:SECOND_COL + 1],
         jnp.zeros((M, ACT_W - IDX_T - 1), jnp.float32)], axis=1)

    vmem = pl.BlockSpec(memory_space=pltpu.MemorySpace.VMEM)
    flops = 2 * M * (ADD_ROWS_PAD * HIDDEN + HIDDEN * D_MODEL
                     + POST_ROWS * D_MODEL)
    bytes_acc = (act.size * 4 + q['t_add'].size * 2 + q['w21_t'].size * 2
                 + q['t_post'].size * 2 + q['bias'].size * 4 + M * D_MODEL * 4)
    out = pl.pallas_call(
        _fused_kernel,
        out_shape=jax.ShapeDtypeStruct((M, D_MODEL), jnp.float32),
        in_specs=[vmem] * 5,
        out_specs=vmem,
        cost_estimate=pl.CostEstimate(
            flops=flops,
            transcendentals=M * (HIDDEN + D_MODEL),
            bytes_accessed=bytes_acc),
    )(act, q['t_add'], q['w21_t'], q['t_post'], q['bias'])
    return out.reshape(B, L, D_MODEL)


# -----------------------------------------------------------------------------
# Pure-JAX reference mirroring the torch forward (for verification)
# -----------------------------------------------------------------------------
def traj_conv_reference(x, p):
    B, L, _ = x.shape

    def emb(table, feat):
        return table[x[..., feat].astype(jnp.int32)]

    u = emb(p['emb_u'], ADD_FEATS[0])
    s1 = emb(p['emb_s1'], ADD_FEATS[1])
    s2 = emb(p['emb_s2'], ADD_FEATS[2])
    s3 = emb(p['emb_s3'], ADD_FEATS[3])
    cu = jnp.concatenate([u, s1, s2, s3], axis=2)
    h1 = _selu(cu @ p['fc1_w'].T + p['fc1_b'])
    mu = h1 @ p['fc21_w'].T + p['fc21_b']              # rho == mu in eval mode
    h = mu
    h = h + emb(p['dis0'], DIS_FEATS[0]) + emb(p['dis1'], DIS_FEATS[1])
    xc = x[..., CON_FEATS[0]:CON_FEATS[-1] + 1]
    xpad = jnp.pad(xc, ((0, 0), (1, 1), (0, 0)))
    conv = sum(jnp.einsum('blc,oc->blo', xpad[:, t:t + L, :], p['conv_w'][:, :, t])
               for t in range(KSIZE))
    h = h + conv + p['conv_b']
    tcol = x[..., SECOND_COL]
    h = h + DIV_TERM * jnp.cos(tcol[..., None] * p['omega'] + p['ce_bias'])
    return h


# -----------------------------------------------------------------------------
# Deterministic synthetic parameters
# -----------------------------------------------------------------------------
def init_params(key, scale=0.1):
    ks = jax.random.split(key, 12)

    def lin_init(k, n_out, n_in):
        k1, k2 = jax.random.split(k)
        return (scale * jax.random.normal(k1, (n_out, n_in), jnp.float32),
                scale * jax.random.normal(k2, (n_out,), jnp.float32))

    p = {}
    p['emb_u'] = scale * jax.random.normal(ks[0], (NUM_U, DIM_U), jnp.float32)
    p['emb_s1'] = scale * jax.random.normal(ks[1], (NUM_S1, DIM_S1), jnp.float32)
    p['emb_s2'] = scale * jax.random.normal(ks[2], (NUM_S2, DIM_S2), jnp.float32)
    p['emb_s3'] = scale * jax.random.normal(ks[3], (NUM_S3, DIM_S3), jnp.float32)
    p['fc1_w'], p['fc1_b'] = lin_init(ks[4], HIDDEN, CU_DIM)
    p['fc21_w'], p['fc21_b'] = lin_init(ks[5], D_MODEL, HIDDEN)
    p['fc22_w'], p['fc22_b'] = lin_init(ks[6], D_MODEL, HIDDEN)   # unused in eval
    p['dis0'] = scale * jax.random.normal(ks[7], (NUM_D0, D_MODEL), jnp.float32)
    p['dis1'] = scale * jax.random.normal(ks[8], (NUM_D1, D_MODEL), jnp.float32)
    p['conv_w'] = scale * jax.random.normal(
        ks[9], (D_MODEL, N_CON, KSIZE), jnp.float32)
    p['conv_b'] = scale * jax.random.normal(ks[10], (D_MODEL,), jnp.float32)
    # ContinuousEncoding init: omega = 1 / 10**linspace(0, 9, d_model), bias = 0
    p['omega'] = (1.0 / 10.0 ** jnp.linspace(0.0, 9.0, D_MODEL)).astype(jnp.float32)
    p['ce_bias'] = jnp.zeros((D_MODEL,), jnp.float32)
    return p


if __name__ == "__main__":
    key = jax.random.PRNGKey(0)
    kp, kd = jax.random.split(key)
    B, L = 2, 8
    params = init_params(kp)

    ks = jax.random.split(kd, 8)
    iu = jax.random.randint(ks[0], (B, L), 0, NUM_U)
    is1 = jax.random.randint(ks[1], (B, L), 0, NUM_S1)
    is2 = jax.random.randint(ks[2], (B, L), 0, NUM_S2)
    is3 = jax.random.randint(ks[3], (B, L), 0, NUM_S3)
    id0 = jax.random.randint(ks[4], (B, L), 0, NUM_D0)
    id1 = jax.random.randint(ks[5], (B, L), 0, NUM_D1)
    cont = jax.random.normal(ks[6], (B, L, N_CON), jnp.float32)
    tsec = jax.random.uniform(ks[7], (B, L), minval=0.0, maxval=60.0)
    x = jnp.concatenate(
        [iu[..., None].astype(jnp.float32), is1[..., None].astype(jnp.float32),
         is2[..., None].astype(jnp.float32), is3[..., None].astype(jnp.float32),
         id0[..., None].astype(jnp.float32), id1[..., None].astype(jnp.float32),
         cont, tsec[..., None]], axis=-1)
    assert x.shape == (B, L, E_IN)

    packed = pack_params(params)                       # one-time weight packing
    fwd = jax.jit(traj_conv_forward)
    out = jax.block_until_ready(fwd(x, packed))
    assert out.shape == (B, L, D_MODEL)

    with jax.default_matmul_precision("highest"):
        ref = jax.block_until_ready(jax.jit(traj_conv_reference)(x, params))

    # bf16 weight slabs + bf16 MXU passes vs f32-HIGHEST reference: a few 1e-3
    # of absolute error is expected; 2e-2 gives comfortable margin.
    max_err = float(jnp.max(jnp.abs(out - ref)))
    assert max_err < 2e-2, f"max abs err {max_err}"
    print("KERNEL_OK")
</pallas_src>

<mosaic_0001>
module attributes {stable_mosaic.version = 11 : i64} {
  func.func @_fused_kernel(%arg0: memref<16x48xf32, #tpu.memory_space<vmem>>, %arg1: memref<32x512xbf16, #tpu.memory_space<vmem>>, %arg2: memref<512x768xbf16, #tpu.memory_space<vmem>>, %arg3: memref<48x768xbf16, #tpu.memory_space<vmem>>, %arg4: memref<4x768xf32, #tpu.memory_space<vmem>>, %arg5: memref<16x768xf32, #tpu.memory_space<vmem>>) attributes {dimension_semantics = [], scalar_prefetch = 0 : i64, scratch_operands = 0 : i64, tpu.core_type = #tpu.core_type<tc>} {
    %c0 = arith.constant 0 : index
    %c0_0 = arith.constant 0 : index
    %0 = vector.load %arg0[%c0, %c0_0] : memref<16x48xf32, #tpu.memory_space<vmem>>, vector<16x48xf32>
    %1 = tpu.iota {dimensions = array<i32: 1>} : vector<16x32xi32>
    %2 = vector.extract_strided_slice %0 {offsets = [0, 34], sizes = [16, 1], strides = [1, 1]} : vector<16x48xf32> to vector<16x1xf32>
    %3 = arith.fptosi %2 : vector<16x1xf32> to vector<16x1xi32>
    %4 = vector.broadcast %3 : vector<16x1xi32> to vector<16x32xi32>
    %5 = arith.cmpi eq, %1, %4 : vector<16x32xi32>
    %6 = vector.extract_strided_slice %0 {offsets = [0, 35], sizes = [16, 1], strides = [1, 1]} : vector<16x48xf32> to vector<16x1xf32>
    %7 = arith.fptosi %6 : vector<16x1xf32> to vector<16x1xi32>
    %8 = vector.broadcast %7 : vector<16x1xi32> to vector<16x32xi32>
    %9 = arith.cmpi eq, %1, %8 : vector<16x32xi32>
    %10 = arith.ori %5, %9 : vector<16x32xi1>
    %11 = vector.extract_strided_slice %0 {offsets = [0, 36], sizes = [16, 1], strides = [1, 1]} : vector<16x48xf32> to vector<16x1xf32>
    %12 = arith.fptosi %11 : vector<16x1xf32> to vector<16x1xi32>
    %13 = vector.broadcast %12 : vector<16x1xi32> to vector<16x32xi32>
    %14 = arith.cmpi eq, %1, %13 : vector<16x32xi32>
    %15 = arith.ori %10, %14 : vector<16x32xi1>
    %16 = vector.extract_strided_slice %0 {offsets = [0, 37], sizes = [16, 1], strides = [1, 1]} : vector<16x48xf32> to vector<16x1xf32>
    %17 = arith.fptosi %16 : vector<16x1xf32> to vector<16x1xi32>
    %18 = vector.broadcast %17 : vector<16x1xi32> to vector<16x32xi32>
    %19 = arith.cmpi eq, %1, %18 : vector<16x32xi32>
    %20 = arith.ori %15, %19 : vector<16x32xi1>
    %21 = arith.extui %20 : vector<16x32xi1> to vector<16x32xi32>
    %22 = arith.sitofp %21 : vector<16x32xi32> to vector<16x32xf32>
    %23 = arith.truncf %22 : vector<16x32xf32> to vector<16x32xbf16>
    %c0_1 = arith.constant 0 : index
    %c0_2 = arith.constant 0 : index
    %24 = vector.load %arg1[%c0_1, %c0_2] : memref<32x512xbf16, #tpu.memory_space<vmem>>, vector<32x512xbf16>
    %cst = arith.constant dense<0.000000e+00> : vector<16x512xf32>
    %25 = tpu.matmul %23, %24, %cst {dimension_numbers = #tpu.dot_dimension_numbers<[1], [0], [0], [1], [0, 0, 1, 1], [], []>} : vector<16x32xbf16>, vector<32x512xbf16>, vector<16x512xf32> -> vector<16x512xf32>
    %c0_3 = arith.constant 0 : index
    %c0_4 = arith.constant 0 : index
    %26 = vector.load %arg4[%c0_3, %c0_4] : memref<4x768xf32, #tpu.memory_space<vmem>>, vector<1x512xf32>
    %27 = vector.broadcast %26 : vector<1x512xf32> to vector<16x512xf32>
    %28 = arith.addf %25, %27 : vector<16x512xf32>
    %cst_5 = arith.constant 0.000000e+00 : f32
    %29 = vector.broadcast %cst_5 : f32 to vector<16x512xf32>
    %30 = arith.cmpf ogt, %28, %29 : vector<16x512xf32>
    %cst_6 = arith.constant 0.000000e+00 : f32
    %31 = vector.broadcast %cst_6 : f32 to vector<16x512xf32>
    %32 = arith.minimumf %28, %31 : vector<16x512xf32>
    %33 = math.exp %32 : vector<16x512xf32>
    %cst_7 = arith.constant 1.000000e+00 : f32
    %34 = vector.broadcast %cst_7 : f32 to vector<16x512xf32>
    %35 = arith.subf %33, %34 : vector<16x512xf32>
    %cst_8 = arith.constant 1.67326319 : f32
    %36 = vector.broadcast %cst_8 : f32 to vector<16x512xf32>
    %37 = arith.mulf %36, %35 : vector<16x512xf32>
    %38 = arith.select %30, %28, %37 : vector<16x512xi1>, vector<16x512xf32>
    %cst_9 = arith.constant 1.05070102 : f32
    %39 = vector.broadcast %cst_9 : f32 to vector<16x512xf32>
    %40 = arith.mulf %39, %38 : vector<16x512xf32>
    %41 = arith.truncf %40 : vector<16x512xf32> to vector<16x512xbf16>
    %c0_10 = arith.constant 0 : index
    %c0_11 = arith.constant 0 : index
    %42 = vector.load %arg2[%c0_10, %c0_11] : memref<512x768xbf16, #tpu.memory_space<vmem>>, vector<512x768xbf16>
    %cst_12 = arith.constant dense<0.000000e+00> : vector<16x768xf32>
    %43 = tpu.matmul %41, %42, %cst_12 {dimension_numbers = #tpu.dot_dimension_numbers<[1], [0], [0], [1], [0, 0, 1, 1], [], []>} : vector<16x512xbf16>, vector<512x768xbf16>, vector<16x768xf32> -> vector<16x768xf32>
    %44 = tpu.iota {dimensions = array<i32: 1>} : vector<16x48xi32>
    %45 = vector.extract_strided_slice %0 {offsets = [0, 38], sizes = [16, 1], strides = [1, 1]} : vector<16x48xf32> to vector<16x1xf32>
    %46 = arith.fptosi %45 : vector<16x1xf32> to vector<16x1xi32>
    %47 = vector.broadcast %46 : vector<16x1xi32> to vector<16x48xi32>
    %48 = arith.cmpi eq, %44, %47 : vector<16x48xi32>
    %49 = vector.extract_strided_slice %0 {offsets = [0, 39], sizes = [16, 1], strides = [1, 1]} : vector<16x48xf32> to vector<16x1xf32>
    %50 = arith.fptosi %49 : vector<16x1xf32> to vector<16x1xi32>
    %51 = vector.broadcast %50 : vector<16x1xi32> to vector<16x48xi32>
    %52 = arith.cmpi eq, %44, %51 : vector<16x48xi32>
    %53 = arith.ori %48, %52 : vector<16x48xi1>
    %54 = arith.extui %53 : vector<16x48xi1> to vector<16x48xi32>
    %55 = arith.sitofp %54 : vector<16x48xi32> to vector<16x48xf32>
    %56 = arith.addf %0, %55 : vector<16x48xf32>
    %57 = arith.truncf %56 : vector<16x48xf32> to vector<16x48xbf16>
    %c0_13 = arith.constant 0 : index
    %c0_14 = arith.constant 0 : index
    %58 = vector.load %arg3[%c0_13, %c0_14] : memref<48x768xbf16, #tpu.memory_space<vmem>>, vector<48x768xbf16>
    %cst_15 = arith.constant dense<0.000000e+00> : vector<16x768xf32>
    %59 = tpu.matmul %57, %58, %cst_15 {dimension_numbers = #tpu.dot_dimension_numbers<[1], [0], [0], [1], [0, 0, 1, 1], [], []>} : vector<16x48xbf16>, vector<48x768xbf16>, vector<16x768xf32> -> vector<16x768xf32>
    %60 = arith.addf %43, %59 : vector<16x768xf32>
    %61 = vector.extract_strided_slice %0 {offsets = [0, 40], sizes = [16, 1], strides = [1, 1]} : vector<16x48xf32> to vector<16x1xf32>
    %c1 = arith.constant 1 : index
    %c0_16 = arith.constant 0 : index
    %62 = vector.load %arg4[%c1, %c0_16] : memref<4x768xf32, #tpu.memory_space<vmem>>, vector<1x768xf32>
    %63 = vector.broadcast %62 : vector<1x768xf32> to vector<16x768xf32>
    %64 = arith.addf %60, %63 : vector<16x768xf32>
    %c2 = arith.constant 2 : index
    %c0_17 = arith.constant 0 : index
    %65 = vector.load %arg4[%c2, %c0_17] : memref<4x768xf32, #tpu.memory_space<vmem>>, vector<1x768xf32>
    %66 = vector.broadcast %61 : vector<16x1xf32> to vector<16x768xf32>
    %67 = vector.broadcast %65 : vector<1x768xf32> to vector<16x768xf32>
    %68 = arith.mulf %66, %67 : vector<16x768xf32>
    %c3 = arith.constant 3 : index
    %c0_18 = arith.constant 0 : index
    %69 = vector.load %arg4[%c3, %c0_18] : memref<4x768xf32, #tpu.memory_space<vmem>>, vector<1x768xf32>
    %70 = vector.broadcast %69 : vector<1x768xf32> to vector<16x768xf32>
    %71 = arith.addf %68, %70 : vector<16x768xf32>
    %72 = math.cos %71 : vector<16x768xf32>
    %cst_19 = arith.constant 0.0360843912 : f32
    %73 = vector.broadcast %cst_19 : f32 to vector<16x768xf32>
    %74 = arith.mulf %73, %72 : vector<16x768xf32>
    %75 = arith.addf %64, %74 : vector<16x768xf32>
    %c0_20 = arith.constant 0 : index
    %c0_21 = arith.constant 0 : index
    %76 = vector.load %arg5[%c0_20, %c0_21] : memref<16x768xf32, #tpu.memory_space<vmem>>, vector<16x768xf32>
    tpu.vector_store %arg5[%c0_20, %c0_21], %75 {strides = array<i32>} : memref<16x768xf32, #tpu.memory_space<vmem>>, vector<16x768xf32>,
    return
  }
}

</mosaic_0001>

<bundles_post_ra>
// kernel: traj_conv_forward.1
= control target key start
LH: loop header
LB: loop body
LE: loop exit
PB: predicated region body
PF: predicated region fallthrough
CT: control target
= control target key end

     0   :  { %10 = vsyncpa [#allocation3], 0  ;;  %s6051_s0 = inlined_call_operand.vmem [shape: f32[16,48], index: 0, kind: input, shape index: {}]   ;;  %s6052_s1 = inlined_call_operand.vmem [shape: bf16[32,512], index: 1, kind: input, shape index: {}]   ;;  %s6053_s2 = inlined_call_operand.hbm [shape: bf16[512,768], index: 2, kind: input, shape index: {}]   ;;  %s6054_s3 = inlined_call_operand.vmem [shape: bf16[48,768], index: 3, kind: input, shape index: {}]   ;;  %s6055_s4 = inlined_call_operand.vmem [shape: f32[4,768], index: 4, kind: input, shape index: {}]   ;;  %s6056_s5 = inlined_call_operand.hbm [shape: f32[16,768], index: 5, kind: output, shape index: {}]  }
   0x1   :  { %11 = vsyncpa [#allocation4], 0  ;;  %s4259_s18 = smov [#allocation2]   ;;  %s4211_s22 = scalar_lea.hbm %s6053_s2, 24576 }
   0x2   :  { %s21_s19 = sshll.u32 %s4259_s18, 4  ;;  %p4212_p0 = scmp.ne.s32.totalorder %s6053_s2, %s4211_s22  ;;  %s22_s19 = int_to_ptr.vmem [resolvable:$true] %s21_s19 }
   0x3   :  { %p4215_p1 = scmp.lt.u32.totalorder %s4211_s22, %s6053_s2 }
   0x5   :  { %p4217_p2 = pnand %p4215_p1, %p4212_p0 }
   0x7   :  { %4220 = shalt.err (!%p4217_p2)
}
   0x8   :  { %s4221_s27 = scalar_lea.vmem %s22_s19, 24576  ;;  %p4226_p4 = scmp.lt.s32.totalorder %s22_s19, %s22_s19 }
   0x9   :  { %p4222_p3 = scmp.ne.s32.totalorder %s22_s19, %s4221_s27  ;;  %p4227_p5 = scmp.lt.s32.totalorder %s4221_s27, %s4221_s27 }
   0xb   :  { %p4228_p6 = por %p4227_p5, %p4226_p4 }
   0xd   :  { %p4229_p7 = pnand %p4228_p6, %p4222_p3 }
   0xf   :  { %4232 = shalt.err (!%p4229_p7)
}
  0x10   :  { %s4260_s28 = smov 384   ;;  %s4261_s29 = smov 24  }
  0x11   :  { %27 = dma.hbm_to_vmem [thread:$0]  %s6053_s2, 24576, %s22_s19, [#allocation3], %s4260_s28, %s4260_s28, %s4261_s29  }
  0x12   :  { %4255 = dma.done.wait [#allocation3], 24576  }
  0x13   :  { %4256 = vsyncadd [#allocation3], 4294942720  ;;  %v4262_v0 = vmov 35   ;;  %v4263_v1 = vmov 34   ;;  %v4325_v2 = vld [vmem:[%s6051_s0] sm:$0xff]  ;;  %v4330_v3 = vld [vmem:[%s6051_s0 + $0x8] sm:$0xff]  ;;  %v38_v27 = vlaneseq }
  0x14   :  { %3807 = vset.pattern.permute.xlu1 %v4262_v0  ;;  %3806 = vset.pattern.permute.xlu0 %v4263_v1  ;;  %v3733_v4 = vtrunc.f32 %v4325_v2  ;;  %v3735_v5 = vtrunc.f32 %v4330_v3  ;;  %v4264_v8 = vmov 36   ;;  %v3817_v9 = vld [vmem:[%s6052_s1 + $0x4] ss:$16 sps:$4 sm:$0xff]   ;;  %v3819_v10 = vld [vmem:[%s6052_s1] ss:$16 sps:$4 sm:$0xff]   ;;  %v4265_v11 = vmov 37  }
  0x15   :  { %159 = vmatprep.subr.bf16.mxu1 %v3817_v9  ;;  %v3820_v12 = vld [vmem:[%s6052_s1 + $0x24] ss:$16 sps:$4 sm:$0xff]   ;;  %v3822_v13 = vld [vmem:[%s6052_s1 + $0x20] ss:$16 sps:$4 sm:$0xff]   ;;  %v3825_v14 = vld [vmem:[%s6052_s1 + $0xc] ss:$16 sps:$4 sm:$0xff]  }
  0x16   :  { %v3734_v6 = vcvt.f32.s32 %v3733_v4  ;;  %v3736_v7 = vcvt.f32.s32 %v3735_v5  ;;  %160 = vmatpush1.bf16.msra.mxu1 %v3819_v10  ;;  %v4266_v15 = vmov 0   ;;  %v4267_v16 = vmov 38   ;;  %v3829_v18 = vld [vmem:[%s6054_s3 + $0x4] ss:$24 sps:$4 sm:$0xff]   ;;  %v3831_v19 = vld [vmem:[%s6054_s3] ss:$24 sps:$4 sm:$0xff]  }
  0x17   :  { %161 = vmatprep.subr.bf16.mxu1 %v3820_v12  ;;  %191 = vmatprep.mubr.bf16.mxu1 %v4266_v15  ;;  %v4268_v17 = vmov 39   ;;  %v3832_v20 = vld [vmem:[%s6054_s3 + $0x34] ss:$24 sps:$4 sm:$0xff]   ;;  %v3834_v21 = vld [vmem:[%s6054_s3 + $0x30] ss:$24 sps:$4 sm:$0xff]   ;;  %v39_v30 = vand.u32 127, %v38_v27 }
  0x18   :  { %51 = vperm.xlu1 %3807, %v3734_v6   ;;  %43 = vperm.xlu0 %3806, %v3734_v6   ;;  %v3835_v22 = vld [vmem:[%s6054_s3 + $0x64] ss:$24 sps:$4 sm:$0xff]   ;;  %v3837_v23 = vld [vmem:[%s6054_s3 + $0x60] ss:$24 sps:$4 sm:$0xff]   ;;  %v3843_v24 = vld [vmem:[%s6054_s3 + $0x14] ss:$24 sps:$4 sm:$0xff]  }
  0x19   :  { %674 = vmatprep.mubr.bf16.mxu0 %v4266_v15  ;;  %642 = vmatprep.subr.bf16.mxu0 %v3829_v18  ;;  %v4269_v35 = vmov 0.0   ;;  %v3823_v38 = vld [vmem:[%s6052_s1 + $0x8] ss:$16 sps:$4 sm:$0xff]   ;;  %vm155_vm14 = vcmask 261120   ;;  %v3828_v40 = vld [vmem:[%s6052_s1 + $0x2c] ss:$16 sps:$4 sm:$0xff]  }
  0x1a   :  { %162 = vmatpush1.bf16.msra.mxu1 %v3822_v13  ;;  %643 = vmatpush1.bf16.msra.mxu0 %v3831_v19  ;;  %v3826_v41 = vld [vmem:[%s6052_s1 + $0x28] ss:$16 sps:$4 sm:$0xff]   ;;  %v3840_v42 = vld [vmem:[%s6054_s3 + $0xc] ss:$24 sps:$4 sm:$0xff]   ;;  %v3846_v44 = vld [vmem:[%s6054_s3 + $0x3c] ss:$24 sps:$4 sm:$0xff]  }
  0x1b   :  { %202 = vmatprep.subr.bf16.mxu1 %v3825_v14  ;;  %644 = vmatprep.subr.bf16.mxu0 %v3832_v20  ;;  %v3838_v43 = vld [vmem:[%s6054_s3 + $0x8] ss:$24 sps:$4 sm:$0xff]   ;;  %v3844_v47 = vld [vmem:[%s6054_s3 + $0x38] ss:$24 sps:$4 sm:$0xff]   ;;  %v3852_v48 = vld [vmem:[%s6054_s3 + $0x6c] ss:$24 sps:$4 sm:$0xff]  }
  0x1c   :  { %54 = vperm.xlu1 %3807, %v3736_v7   ;;  %46 = vperm.xlu0 %3806, %v3736_v7   ;;  %v3850_v50 = vld [vmem:[%s6054_s3 + $0x68] ss:$24 sps:$4 sm:$0xff]   ;;  %v3858_v51 = vld [vmem:[#allocation2 + $0x4] ss:$24 sps:$4 sm:$0xff]   ;;  %v3861_v61 = vld [vmem:[#allocation2 + $0x34] ss:$24 sps:$4 sm:$0xff]  }
  0x1d   :  { %v3841_v57 = vld [vmem:[%s6054_s3 + $0x10] ss:$24 sps:$4 sm:$0xff]   ;;  %v3849_v59 = vld [vmem:[%s6054_s3 + $0x44] ss:$24 sps:$4 sm:$0xff]   ;;  %v3856_v60 = vld [vmem:[#allocation2] ss:$24 sps:$4 sm:$0xff]  }
  0x1e   :  { %645 = vmatpush1.bf16.msra.mxu0 %v3834_v21  ;;  %v3847_v62 = vld [vmem:[%s6054_s3 + $0x40] ss:$24 sps:$4 sm:$0xff]   ;;  %v3855_v63 = vld [vmem:[%s6054_s3 + $0x74] ss:$24 sps:$4 sm:$0xff]   ;;  %v3859_v0 = vld [vmem:[#allocation2 + $0x30] ss:$24 sps:$4 sm:$0xff]  }
  0x1f   :  { %646 = vmatprep.subr.bf16.mxu0 %v3835_v22  ;;  %v3864_v1 = vld [vmem:[#allocation2 + $0x64] ss:$24 sps:$4 sm:$0xff]   ;;  %v3853_v4 = vld [vmem:[%s6054_s3 + $0x70] ss:$24 sps:$4 sm:$0xff]   ;;  %v3862_v5 = vld [vmem:[#allocation2 + $0x60] ss:$24 sps:$4 sm:$0xff]  }
  0x20   :  { %3809 = vset.pattern.permute.xlu1 %v4264_v8  ;;  %3808 = vset.pattern.permute.xlu0 %v4264_v8  ;;  %v3865_v8 = vld [vmem:[#allocation2 + $0x300] ss:$24 sps:$4 sm:$0xff]   ;;  %v3868_v9 = vld [vmem:[#allocation2 + $0x90] ss:$24 sps:$4 sm:$0xff]   ;;  %v3873_v10 = vld [vmem:[#allocation2 + $0x334] ss:$24 sps:$4 sm:$0xff]  }
  0x21   :  { %64 = vperm.xlu1 %3809, %v3736_v7   ;;  %61 = vperm.xlu0 %3808, %v3734_v6   ;;  %v3871_v12 = vld [vmem:[#allocation2 + $0x330] ss:$24 sps:$4 sm:$0xff]   ;;  %v3874_v13 = vld [vmem:[#allocation2 + $0xc0] ss:$24 sps:$4 sm:$0xff]   ;;  %v3879_v14 = vld [vmem:[#allocation2 + $0x364] ss:$24 sps:$4 sm:$0xff]  }
  0x22   :  { %647 = vmatpush1.bf16.msra.mxu0 %v3837_v23  ;;  %v3885_v18 = vld [vmem:[#allocation2 + $0x394] ss:$24 sps:$4 sm:$0xff]   ;;  %v3888_v19 = vld [vmem:[#allocation2 + $0x124] ss:$24 sps:$4 sm:$0xff]   ;;  %v3883_v20 = vld [vmem:[#allocation2 + $0x390] ss:$24 sps:$4 sm:$0xff]  }
  0x23   :  { %728 = vmatprep.subr.bf16.mxu0 %v3843_v24  ;;  %v3886_v21 = vld [vmem:[#allocation2 + $0x120] ss:$24 sps:$4 sm:$0xff]   ;;  %v3891_v22 = vld [vmem:[#allocation2 + $0x3c4] ss:$24 sps:$4 sm:$0xff]   ;;  %v3894_v23 = vld [vmem:[#allocation2 + $0x154] ss:$24 sps:$4 sm:$0xff]  }
  0x24   :  { %v3889_v24 = vld [vmem:[#allocation2 + $0x3c0] ss:$24 sps:$4 sm:$0xff]  }
  0x25   :  { %3810 = vset.pattern.permute.xlu1 %v4265_v11  ;;  %3811 = vset.pattern.permute.xlu0 %v4265_v11  ;;  %v3876_v11 = vld [vmem:[#allocation2 + $0xc4] ss:$24 sps:$4 sm:$0xff]  }
  0x26   :  { %71 = vperm.xlu1 %3810, %v3734_v6   ;;  %74 = vperm.xlu0 %3811, %v3736_v7  }
  0x2a   :  { %3812 = vset.pattern.permute.xlu1 %v4267_v16  ;;  %3813 = vset.pattern.permute.xlu0 %v4268_v17  ;;  %v3877_v16 = vld [vmem:[#allocation2 + $0x360] ss:$24 sps:$4 sm:$0xff]  }
  0x2b   :  { %506 = vperm.xlu1 %3812, %v3734_v6   ;;  %514 = vperm.xlu0 %3813, %v3734_v6   ;;  %v3867_v6 = vld [vmem:[#allocation2 + $0x304] ss:$24 sps:$4 sm:$0xff]  }
  0x2f   :  { %509 = vperm.xlu1 %3812, %v3736_v7  }
  0x33   :  { %3814 = vset.pattern.permute.xlu1 %v4268_v17  ;;  %v3880_v17 = vld [vmem:[#allocation2 + $0xf0] ss:$24 sps:$4 sm:$0xff]  }
  0x34   :  { %517 = vperm.xlu1 %3814, %v3736_v7   ;;  %v3870_v7 = vld [vmem:[#allocation2 + $0x94] ss:$24 sps:$4 sm:$0xff]  }
  0x97   :  { %v52_v25 = vpop.permute.xlu1 %51  ;;  %v44_v26 = vpop.permute.xlu0 %43 }
  0x98   :  { %vm56_vm0 = vcmp.eq.s32.totalorder %v39_v30, %v52_v25  ;;  %vm48_vm1 = vcmp.eq.s32.totalorder %v39_v30, %v44_v26  ;;  %v3892_v25 = vld [vmem:[#allocation2 + $0x150] ss:$24 sps:$4 sm:$0xff]   ;;  %v3897_v26 = vld [vmem:[#allocation2 + $0x3f4] ss:$24 sps:$4 sm:$0xff]  }
  0x99   :  { %vm58_vm5 = vmor %vm48_vm1, %vm56_vm0 }
  0x9b   :  { %v55_v28 = vpop.permute.xlu1 %54  ;;  %v47_v29 = vpop.permute.xlu0 %46 }
  0x9c   :  { %vm57_vm2 = vcmp.eq.s32.totalorder %v39_v30, %v55_v28  ;;  %vm49_vm3 = vcmp.eq.s32.totalorder %v39_v30, %v47_v29  ;;  %v3900_v28 = vld [vmem:[#allocation2 + $0x184] ss:$24 sps:$4 sm:$0xff]   ;;  %v3895_v29 = vld [vmem:[#allocation2 + $0x3f0] ss:$24 sps:$4 sm:$0xff]  }
  0x9d   :  { %vm59_vm7 = vmor %vm49_vm3, %vm57_vm2 }
  0xa0   :  { %v65_v31 = vpop.permute.xlu1 %64  ;;  %v62_v32 = vpop.permute.xlu0 %61 }
  0xa1   :  { %vm67_vm4 = vcmp.eq.s32.totalorder %v39_v30, %v65_v31  ;;  %vm66_vm6 = vcmp.eq.s32.totalorder %v39_v30, %v62_v32  ;;  %v3903_v31 = vld [vmem:[#allocation2 + $0x424] ss:$24 sps:$4 sm:$0xff]   ;;  %v3901_v32 = vld [vmem:[#allocation2 + $0x420] ss:$24 sps:$4 sm:$0xff]  }
  0xa2   :  { %vm69_vm8 = vmor %vm59_vm7, %vm67_vm4 }
  0xa3   :  { %vm68_vm9 = vmor %vm58_vm5, %vm66_vm6  ;;  %vm638_vm5 = vcmask 392192  }
  0xa5   :  { %v72_v33 = vpop.permute.xlu1 %71  ;;  %v75_v34 = vpop.permute.xlu0 %74 }
  0xa6   :  { %vm76_vm10 = vcmp.eq.s32.totalorder %v39_v30, %v72_v33  ;;  %vm77_vm11 = vcmp.eq.s32.totalorder %v39_v30, %v75_v34  ;;  %v3906_v33 = vld [vmem:[#allocation2 + $0x1b4] ss:$24 sps:$4 sm:$0xff]  }
  0xa7   :  { %vm78_vm12 = vmor %vm68_vm9, %vm76_vm10  ;;  %v3909_v34 = vld [vmem:[#allocation2 + $0x454] ss:$24 sps:$4 sm:$0xff]  }
  0xa8   :  { %v3423_v36 = vsel %vm78_vm12, 1.0, %v4269_v35  ;;  %vm79_vm13 = vmor %vm69_vm8, %vm77_vm11 }
  0xa9   :  { %v3424_v37 = vsel %vm79_vm13, 1.0, %v4269_v35 }
  0xaa   :  { %v84_v39 = vpack.c.bf16 %v3424_v37, %v3423_v36  ;;  %v507_v45 = vpop.permute.xlu1 %506  ;;  %v515_v46 = vpop.permute.xlu0 %514  ;;  %v3907_v36 = vld [vmem:[#allocation2 + $0x450] ss:$24 sps:$4 sm:$0xff]   ;;  %v3912_v37 = vld [vmem:[#allocation2 + $0x1e4] ss:$24 sps:$4 sm:$0xff]  }
  0xab   :  { %vm511_vm15 = vcmp.eq.s32.totalorder %v39_v30, %v507_v45  ;;  %vm519_vm0 = vcmp.eq.s32.totalorder %v39_v30, %v515_v46  ;;  %v3924_v45 = vld [vmem:[#allocation2 + $0x244] ss:$24 sps:$4 sm:$0xff]  }
  0xac   :  { %3433 = vmatmul.mubr.msk.bf16.vlgmr.msra.gmra.mrb[0].mxu1 %vm155_vm14, %v84_v39  ;;  %vm521_vm1 = vmor %vm511_vm15, %vm519_vm0  ;;  %v3927_v46 = vld [vmem:[#allocation2 + $0x4e4] ss:$24 sps:$4 sm:$0xff]  }
  0xad   :  { %203 = vmatpush1.bf16.msra.mxu1 %v3823_v38  ;;  %234 = vmatprep.mubr.bf16.mxu1 %v4266_v15  ;;  %v3443_v52 = vsel %vm521_vm1, 1.0, %v4269_v35  ;;  %v3915_v38 = vld [vmem:[#allocation2 + $0x484] ss:$24 sps:$4 sm:$0xff]  }
  0xae   :  { %204 = vmatprep.subr.bf16.mxu1 %v3828_v40  ;;  %v510_v49 = vpop.permute.xlu1 %509  ;;  %v527_v54 = vadd.f32 %v3443_v52, %v4325_v2  ;;  %v3913_v40 = vld [vmem:[#allocation2 + $0x480] ss:$24 sps:$4 sm:$0xff]   ;;  %v3931_v52 = vld [vmem:[#allocation2 + $0x510] ss:$24 sps:$4 sm:$0xff]  }
  0xaf   :  { %vm512_vm2 = vcmp.eq.s32.totalorder %v39_v30, %v510_v49  ;;  %v3930_v49 = vld [vmem:[#allocation2 + $0x274] ss:$24 sps:$4 sm:$0xff]  }
  0xb1   :  { %205 = vmatpush1.bf16.msra.mxu1 %v3826_v41  ;;  %v3918_v41 = vld [vmem:[#allocation2 + $0x214] ss:$24 sps:$4 sm:$0xff]  }
  0xb2   :  { %685 = vmatprep.subr.bf16.mxu1 %v3840_v42  ;;  %v3921_v42 = vld [vmem:[#allocation2 + $0x4b4] ss:$24 sps:$4 sm:$0xff]  }
  0xb3   :  { %v518_v53 = vpop.permute.xlu1 %517 }
  0xb4   :  { %3434 = vmatmul.mubr.msk.bf16.vlgmr.msra.gmra.mrb[4].mxu1 %vm155_vm14, %v84_v39  ;;  %vm520_vm3 = vcmp.eq.s32.totalorder %v39_v30, %v518_v53  ;;  %v3898_v30 = vld [vmem:[#allocation2 + $0x180] ss:$24 sps:$4 sm:$0xff]   ;;  %v3936_v53 = vld [vmem:[#allocation2 + $0x2a4] ss:$24 sps:$4 sm:$0xff]  }
  0xb5   :  { %686 = vmatpush1.bf16.msra.mxu1 %v3838_v43  ;;  %717 = vmatprep.mubr.bf16.mxu1 %v4266_v15  ;;  %vm522_vm4 = vmor %vm512_vm2, %vm520_vm3  ;;  %v3910_v39 = vld [vmem:[#allocation2 + $0x1e0] ss:$24 sps:$4 sm:$0xff]   ;;  %v3916_v43 = vld [vmem:[#allocation2 + $0x210] ss:$24 sps:$4 sm:$0xff]  }
  0xb6   :  { %687 = vmatprep.subr.bf16.mxu1 %v3846_v44  ;;  %v3444_v55 = vsel %vm522_vm4, 1.0, %v4269_v35  ;;  %v3904_v35 = vld [vmem:[#allocation2 + $0x1b0] ss:$24 sps:$4 sm:$0xff]  }
  0xb7   :  { %v528_v56 = vadd.f32 %v3444_v55, %v4330_v3  ;;  %v3919_v44 = vld [vmem:[#allocation2 + $0x4b0] ss:$24 sps:$4 sm:$0xff]   ;;  %v3934_v55 = vld [vmem:[#allocation2 + $0x2a0] ss:$24 sps:$4 sm:$0xff]  }
  0xb9   :  { %688 = vmatpush1.bf16.msra.mxu1 %v3844_v47  ;;  %v529_v58 = vpack.c.bf16 %v528_v56, %v527_v54  ;;  %v3922_v47 = vld [vmem:[#allocation2 + $0x240] ss:$24 sps:$4 sm:$0xff]   ;;  %v3939_v54 = vld [vmem:[#allocation2 + $0x544] ss:$24 sps:$4 sm:$0xff]  }
  0xba   :  { %689 = vmatprep.subr.bf16.mxu1 %v3852_v48  ;;  %v3925_v48 = vld [vmem:[#allocation2 + $0x4e0] ss:$24 sps:$4 sm:$0xff]  }
  0xbb   :  { %3463 = vmatmul.mubr.msk.bf16.vlgmr.msra.gmra.mrb[0].mxu0 %vm638_vm5, %v529_v58  ;;  %v3937_v56 = vld [vmem:[#allocation2 + $0x540] ss:$24 sps:$4 sm:$0xff]  }
  0xbc   :  { %729 = vmatpush1.bf16.msra.mxu0 %v3841_v57  ;;  %760 = vmatprep.mubr.bf16.mxu0 %v4266_v15  ;;  %v3882_v15 = vld [vmem:[#allocation2 + $0xf4] ss:$24 sps:$4 sm:$0xff]  }
  0xbd   :  { %690 = vmatpush1.bf16.msra.mxu1 %v3850_v50  ;;  %730 = vmatprep.subr.bf16.mxu0 %v3849_v59  ;;  %v3933_v50 = vld [vmem:[#allocation2 + $0x514] ss:$24 sps:$4 sm:$0xff]   ;;  %v3940_v59 = vld [vmem:[#allocation2 + $0x2d0] ss:$24 sps:$4 sm:$0xff]  }
  0xbe   :  { %1731 = vmatprep.subr.bf16.mxu1 %v3858_v51  ;;  %v3928_v51 = vld [vmem:[#allocation2 + $0x270] ss:$24 sps:$4 sm:$0xff]   ;;  %v3942_v57 = vld [vmem:[#allocation2 + $0x2d4] ss:$24 sps:$4 sm:$0xff]  }
  0xc0   :  { %3464 = vmatmul.mubr.msk.bf16.vlgmr.msra.gmra.mrb[8].mxu1 %vm638_vm5, %v529_v58  ;;  %731 = vmatpush1.bf16.msra.mxu0 %v3847_v62  ;;  %v3951_v62 = vld [vmem:[#allocation2 + $0xc] ss:$24 sps:$4 sm:$0xff]  }
  0xc1   :  { %1732 = vmatpush1.bf16.msra.mxu1 %v3856_v60  ;;  %732 = vmatprep.subr.bf16.mxu0 %v3855_v63  ;;  %v3943_v60 = vld [vmem:[#allocation2 + $0x570] ss:$24 sps:$4 sm:$0xff]   ;;  %v3946_v63 = vld [vmem:[#allocation2 + $0x5a0] ss:$24 sps:$4 sm:$0xff]  }
  0xc2   :  { %1733 = vmatprep.subr.bf16.mxu1 %v3861_v61  ;;  %v3948_v61 = vld [vmem:[#allocation2 + $0x5a4] ss:$24 sps:$4 sm:$0xff]  }
  0xc4   :  { %733 = vmatpush1.bf16.msra.mxu0 %v3853_v4  ;;  %v3963_v4 = vld [vmem:[#allocation2 + $0x14] ss:$24 sps:$4 sm:$0xff]  }
  0xc5   :  { %1734 = vmatpush1.bf16.msra.mxu1 %v3859_v0  ;;  %1774 = vmatprep.subr.bf16.mxu0 %v3867_v6  ;;  %v3954_v0 = vld [vmem:[#allocation2 + $0x5d4] ss:$24 sps:$4 sm:$0xff]   ;;  %v4426_v6 = vshrl.u32 %v38_v27, 7 }
  0xc6   :  { %1735 = vmatprep.subr.bf16.mxu1 %v3864_v1  ;;  %v3952_v1 = vld [vmem:[#allocation2 + $0x5d0] ss:$24 sps:$4 sm:$0xff]  }
  0xc7   :  { %3465 = vmatmul.mubr.msk.bf16.vlgmr.msra.gmra.mrb[4].mxu0 %vm638_vm5, %v529_v58  ;;  %v3945_v58 = vld [vmem:[#allocation2 + $0x574] ss:$24 sps:$4 sm:$0xff]   ;;  %6096 = vst [vmem:[#allocation8_spill] sm:$0xff] %v4426_v6  ;;  %v4440_v27 = vsub.s32 2, %v4426_v6 }
  0xc8   :  { %1775 = vmatpush1.bf16.msra.mxu0 %v3865_v8  ;;  %v93_v8 = vld [vmem:[%s6055_s4] ss:$4 sm:$0xf] }
  0xc9   :  { %1736 = vmatpush1.bf16.msra.mxu1 %v3862_v5  ;;  %1776 = vmatprep.subr.bf16.mxu0 %v3873_v10  ;;  %v4270_v5 = vmov 40   ;;  %6099 = vst [vmem:[#allocation11_spill] sm:$0xff] %v4440_v27 }
  0xca   :  { %1737 = vmatprep.subr.bf16.mxu1 %v3870_v7  ;;  %3815 = vset.pattern.permute.xlu1 %v4270_v5  ;;  %v4429_v7 = vsub.s32 0, %v4426_v6 }
  0xcb   :  { %3816 = vset.pattern.permute.xlu0 %v4270_v5  ;;  %2038 = vperm.xlu1 %3815, %v4325_v2  }
  0xcc   :  { %1777 = vmatpush1.bf16.msra.mxu0 %v3871_v12  ;;  %2043 = vperm.xlu0 %3816, %v4330_v3   ;;  %6097 = vst [vmem:[#allocation9_spill] sm:$0xff] %v4429_v7  ;;  %v98_v10 = vrot.slane %v93_v8, %v4429_v7 }
  0xcd   :  { %1738 = vmatpush1.bf16.msra.mxu1 %v3868_v9  ;;  %1778 = vmatprep.subr.bf16.mxu0 %v3879_v14  ;;  %v4435_v9 = vsub.s32 1, %v4426_v6 }
  0xce   :  { %1739 = vmatprep.subr.bf16.mxu1 %v3876_v11 }
  0xcf   :  { %6098 = vst [vmem:[#allocation10_spill] sm:$0xff] %v4435_v9  ;;  %v102_v11 = vrot.slane %v93_v8, %v4435_v9 }
  0xd0   :  { %1779 = vmatpush1.bf16.msra.mxu0 %v3877_v16 }
  0xd1   :  { %1740 = vmatpush1.bf16.msra.mxu1 %v3874_v13  ;;  %1780 = vmatprep.subr.bf16.mxu0 %v3885_v18 }
  0xd2   :  { %1741 = vmatprep.subr.bf16.mxu1 %v3882_v15  ;;  %v4443_v15 = vsub.s32 3, %v4426_v6 }
  0xd4   :  { %1781 = vmatpush1.bf16.msra.mxu0 %v3883_v20  ;;  %6100 = vst [vmem:[#allocation12_spill] sm:$0xff] %v4443_v15 }
  0xd5   :  { %1742 = vmatpush1.bf16.msra.mxu1 %v3880_v17  ;;  %1782 = vmatprep.subr.bf16.mxu0 %v3891_v22 }
  0xd6   :  { %1743 = vmatprep.subr.bf16.mxu1 %v3888_v19 }
  0xd8   :  { %1783 = vmatpush1.bf16.msra.mxu0 %v3889_v24 }
  0xd9   :  { %1744 = vmatpush1.bf16.msra.mxu1 %v3886_v21  ;;  %1784 = vmatprep.subr.bf16.mxu0 %v3897_v26  ;;  %v110_v26 = vrot.slane %v93_v8, %v4443_v15 }
  0xda   :  { %1745 = vmatprep.subr.bf16.mxu1 %v3894_v23  ;;  %v106_v23 = vrot.slane %v93_v8, %v4440_v27 }
  0xdc   :  { %1785 = vmatpush1.bf16.msra.mxu0 %v3895_v29 }
  0xdd   :  { %1746 = vmatpush1.bf16.msra.mxu1 %v3892_v25  ;;  %1786 = vmatprep.subr.bf16.mxu0 %v3903_v31 }
  0xde   :  { %1747 = vmatprep.subr.bf16.mxu1 %v3900_v28 }
  0xe0   :  { %1787 = vmatpush1.bf16.msra.mxu0 %v3901_v32 }
  0xe1   :  { %1748 = vmatpush1.bf16.msra.mxu1 %v3898_v30  ;;  %1788 = vmatprep.subr.bf16.mxu0 %v3909_v34 }
  0xe2   :  { %1749 = vmatprep.subr.bf16.mxu1 %v3906_v33 }
  0xe4   :  { %1789 = vmatpush1.bf16.msra.mxu0 %v3907_v36 }
  0xe5   :  { %1750 = vmatpush1.bf16.msra.mxu1 %v3904_v35  ;;  %1790 = vmatprep.subr.bf16.mxu0 %v3915_v38 }
  0xe6   :  { %1751 = vmatprep.subr.bf16.mxu1 %v3912_v37 }
  0xe8   :  { %1791 = vmatpush1.bf16.msra.mxu0 %v3913_v40 }
  0xe9   :  { %1752 = vmatpush1.bf16.msra.mxu1 %v3910_v39  ;;  %1792 = vmatprep.subr.bf16.mxu0 %v3921_v42 }
  0xea   :  { %1753 = vmatprep.subr.bf16.mxu1 %v3918_v41 }
  0xec   :  { %1793 = vmatpush1.bf16.msra.mxu0 %v3919_v44 }
  0xed   :  { %1754 = vmatpush1.bf16.msra.mxu1 %v3916_v43  ;;  %1794 = vmatprep.subr.bf16.mxu0 %v3927_v46 }
  0xee   :  { %1755 = vmatprep.subr.bf16.mxu1 %v3924_v45 }
  0xf0   :  { %1795 = vmatpush1.bf16.msra.mxu0 %v3925_v48 }
  0xf1   :  { %1756 = vmatpush1.bf16.msra.mxu1 %v3922_v47  ;;  %1796 = vmatprep.subr.bf16.mxu0 %v3933_v50 }
  0xf2   :  { %1757 = vmatprep.subr.bf16.mxu1 %v3930_v49 }
  0xf4   :  { %1797 = vmatpush1.bf16.msra.mxu0 %v3931_v52 }
  0xf5   :  { %1758 = vmatpush1.bf16.msra.mxu1 %v3928_v51  ;;  %1798 = vmatprep.subr.bf16.mxu0 %v3939_v54 }
  0xf6   :  { %1759 = vmatprep.subr.bf16.mxu1 %v3936_v53 }
  0xf8   :  { %1799 = vmatpush1.bf16.msra.mxu0 %v3937_v56 }
  0xf9   :  { %1760 = vmatpush1.bf16.msra.mxu1 %v3934_v55  ;;  %1800 = vmatprep.subr.bf16.mxu0 %v3945_v58 }
  0xfa   :  { %1761 = vmatprep.subr.bf16.mxu1 %v3942_v57 }
  0xfc   :  { %1801 = vmatpush1.bf16.msra.mxu0 %v3943_v60 }
  0xfd   :  { %1762 = vmatpush1.bf16.msra.mxu1 %v3940_v59  ;;  %1802 = vmatprep.subr.bf16.mxu0 %v3948_v61 }
  0xfe   :  { %1817 = vmatprep.subr.bf16.mxu1 %v3951_v62 }
 0x100   :  { %1803 = vmatpush1.bf16.msra.mxu0 %v3946_v63 }
 0x101   :  { %1804 = vmatprep.subr.bf16.mxu0 %v3954_v0 }
 0x104   :  { %1805 = vmatpush1.bf16.msra.mxu0 %v3952_v1 }
 0x105   :  { %1903 = vmatprep.subr.bf16.mxu0 %v3963_v4 }
 0x17f   :  { %v193_v2 = vpop.f32.mrb[0].mxu1 }
 0x180   :  { %v194_v12 = vadd.f32 %v193_v2, %v98_v10  ;;  %v195_v3 = vpop.f32.mrb[1].mxu1 }
 0x181   :  { %v196_v13 = vadd.f32 %v195_v3, %v102_v11  ;;  %v197_v14 = vpop.f32.mrb[2].mxu1 }
 0x182   :  { %v253_v16 = vmin.f32 %v194_v12, 0.0  ;;  %v198_v17 = vadd.f32 %v197_v14, %v98_v10  ;;  %v199_v18 = vpop.f32.mrb[3].mxu1  ;;  %vm245_vm6 = vcmp.gt.f32.partialorder %v194_v12, 0.0 }
 0x183   :  { %v254_v19 = vmin.f32 %v196_v13, 0.0  ;;  %v200_v20 = vadd.f32 %v199_v18, %v102_v11  ;;  %vm246_vm7 = vcmp.gt.f32.partialorder %v196_v13, 0.0 }
 0x184   :  { %v261_v21 = vmul.f32 1.442695, %v253_v16  ;;  %v257_v22 = vmin.f32 %v198_v17, 0.0  ;;  %vm249_vm8 = vcmp.gt.f32.partialorder %v198_v17, 0.0  ;;  %v3949_v16 = vld [vmem:[#allocation2 + $0x8] ss:$24 sps:$4 sm:$0xff]  }
 0x185   :  { %v263_v24 = vmul.f32 1.442695, %v254_v19  ;;  %v258_v25 = vmin.f32 %v200_v20, 0.0  ;;  %vm250_vm9 = vcmp.gt.f32.partialorder %v200_v20, 0.0  ;;  %v3957_v19 = vld [vmem:[#allocation2 + $0x3c] ss:$24 sps:$4 sm:$0xff]  }
 0x186   :  { %4144 = vpow2.f32 %v261_v21  ;;  %v269_v28 = vmul.f32 1.442695, %v257_v22 }
 0x187   :  { %4146 = vpow2.f32 %v263_v24  ;;  %v271_v29 = vmul.f32 1.442695, %v258_v25  ;;  %v236_v30 = vpop.f32.mrb[4].mxu1  ;;  %v3955_v25 = vld [vmem:[#allocation2 + $0x38] ss:$24 sps:$4 sm:$0xff]  }
 0x188   :  { %4148 = vpow2.f32 %v269_v28  ;;  %v237_v31 = vadd.f32 %v236_v30, %v106_v23  ;;  %v238_v32 = vpop.f32.mrb[5].mxu1 }
 0x189   :  { %4150 = vpow2.f32 %v271_v29  ;;  %v239_v33 = vadd.f32 %v238_v32, %v110_v26  ;;  %v240_v34 = vpop.f32.mrb[6].mxu1 }
 0x18a   :  { %v255_v35 = vmin.f32 %v237_v31, 0.0  ;;  %v241_v36 = vadd.f32 %v240_v34, %v106_v23  ;;  %v242_v37 = vpop.f32.mrb[7].mxu1  ;;  %vm247_vm10 = vcmp.gt.f32.partialorder %v237_v31, 0.0 }
 0x18b   :  { %v256_v38 = vmin.f32 %v239_v33, 0.0  ;;  %v4447_v39 = vadd.f32 %v242_v37, %v110_v26  ;;  %vm248_vm11 = vcmp.gt.f32.partialorder %v239_v33, 0.0  ;;  %v3960_v26 = vld [vmem:[#allocation2 + $0x6c] ss:$24 sps:$4 sm:$0xff]   ;;  %v3958_v37 = vld [vmem:[#allocation2 + $0x68] ss:$24 sps:$4 sm:$0xff]  }
 0x18c   :  { %v265_v40 = vmul.f32 1.442695, %v255_v35  ;;  %v259_v41 = vmin.f32 %v241_v36, 0.0  ;;  %vm251_vm12 = vcmp.gt.f32.partialorder %v241_v36, 0.0 }
 0x18d   :  { %v267_v42 = vmul.f32 1.442695, %v256_v38  ;;  %v260_v43 = vmin.f32 %v4447_v39, 0.0  ;;  %vm252_vm13 = vcmp.gt.f32.partialorder %v4447_v39, 0.0  ;;  %v3961_v38 = vld [vmem:[#allocation2 + $0x10] ss:$24 sps:$4 sm:$0xff]  }
 0x18e   :  { %4152 = vpow2.f32 %v265_v40  ;;  %v273_v44 = vmul.f32 1.442695, %v259_v41  ;;  %v3966_v40 = vld [vmem:[#allocation2 + $0x9c] ss:$24 sps:$4 sm:$0xff]  }
 0x18f   :  { %4154 = vpow2.f32 %v267_v42  ;;  %v275_v45 = vmul.f32 1.442695, %v260_v43  ;;  %v3964_v43 = vld [vmem:[#allocation2 + $0x98] ss:$24 sps:$4 sm:$0xff]  }
 0x190   :  { %v4145_v46 = vpop.eup %4144  ;;  %4156 = vpow2.f32 %v273_v44  ;;  %v3967_v44 = vld [vmem:[#allocation2 + $0x40] ss:$24 sps:$4 sm:$0xff]  }
 0x191   :  { %v4147_v47 = vpop.eup %4146  ;;  %v3435_v48 = vadd.f32 -1.0, %v4145_v46  ;;  %4158 = vpow2.f32 %v275_v45  ;;  %v4472_v45 = vld [vmem:[%s6055_s4 + $0x2] ss:$4 sm:$0x3f] }
 0x192   :  { %v4149_v49 = vpop.eup %4148  ;;  %v3436_v50 = vadd.f32 -1.0, %v4147_v47  ;;  %v4477_v46 = vld [vmem:[%s6055_s4 + $0x3] ss:$4 sm:$0x3f] }
 0x193   :  { %v4151_v51 = vpop.eup %4150  ;;  %v285_v52 = vmul.f32 1.6732632, %v3435_v48  ;;  %v3439_v53 = vadd.f32 -1.0, %v4149_v49  ;;  %v3972_v47 = vld [vmem:[#allocation2 + $0xcc] ss:$24 sps:$4 sm:$0xff]   ;;  %v2050_v49 = vrot.slane %v4472_v45, %v4429_v7 }
 0x194   :  { %v286_v54 = vmul.f32 1.6732632, %v3436_v50  ;;  %v3440_v55 = vadd.f32 -1.0, %v4151_v51  ;;  %v3975_v48 = vld [vmem:[#allocation2 + $0x74] ss:$24 sps:$4 sm:$0xff]   ;;  %v4483_v50 = vrot.slane %v4472_v45, %v4435_v9  ;;  %v4485_v51 = vpop.permute.xlu1 %2038 }
 0x195   :  { %v293_v56 = vsel %vm245_vm6, %v194_v12, %v285_v52  ;;  %v289_v57 = vmul.f32 1.6732632, %v3439_v53  ;;  %6105 = vst [vmem:[#allocation17_spill] sm:$0xff] %v4485_v51  ;;  %v2095_v52 = vrot.slane %v4477_v46, %v4429_v7  ;;  %v2077_v53 = vmul.f32 %v2050_v49, %v4485_v51 }
 0x196   :  { %v294_v58 = vsel %vm246_vm7, %v196_v13, %v286_v54  ;;  %v290_v59 = vmul.f32 1.6732632, %v3440_v55  ;;  %v301_v62 = vmul.f32 1.050701, %v293_v56  ;;  %v3970_v54 = vld [vmem:[#allocation2 + $0xc8] ss:$24 sps:$4 sm:$0xff]   ;;  %v4492_v56 = vrot.slane %v4477_v46, %v4435_v9 }
 0x197   :  { %v297_v60 = vsel %vm249_vm8, %v198_v17, %v289_v57  ;;  %v302_v4 = vmul.f32 1.050701, %v294_v58  ;;  %v3973_v55 = vld [vmem:[#allocation2 + $0x70] ss:$24 sps:$4 sm:$0xff]   ;;  %v2078_v57 = vmul.f32 %v4483_v50, %v4485_v51  ;;  %v3978_v58 = vld [vmem:[#allocation2 + $0xfc] ss:$24 sps:$4 sm:$0xff]  }
 0x198   :  { %v4153_v61 = vpop.eup %4152  ;;  %v305_v63 = vmul.f32 1.050701, %v297_v60  ;;  %v298_v0 = vsel %vm250_vm9, %v200_v20, %v290_v59  ;;  %v3981_v59 = vld [vmem:[#allocation2 + $0xa4] ss:$24 sps:$4 sm:$0xff]   ;;  %v4496_v60 = vadd.f32 %v2095_v52, %v2077_v53 }
 0x199   :  { %v4155_v1 = vpop.eup %4154  ;;  %v306_v5 = vmul.f32 1.050701, %v298_v0  ;;  %v3437_v8 = vadd.f32 -1.0, %v4153_v61  ;;  %v3979_v0 = vld [vmem:[#allocation2 + $0xa0] ss:$24 sps:$4 sm:$0xff]  }
 0x19a   :  { %v4157_v10 = vpop.eup %4156  ;;  %v4450_v11 = vpack.c.bf16 %v305_v63, %v301_v62  ;;  %v3438_v2 = vadd.f32 -1.0, %v4155_v1  ;;  %v2137_v61 = vand.u32 2139095040, %v4496_v60  ;;  %v4499_v62 = vpop.permute.xlu0 %2043  ;;  %v3976_v63 = vld [vmem:[#allocation2 + $0xf8] ss:$24 sps:$4 sm:$0xff]   ;;  %v4502_v1 = vadd.f32 %v4492_v56, %v2078_v57 }
 0x19b   :  { %v4159_v12 = vpop.eup %4158  ;;  %v287_v3 = vmul.f32 1.6732632, %v3437_v8  ;;  %v3441_v14 = vadd.f32 -1.0, %v4157_v10  ;;  %v310_v13 = vpack.c.bf16 %v306_v5, %v302_v4  ;;  %6106 = vst [vmem:[#allocation18_spill] sm:$0xff] %v4499_v62  ;;  %v3984_v4 = vld [vmem:[#allocation2 + $0x12c] ss:$24 sps:$4 sm:$0xff]   ;;  %v2083_v10 = vmul.f32 %v2050_v49, %v4499_v62 }
 0x19c   :  { %v288_v17 = vmul.f32 1.6732632, %v3438_v2  ;;  %v3442_v18 = vadd.f32 -1.0, %v4159_v12  ;;  %v3987_v5 = vld [vmem:[#allocation2 + $0xd4] ss:$24 sps:$4 sm:$0xff]   ;;  %v2138_v8 = vshrl.u32 %v2137_v61, 23 }
 0x19d   :  { %v295_v21 = vsel %vm247_vm10, %v237_v31, %v287_v3  ;;  %v291_v20 = vmul.f32 1.6732632, %v3441_v14  ;;  %1763 = vmatprep.mubr.bf16.mxu1 %v310_v13  ;;  %v4455_v31 = vpop.f32.mrb[0].mxu0  ;;  %v3982_v12 = vld [vmem:[#allocation2 + $0x128] ss:$24 sps:$4 sm:$0xff]   ;;  %v2240_v14 = vand.u32 2139095040, %v4502_v1 }
 0x19e   :  { %v296_v22 = vsel %vm248_vm11, %v239_v33, %v288_v17  ;;  %v292_v23 = vmul.f32 1.6732632, %v3442_v18  ;;  %1764 = vmatmul.mubr.bf16.vlgmr.msra.gmra.mrb[12].mxu1 %v4450_v11  ;;  %v303_v28 = vmul.f32 1.050701, %v295_v21  ;;  %6101 = vst [vmem:[#allocation13_spill] sm:$0xff] %v4455_v31  ;;  %v4457_v34 = vpop.f32.mrb[1].mxu0  ;;  %v4506_v18 = vadd.f32 %v2095_v52, %v2083_v10 }
 0x19f   :  { %v299_v24 = vsel %vm251_vm12, %v241_v36, %v291_v20  ;;  %1818 = vmatpush1.bf16.msra.mxu1 %v3949_v16  ;;  %1849 = vmatprep.mubr.bf16.mxu1 %v310_v13  ;;  %v304_v32 = vmul.f32 1.050701, %v296_v22  ;;  %6102 = vst [vmem:[#allocation14_spill] sm:$0xff] %v4457_v34  ;;  %v4463_v41 = vpop.f32.mrb[2].mxu0  ;;  %v3661_v2 = vadd.s32 4294967169, %v2138_v8  ;;  %v2241_v22 = vshrl.u32 %v2240_v14, 23 }
 0x1a0   :  { %v307_v29 = vmul.f32 1.050701, %v299_v24  ;;  %v300_v30 = vsel %vm252_vm13, %v4447_v39, %v292_v23  ;;  %1819 = vmatprep.subr.bf16.mxu1 %v3957_v19  ;;  %6103 = vst [vmem:[#allocation15_spill] sm:$0xff] %v4463_v41  ;;  %v3969_v39 = vld [vmem:[#allocation2 + $0x44] ss:$24 sps:$4 sm:$0xff]   ;;  %v4466_v42 = vpop.f32.mrb[3].mxu0 }
 0x1a1   :  { %v308_v33 = vmul.f32 1.050701, %v300_v30  ;;  %6104 = vst [vmem:[#allocation16_spill] sm:$0xff] %v4466_v42  ;;  %v3985_v3 = vld [vmem:[#allocation2 + $0xd0] ss:$24 sps:$4 sm:$0xff]   ;;  %v2144_v17 = vadd.s32 1, %v3661_v2 }
 0x1a2   :  { %v4459_v35 = vpack.c.bf16 %v307_v29, %v303_v28  ;;  %v3993_v16 = vld [vmem:[#allocation2 + $0x104] ss:$24 sps:$4 sm:$0xff]   ;;  %v3988_v19 = vld [vmem:[#allocation2 + $0x158] ss:$24 sps:$4 sm:$0xff]   ;;  %v3999_v24 = vld [vmem:[#allocation2 + $0x134] ss:$24 sps:$4 sm:$0xff]  }
 0x1a3   :  { %1820 = vmatpush1.bf16.msra.mxu1 %v3955_v25  ;;  %v4461_v36 = vpack.c.bf16 %v308_v33, %v304_v32  ;;  %vm2145_vm14 = vcmp.gt.s32.totalorder %v2144_v17, 0  ;;  %v3991_v21 = vld [vmem:[#allocation2 + $0x100] ss:$24 sps:$4 sm:$0xff]   ;;  %v3996_v23 = vld [vmem:[#allocation2 + $0x18c] ss:$24 sps:$4 sm:$0xff]   ;;  %v3665_v30 = vadd.s32 4294967169, %v2241_v22 }
 0x1a4   :  { %1821 = vmatprep.subr.bf16.mxu1 %v3960_v26  ;;  %v2146_v20 = vsel %vm2145_vm14, %v2144_v17, 0  ;;  %v2755_v26 = vand.u32 2139095040, %v4506_v18  ;;  %v3994_v28 = vld [vmem:[#allocation2 + $0x188] ss:$24 sps:$4 sm:$0xff]   ;;  %v4002_v32 = vld [vmem:[#allocation2 + $0x1bc] ss:$24 sps:$4 sm:$0xff]  }
 0x1a5   :  { %1806 = vmatprep.mubr.bf16.mxu0 %v4461_v36  ;;  %v2148_v25 = vand.u32 31, %v2146_v20  ;;  %v3997_v29 = vld [vmem:[#allocation2 + $0x130] ss:$24 sps:$4 sm:$0xff]   ;;  %v4005_v33 = vld [vmem:[#allocation2 + $0x164] ss:$24 sps:$4 sm:$0xff]  }
 0x1a6   :  { %1807 = vmatmul.mubr.bf16.vlgmr.msra.gmra.mrb[8].mxu0 %v4459_v35  ;;  %v6069_v52 = vmov 683565275   ;;  %v4006_v61 = vld [vmem:[#allocation2 + $0x1e8] ss:$24 sps:$4 sm:$0xff]   ;;  %v4014_v10 = vld [vmem:[#allocation2 + $0x21c] ss:$24 sps:$4 sm:$0xff]  }
 0x1a7   :  { %1822 = vmatpush1.bf16.msra.mxu1 %v3958_v37  ;;  %1904 = vmatpush1.bf16.msra.mxu0 %v3961_v38  ;;  %v4509_v37 = vsub.s32 32, %v2148_v25  ;;  %v2756_v38 = vshrl.u32 %v2755_v26, 23  ;;  %v2151_v53 = vshll.u32 %v6069_v52, %v2148_v25  ;;  %v4017_v2 = vld [vmem:[#allocation2 + $0x1c4] ss:$24 sps:$4 sm:$0xff]   ;;  %v6059_v17 = vmov 920167782  }
 0x1a8   :  { %1935 = vmatprep.mubr.bf16.mxu0 %v310_v13  ;;  %1823 = vmatprep.subr.bf16.mxu1 %v3966_v40  ;;  %v3990_v13 = vld [vmem:[#allocation2 + $0x15c] ss:$24 sps:$4 sm:$0xff]   ;;  %v4000_v40 = vld [vmem:[#allocation2 + $0x1b8] ss:$24 sps:$4 sm:$0xff]  }
 0x1a9   :  { %1905 = vmatprep.subr.bf16.mxu0 %v3969_v39  ;;  %v6058_v39 = vand.u32 2147483647, %v4496_v60  ;;  %v4012_v26 = vld [vmem:[#allocation2 + $0x218] ss:$24 sps:$4 sm:$0xff]  }
 0x1ab   :  { %1824 = vmatpush1.bf16.msra.mxu1 %v3964_v43  ;;  %1906 = vmatpush1.bf16.msra.mxu0 %v3967_v44  ;;  %v4003_v43 = vld [vmem:[#allocation2 + $0x160] ss:$24 sps:$4 sm:$0xff]   ;;  %v4008_v44 = vld [vmem:[#allocation2 + $0x1ec] ss:$24 sps:$4 sm:$0xff]   ;;  %v2141_v49 = vand.u32 8388607, %v6058_v39 }
 0x1ac   :  { %1825 = vmatprep.subr.bf16.mxu1 %v3972_v47  ;;  %1907 = vmatprep.subr.bf16.mxu0 %v3975_v48  ;;  %v2247_v47 = vadd.s32 1, %v3665_v30  ;;  %v4011_v48 = vld [vmem:[#allocation2 + $0x194] ss:$24 sps:$4 sm:$0xff]  }
 0x1ad   :  { %v4023_v30 = vld [vmem:[#allocation2 + $0x1f4] ss:$24 sps:$4 sm:$0xff]  }
 0x1ae   :  { %vm2248_vm15 = vcmp.gt.s32.totalorder %v2247_v47, 0 }
 0x1af   :  { %1826 = vmatpush1.bf16.msra.mxu1 %v3970_v54  ;;  %1908 = vmatpush1.bf16.msra.mxu0 %v3973_v55  ;;  %v3685_v54 = vadd.s32 4294967169, %v2756_v38  ;;  %v6067_v55 = vmov 2475754826  }
 0x1b0   :  { %1827 = vmatprep.subr.bf16.mxu1 %v3978_v58  ;;  %1909 = vmatprep.subr.bf16.mxu0 %v3981_v59  ;;  %v2152_v57 = vshrl.u32 %v6067_v55, %v4509_v37  ;;  %v4517_v58 = vshrl.u32 %v2146_v20, 5  ;;  %v2154_v59 = vshll.u32 %v6067_v55, %v2148_v25  ;;  %v2249_v20 = vsel %vm2248_vm15, %v2247_v47, 0 }
 0x1b1   :  { %v2251_v38 = vand.u32 31, %v2249_v20  ;;  %v2762_v47 = vadd.s32 1, %v3685_v54  ;;  %v4026_v54 = vld [vmem:[#allocation2 + $0x27c] ss:$24 sps:$4 sm:$0xff]  }
 0x1b2   :  { %vm2166_vm0 = vcmp.lt.s32.totalorder %v4517_v58, 1  ;;  %vm2168_vm1 = vcmp.lt.s32.totalorder %v4517_v58, 3  ;;  %vm2169_vm2 = vcmp.lt.s32.totalorder %v4517_v58, 4  ;;  %vm2167_vm3 = vcmp.lt.s32.totalorder %v4517_v58, 2  ;;  %v4038_v58 = vld [vmem:[#allocation2 + $0x2dc] ss:$24 sps:$4 sm:$0xff]  }
 0x1b3   :  { %1828 = vmatpush1.bf16.msra.mxu1 %v3976_v63  ;;  %1910 = vmatpush1.bf16.msra.mxu0 %v3979_v0  ;;  %v4009_v63 = vld [vmem:[#allocation2 + $0x190] ss:$24 sps:$4 sm:$0xff]   ;;  %v2142_v0 = vor.u32 8388608, %v2141_v49  ;;  %vm2763_vm4 = vcmp.gt.s32.totalorder %v2762_v47, 0 }
 0x1b4   :  { %1829 = vmatprep.subr.bf16.mxu1 %v3984_v4  ;;  %1911 = vmatprep.subr.bf16.mxu0 %v3987_v5  ;;  %v6065_v4 = vmov 2131351028  }
 0x1b5   :  { %v2155_v5 = vshrl.u32 %v6065_v4, %v4509_v37  ;;  %v2157_v8 = vshll.u32 %v6065_v4, %v2148_v25 }
 0x1b7   :  { %1830 = vmatpush1.bf16.msra.mxu1 %v3982_v12  ;;  %1912 = vmatpush1.bf16.msra.mxu0 %v3985_v3  ;;  %v2153_v12 = vor.u32 %v2152_v57, %v2151_v53  ;;  %v6061_v3 = vmov 2102212464   ;;  %v4018_v53 = vld [vmem:[#allocation2 + $0x248] ss:$24 sps:$4 sm:$0xff]  }
 0x1b8   :  { %1831 = vmatprep.subr.bf16.mxu1 %v3990_v13  ;;  %1913 = vmatprep.subr.bf16.mxu0 %v3993_v16  ;;  %v2158_v14 = vshrl.u32 %v6061_v3, %v4509_v37  ;;  %v2160_v13 = vshll.u32 %v6061_v3, %v2148_v25  ;;  %v2156_v16 = vor.u32 %v2155_v5, %v2154_v59  ;;  %v4021_v57 = vld [vmem:[#allocation2 + $0x1f0] ss:$24 sps:$4 sm:$0xff]  }
 0x1b9   :  { %v2150_v59 = vshrl.u32 %v6069_v52, %v4509_v37 }
 0x1ba   :  { %v2159_v22 = vor.u32 %v2158_v14, %v2157_v8 }
 0x1bb   :  { %1832 = vmatpush1.bf16.msra.mxu1 %v3988_v19  ;;  %1914 = vmatpush1.bf16.msra.mxu0 %v3991_v21  ;;  %v2161_v19 = vshrl.u32 %v6059_v17, %v4509_v37  ;;  %v2163_v21 = vshll.u32 %v6059_v17, %v2148_v25  ;;  %v4020_v25 = vld [vmem:[#allocation2 + $0x24c] ss:$24 sps:$4 sm:$0xff]  }
 0x1bc   :  { %1833 = vmatprep.subr.bf16.mxu1 %v3996_v23  ;;  %1915 = vmatprep.subr.bf16.mxu0 %v3999_v24  ;;  %v6063_v23 = vmov 1326507024   ;;  %v2171_v5 = vsel %vm2169_vm2, %v2159_v22, 2102212464 }
 0x1bd   :  { %v2164_v24 = vshrl.u32 %v6063_v23, %v4509_v37  ;;  %v4563_v37 = vsub.s32 32, %v2251_v38 }
 0x1bf   :  { %1834 = vmatpush1.bf16.msra.mxu1 %v3994_v28  ;;  %1916 = vmatpush1.bf16.msra.mxu0 %v3997_v29  ;;  %v4015_v28 = vld [vmem:[#allocation2 + $0x1c0] ss:$24 sps:$4 sm:$0xff]   ;;  %v2162_v29 = vor.u32 %v2161_v19, %v2160_v13 }
 0x1c0   :  { %1835 = vmatprep.subr.bf16.mxu1 %v4002_v32  ;;  %1917 = vmatprep.subr.bf16.mxu0 %v4005_v33  ;;  %v2165_v32 = vor.u32 %v2164_v24, %v2163_v21  ;;  %v2174_v33 = vsel %vm2166_vm0, %v2153_v12, %v2156_v16  ;;  %v4024_v19 = vld [vmem:[#allocation2 + $0x278] ss:$24 sps:$4 sm:$0xff]   ;;  %v2172_v24 = vsel %vm2168_vm1, %v2156_v16, %v2171_v5 }
 0x1c1   :  { %v4027_v21 = vld [vmem:[#allocation2 + $0x220] ss:$24 sps:$4 sm:$0xff]  }
 0x1c2   :  { %v2179_v49 = vsel %vm2169_vm2, %v2165_v32, 1326507024  ;;  %v2263_v32 = vshll.u32 %v6061_v3, %v2251_v38 }
 0x1c3   :  { %1836 = vmatpush1.bf16.msra.mxu1 %v4000_v40  ;;  %1918 = vmatpush1.bf16.msra.mxu0 %v4003_v43  ;;  %v2175_v40 = vsel %vm2169_vm2, %v2162_v29, 920167782  ;;  %v2178_v43 = vsel %vm2166_vm0, %v2156_v16, %v2159_v22  ;;  %v6057_v16 = vand.u32 2147483647, %v4502_v1 }
 0x1c4   :  { %1837 = vmatprep.subr.bf16.mxu1 %v4008_v44  ;;  %1919 = vmatprep.subr.bf16.mxu0 %v4011_v48  ;;  %v4542_v44 = vshll.u32 %v2142_v0, 8  ;;  %v2176_v48 = vsel %vm2168_vm1, %v2159_v22, %v2175_v40  ;;  %v4029_v0 = vld [vmem:[#allocation2 + $0x224] ss:$24 sps:$4 sm:$0xff]   ;;  %v2170_v22 = vsel %vm2166_vm0, %v2150_v59, %v2153_v12  ;;  %v2254_v40 = vshll.u32 %v6069_v52, %v2251_v38 }
 0x1c5   :  { %v2173_v12 = vsel %vm2167_vm3, %v2170_v22, %v2172_v24  ;;  %v2261_v59 = vshrl.u32 %v6061_v3, %v4563_v37  ;;  %v4044_v24 = vld [vmem:[#allocation2 + $0x30c] ss:$24 sps:$4 sm:$0xff]  }
 0x1c7   :  { %1838 = vmatpush1.bf16.msra.mxu1 %v4006_v61  ;;  %1920 = vmatpush1.bf16.msra.mxu0 %v4009_v63  ;;  %v2177_v61 = vsel %vm2167_vm3, %v2174_v33, %v2176_v48  ;;  %v2180_v63 = vsel %vm2168_vm1, %v2162_v29, %v2179_v49  ;;  %v2084_v29 = vmul.f32 %v4483_v50, %v4499_v62  ;;  %v4030_v50 = vld [vmem:[#allocation2 + $0x2a8] ss:$24 sps:$4 sm:$0xff]  }
 0x1c8   :  { %1839 = vmatprep.subr.bf16.mxu1 %v4014_v10  ;;  %1921 = vmatprep.subr.bf16.mxu0 %v4017_v2  ;;  %v2181_v8 = vsel %vm2167_vm3, %v2178_v43, %v2180_v63  ;;  %v4559_v10 = vmul.u32.u64.low %v4542_v44, %v2177_v61  ;;  %v4560_v2 = vmul.u32.u64.high %v4542_v44, %v2177_v61, %v4559_v10  ;;  %v2264_v33 = vshrl.u32 %v6059_v17, %v4563_v37 }
 0x1c9   :  { %v4566_v14 = vmul.u32.u64.low %v4542_v44, %v2181_v8  ;;  %v4567_v13 = vmul.u32.u64.high %v4542_v44, %v2181_v8, %v4566_v14  ;;  %v2255_v43 = vshrl.u32 %v6067_v55, %v4563_v37  ;;  %v2258_v48 = vshrl.u32 %v6065_v4, %v4563_v37 }
 0x1ca   :  { %v2260_v49 = vshll.u32 %v6065_v4, %v2251_v38  ;;  %v2266_v61 = vshll.u32 %v6059_v17, %v2251_v38  ;;  %v2267_v63 = vshrl.u32 %v6063_v23, %v4563_v37  ;;  %v4599_v5 = vadd.f32 %v4492_v56, %v2084_v29  ;;  %v4036_v14 = vld [vmem:[#allocation2 + $0x2d8] ss:$24 sps:$4 sm:$0xff]   ;;  %v4047_v56 = vld [vmem:[#allocation2 + $0x2b4] ss:$24 sps:$4 sm:$0xff]  }
 0x1cb   :  { %1840 = vmatpush1.bf16.msra.mxu1 %v4012_v26  ;;  %1922 = vmatpush1.bf16.msra.mxu0 %v4015_v28  ;;  %v4032_v26 = vld [vmem:[#allocation2 + $0x2ac] ss:$24 sps:$4 sm:$0xff]   ;;  %vm2191_vm5 = vc.u32 %v4567_v13, %v4559_v10  ;;  %v2244_v8 = vand.u32 8388607, %v6057_v16 }
 0x1cc   :  { %1841 = vmatprep.subr.bf16.mxu1 %v4020_v25  ;;  %1923 = vmatprep.subr.bf16.mxu0 %v4023_v30  ;;  %v4035_v28 = vld [vmem:[#allocation2 + $0x254] ss:$24 sps:$4 sm:$0xff]   ;;  %v4575_v25 = vshrl.u32 %v2249_v20, 5  ;;  %v2764_v30 = vsel %vm2763_vm4, %v2762_v47, 0  ;;  %v4033_v20 = vld [vmem:[#allocation2 + $0x250] ss:$24 sps:$4 sm:$0xff]   ;;  %v2257_v47 = vshll.u32 %v6067_v55, %v2251_v38  ;;  %v2268_v29 = vor.u32 %v2267_v63, %v2266_v61 }
 0x1cd   :  { %v4039_v38 = vld [vmem:[#allocation2 + $0x280] ss:$24 sps:$4 sm:$0xff]   ;;  %v4053_v61 = vld [vmem:[#allocation2 + $0x2e4] ss:$24 sps:$4 sm:$0xff]  }
 0x1ce   :  { %vm2272_vm6 = vcmp.lt.s32.totalorder %v4575_v25, 4  ;;  %v4607_v22 = vor.u32 %v2258_v48, %v2257_v47  ;;  %vm2269_vm7 = vcmp.lt.s32.totalorder %v4575_v25, 1  ;;  %vm2271_vm8 = vcmp.lt.s32.totalorder %v4575_v25, 3 }
 0x1cf   :  { %1842 = vmatpush1.bf16.msra.mxu1 %v4018_v53  ;;  %1924 = vmatpush1.bf16.msra.mxu0 %v4021_v57  ;;  %v4041_v53 = vld [vmem:[#allocation2 + $0x284] ss:$24 sps:$4 sm:$0xff]   ;;  %v2192_v57 = vadd.s32 1, %v4560_v2  ;;  %vm2270_vm9 = vcmp.lt.s32.totalorder %v4575_v25, 2 }
 0x1d0   :  { %1843 = vmatprep.subr.bf16.mxu1 %v4026_v54  ;;  %1925 = vmatprep.subr.bf16.mxu0 %v4029_v0  ;;  %v2766_v54 = vand.u32 31, %v2764_v30  ;;  %v2265_v0 = vor.u32 %v2264_v33, %v2263_v32 }
 0x1d2   :  { %v4620_v32 = vsub.s32 32, %v2766_v54  ;;  %v2278_v33 = vsel %vm2272_vm6, %v2265_v0, 920167782 }
 0x1d3   :  { %1844 = vmatpush1.bf16.msra.mxu1 %v4024_v19  ;;  %1926 = vmatpush1.bf16.msra.mxu0 %v4027_v21  ;;  %v2189_v19 = vmul.u32 %v4542_v44, %v2173_v12  ;;  %v4605_v21 = vor.u32 %v2255_v43, %v2254_v40  ;;  %v4618_v44 = vrot.slane %v4472_v45, %v4440_v27  ;;  %v2858_v40 = vand.u32 2139095040, %v4599_v5 }
 0x1d4   :  { %1845 = vmatprep.subr.bf16.mxu1 %v4032_v26  ;;  %1927 = vmatprep.subr.bf16.mxu0 %v4035_v28  ;;  %v2193_v26 = vsel %vm2191_vm5, %v2192_v57, %v4560_v2  ;;  %v4613_v28 = vor.u32 %v2261_v59, %v2260_v49  ;;  %v4627_v12 = vrot.slane %v4477_v46, %v4440_v27  ;;  %v4629_v2 = vshrl.u32 %v2764_v30, 5  ;;  %v4050_v30 = vld [vmem:[#allocation2 + $0x33c] ss:$24 sps:$4 sm:$0xff]  }
 0x1d5   :  { %v2245_v43 = vor.u32 8388608, %v2244_v8  ;;  %v4632_v47 = vadd.s32 %v2193_v26, %v2189_v19  ;;  %v2277_v48 = vsel %vm2269_vm7, %v4605_v21, %v4607_v22  ;;  %v2778_v49 = vshll.u32 %v6061_v3, %v2766_v54 }
 0x1d6   :  { %v6071_v57 = vand.u32 2147483647, %v4506_v18  ;;  %v2769_v59 = vshll.u32 %v6069_v52, %v2766_v54  ;;  %v2770_v63 = vshrl.u32 %v6067_v55, %v4620_v32  ;;  %v2772_v8 = vshll.u32 %v6067_v55, %v2766_v54 }
 0x1d7   :  { %1846 = vmatpush1.bf16.msra.mxu1 %v4030_v50  ;;  %1928 = vmatpush1.bf16.msra.mxu0 %v4033_v20  ;;  %v4042_v50 = vld [vmem:[#allocation2 + $0x308] ss:$24 sps:$4 sm:$0xff]   ;;  %v2773_v19 = vshrl.u32 %v6065_v4, %v4620_v32  ;;  %v2782_v26 = vshrl.u32 %v6063_v23, %v4620_v32  ;;  %v2281_v16 = vsel %vm2269_vm7, %v4607_v22, %v4613_v28  ;;  %vm2787_vm10 = vcmp.lt.s32.totalorder %v4629_v2, 4 }
 0x1d8   :  { %1847 = vmatprep.subr.bf16.mxu1 %v4038_v58  ;;  %1929 = vmatprep.subr.bf16.mxu0 %v4041_v53  ;;  %v4045_v20 = vld [vmem:[#allocation2 + $0x2b0] ss:$24 sps:$4 sm:$0xff]   ;;  %v2279_v58 = vsel %vm2271_vm8, %v4613_v28, %v2278_v33  ;;  %v2282_v53 = vsel %vm2272_vm6, %v2268_v29, 1326507024  ;;  %v4051_v33 = vld [vmem:[#allocation2 + $0x2e0] ss:$24 sps:$4 sm:$0xff]   ;;  %v2079_v55 = vmul.f32 %v4618_v44, %v4485_v51 }
 0x1d9   :  { %v4048_v29 = vld [vmem:[#allocation2 + $0x338] ss:$24 sps:$4 sm:$0xff]   ;;  %v2283_v39 = vsel %vm2271_vm8, %v2265_v0, %v2282_v53  ;;  %v2859_v52 = vshrl.u32 %v2858_v40, 23  ;;  %v6107_v0 = vmov 683565275   ;;  %v4681_v53 = vor.u32 %v2770_v63, %v2769_v59 }
 0x1da   :  { %vm2784_vm11 = vcmp.lt.s32.totalorder %v4629_v2, 1  ;;  %vm2786_vm12 = vcmp.lt.s32.totalorder %v4629_v2, 3  ;;  %v4057_v40 = vld [vmem:[#allocation2 + $0x310] ss:$24 sps:$4 sm:$0xff]   ;;  %v4062_v59 = vld [vmem:[#allocation2 + $0x39c] ss:$24 sps:$4 sm:$0xff]   ;;  %v2768_v25 = vshrl.u32 %v6107_v0, %v4620_v32 }
 0x1db   :  { %1848 = vmatpush1.bf16.msra.mxu1 %v4036_v14  ;;  %1930 = vmatpush1.bf16.msra.mxu0 %v4039_v38  ;;  %v2779_v14 = vshrl.u32 %v6059_v17, %v4620_v32  ;;  %v2781_v38 = vshll.u32 %v6059_v17, %v2766_v54  ;;  %v4056_v17 = vld [vmem:[#allocation2 + $0x36c] ss:$24 sps:$4 sm:$0xff]   ;;  %vm2785_vm13 = vcmp.lt.s32.totalorder %v4629_v2, 2  ;;  %v4087_v2 = vld [vmem:[#allocation2 + $0x400] ss:$24 sps:$4 sm:$0xff]  }
 0x1dc   :  { %1860 = vmatprep.subr.bf16.mxu1 %v4044_v24  ;;  %1931 = vmatprep.subr.bf16.mxu0 %v4047_v56  ;;  %v2775_v24 = vshll.u32 %v6065_v4, %v2766_v54  ;;  %v2776_v56 = vshrl.u32 %v6061_v3, %v4620_v32  ;;  %v4668_v3 = vshll.u32 %v2245_v43, 8  ;;  %v4059_v4 = vld [vmem:[#allocation2 + $0x314] ss:$24 sps:$4 sm:$0xff]   ;;  %v4054_v43 = vld [vmem:[#allocation2 + $0x368] ss:$24 sps:$4 sm:$0xff]  }
 0x1dd   :  { %v2780_v54 = vor.u32 %v2779_v14, %v2778_v49  ;;  %v2783_v23 = vor.u32 %v2782_v26, %v2781_v38  ;;  %v2253_v49 = vshrl.u32 %v6107_v0, %v4563_v37  ;;  %v4683_v14 = vor.u32 %v2773_v19, %v2772_v8  ;;  %v4065_v63 = vld [vmem:[#allocation2 + $0x344] ss:$24 sps:$4 sm:$0xff]  }
 0x1de   :  { %1850 = vmatmul.mubr.bf16.vlgmr.msra.gmra.mrb[8].mxu1 %v4450_v11  ;;  %v2195_v38 = vadd.s32 536870912, %v4632_v47  ;;  %v2274_v8 = vsel %vm2272_vm6, %v4613_v28, 2102212464  ;;  %v4713_v28 = vadd.f32 %v4627_v12, %v2079_v55 }
 0x1df   :  { %1861 = vmatpush1.bf16.msra.mxu1 %v4042_v50  ;;  %1892 = vmatprep.mubr.bf16.mxu1 %v4461_v36  ;;  %v2759_v50 = vand.u32 8388607, %v6071_v57  ;;  %v2793_v37 = vsel %vm2787_vm10, %v2780_v54, 920167782 }
 0x1e0   :  { %1932 = vmatpush1.bf16.msra.mxu0 %v4045_v20  ;;  %1862 = vmatprep.subr.bf16.mxu1 %v4050_v30  ;;  %v2280_v20 = vsel %vm2270_vm9, %v2277_v48, %v2279_v58  ;;  %v2284_v30 = vsel %vm2270_vm9, %v2281_v16, %v2283_v39  ;;  %v2797_v58 = vsel %vm2787_vm10, %v2783_v23, 1326507024  ;;  %v4060_v23 = vld [vmem:[#allocation2 + $0x398] ss:$24 sps:$4 sm:$0xff]  }
 0x1e1   :  { %1933 = vmatprep.subr.bf16.mxu0 %v4053_v61  ;;  %v2777_v61 = vor.u32 %v2776_v56, %v2775_v24  ;;  %v4691_v39 = vmul.u32.u64.low %v4668_v3, %v2280_v20  ;;  %v4692_v16 = vmul.u32.u64.high %v4668_v3, %v2280_v20, %v4691_v39  ;;  %v2760_v48 = vor.u32 8388608, %v2759_v50  ;;  %v4068_v50 = vld [vmem:[#allocation2 + $0x3cc] ss:$24 sps:$4 sm:$0xff]  }
 0x1e2   :  { %v2792_v24 = vsel %vm2784_vm11, %v4681_v53, %v4683_v14  ;;  %v3689_v56 = vadd.s32 4294967169, %v2859_v52  ;;  %v4721_v20 = vshrl.u32 %v2195_v38, 30  ;;  %v2275_v52 = vsel %vm2271_vm8, %v4607_v22, %v2274_v8  ;;  %v4069_v22 = vld [vmem:[#allocation2 + $0x370] ss:$24 sps:$4 sm:$0xff]  }
 0x1e3   :  { %1863 = vmatpush1.bf16.msra.mxu1 %v4048_v29  ;;  %v2796_v26 = vsel %vm2784_vm11, %v4683_v14, %v2777_v61  ;;  %v2798_v29 = vsel %vm2786_vm12, %v2780_v54, %v2797_v58  ;;  %v4729_v55 = vshll.u32 %v2760_v48, 8  ;;  %v4071_v54 = vld [vmem:[#allocation2 + $0x374] ss:$24 sps:$4 sm:$0xff]   ;;  %v2343_v38 = vand.u32 2139095040, %v4713_v28 }
 0x1e4   :  { %1934 = vmatpush1.bf16.msra.mxu0 %v4051_v33  ;;  %1864 = vmatprep.subr.bf16.mxu1 %v4056_v17  ;;  %v4701_v19 = vmul.u32.u64.low %v4668_v3, %v2284_v30  ;;  %v4702_v17 = vmul.u32.u64.high %v4668_v3, %v2284_v30, %v4701_v19  ;;  %v4063_v33 = vld [vmem:[#allocation2 + $0x340] ss:$24 sps:$4 sm:$0xff]   ;;  %v2295_v48 = vadd.s32 1, %v4692_v16 }
 0x1e5   :  { %1946 = vmatprep.subr.bf16.mxu0 %v4059_v4  ;;  %v2794_v4 = vsel %vm2786_vm12, %v2777_v61, %v2793_v37  ;;  %v4066_v30 = vld [vmem:[#allocation2 + $0x3c8] ss:$24 sps:$4 sm:$0xff]   ;;  %v4074_v37 = vld [vmem:[#allocation2 + $0x3fc] ss:$24 sps:$4 sm:$0xff]  }
 0x1e6   :  { %vm2294_vm14 = vc.u32 %v4702_v17, %v4691_v39 }
 0x1e7   :  { %1936 = vmatmul.mubr.bf16.vlgmr.msra.gmra.mrb[4].mxu0 %v4450_v11  ;;  %1865 = vmatpush1.bf16.msra.mxu1 %v4054_v43  ;;  %v2273_v11 = vsel %vm2269_vm7, %v2253_v49, %v4605_v21  ;;  %v2799_v43 = vsel %vm2785_vm13, %v2796_v26, %v2798_v29  ;;  %v2865_v21 = vadd.s32 1, %v3689_v56  ;;  %v4075_v26 = vld [vmem:[#allocation2 + $0x3a0] ss:$24 sps:$4 sm:$0xff]   ;;  %v4080_v29 = vld [vmem:[#allocation2 + $0x42c] ss:$24 sps:$4 sm:$0xff]  }
 0x1e8   :  { %1947 = vmatpush1.bf16.msra.mxu0 %v4057_v40  ;;  %1978 = vmatprep.mubr.bf16.mxu0 %v4461_v36  ;;  %v2795_v36 = vsel %vm2785_vm13, %v2792_v24, %v2794_v4  ;;  %v2276_v49 = vsel %vm2270_vm9, %v2273_v11, %v2275_v52  ;;  %v2197_v40 = vshll.u32 %v4721_v20, 30  ;;  %v2789_v24 = vsel %vm2787_vm10, %v2777_v61, 2102212464  ;;  %v4072_v4 = vld [vmem:[#allocation2 + $0x3f8] ss:$24 sps:$4 sm:$0xff]  }
 0x1e9   :  { %1866 = vmatprep.subr.bf16.mxu1 %v4062_v59  ;;  %1948 = vmatprep.subr.bf16.mxu0 %v4065_v63  ;;  %v4741_v58 = vmul.u32.u64.low %v4729_v55, %v2795_v36  ;;  %v4742_v59 = vmul.u32.u64.high %v4729_v55, %v2795_v36, %v4741_v58  ;;  %v4077_v63 = vld [vmem:[#allocation2 + $0x3a4] ss:$24 sps:$4 sm:$0xff]   ;;  %v4750_v8 = vmul.u32.u64.low %v4729_v55, %v2799_v43  ;;  %v4751_v19 = vmul.u32.u64.high %v4729_v55, %v2799_v43, %v4750_v8  ;;  %v4078_v52 = vld [vmem:[#allocation2 + $0x428] ss:$24 sps:$4 sm:$0xff]  }
 0x1ea   :  { %vm2866_vm15 = vcmp.gt.s32.totalorder %v2865_v21, 0  ;;  %v2292_v56 = vmul.u32 %v4668_v3, %v2276_v49  ;;  %v4759_v32 = vsub.s32 %v4632_v47, %v2197_v40  ;;  %v2344_v61 = vshrl.u32 %v2343_v38, 23  ;;  %v4081_v36 = vld [vmem:[#allocation2 + $0x3d0] ss:$24 sps:$4 sm:$0xff]   ;;  %v4086_v43 = vld [vmem:[#allocation2 + $0x45c] ss:$24 sps:$4 sm:$0xff]  }
 0x1eb   :  { %1867 = vmatpush1.bf16.msra.mxu1 %v4060_v23  ;;  %v2062_v23 = vrot.slane %v4472_v45, %v4443_v15  ;;  %v2788_v11 = vsel %vm2784_vm11, %v2768_v25, %v4681_v53  ;;  %v2790_v45 = vsel %vm2786_vm12, %v4683_v14, %v2789_v24  ;;  %v2867_v3 = vsel %vm2866_vm15, %v2865_v21, 0  ;;  %v4089_v38 = vld [vmem:[#allocation2 + $0x404] ss:$24 sps:$4 sm:$0xff]   ;;  %v4084_v49 = vld [vmem:[#allocation2 + $0x458] ss:$24 sps:$4 sm:$0xff]  }
 0x1ec   :  { %1949 = vmatpush1.bf16.msra.mxu0 %v4063_v33  ;;  %1868 = vmatprep.subr.bf16.mxu1 %v4068_v50  ;;  %v2296_v33 = vsel %vm2294_vm14, %v2295_v48, %v4692_v16  ;;  %v4083_v50 = vld [vmem:[#allocation2 + $0x3d4] ss:$24 sps:$4 sm:$0xff]   ;;  %v4770_v47 = vrot.slane %v4477_v46, %v4443_v15  ;;  %v2200_v53 = vsub.s32 0, %v4759_v32  ;;  %v2791_v14 = vsel %vm2785_vm13, %v2788_v11, %v2790_v45  ;;  %v4101_v45 = vld [vmem:[#allocation2 + $0x464] ss:$24 sps:$4 sm:$0xff]  }
 0x1ed   :  { %1950 = vmatprep.subr.bf16.mxu0 %v4071_v54  ;;  %v2080_v16 = vmul.f32 %v2062_v23, %v4485_v51  ;;  %v4773_v54 = vadd.s32 %v2296_v33, %v2292_v56  ;;  %v3669_v21 = vadd.s32 4294967169, %v2344_v61  ;;  %v2869_v46 = vand.u32 31, %v2867_v3  ;;  %v4092_v48 = vld [vmem:[#allocation2 + $0x48c] ss:$24 sps:$4 sm:$0xff]   ;;  %v4093_v33 = vld [vmem:[#allocation2 + $0x430] ss:$24 sps:$4 sm:$0xff]  }
 0x1ee   :  { %vm2809_vm0 = vc.u32 %v4751_v19, %v4741_v58  ;;  %v2807_v40 = vmul.u32 %v4729_v55, %v2791_v14  ;;  %v3662_v25 = vmin.u32 %v2200_v53, %v4759_v32  ;;  %v4095_v24 = vld [vmem:[#allocation2 + $0x434] ss:$24 sps:$4 sm:$0xff]   ;;  %v2086_v61 = vmul.f32 %v2062_v23, %v4499_v62 }
 0x1ef   :  { %1869 = vmatpush1.bf16.msra.mxu1 %v4066_v30  ;;  %v2810_v30 = vadd.s32 1, %v4742_v59  ;;  %v2870_v56 = vsub.s32 32, %v2869_v46  ;;  %v6110_v14 = vmov 2131351028   ;;  %v6112_v23 = vmov 920167782  }
 0x1f0   :  { %1951 = vmatpush1.bf16.msra.mxu0 %v4069_v22  ;;  %1870 = vmatprep.subr.bf16.mxu1 %v4074_v37  ;;  %v4782_v22 = vadd.f32 %v4770_v47, %v2080_v16  ;;  %v2298_v37 = vadd.s32 536870912, %v4773_v54  ;;  %v2202_v11 = vclz %v3662_v25  ;;  %v2872_v16 = vshll.u32 %v6107_v0, %v2869_v46  ;;  %v4104_v25 = vld [vmem:[#allocation2 + $0x4ec] ss:$24 sps:$4 sm:$0xff]  }
 0x1f1   :  { %1952 = vmatprep.subr.bf16.mxu0 %v4077_v63  ;;  %v2085_v63 = vmul.f32 %v4618_v44, %v4499_v62  ;;  %v2811_v8 = vsel %vm2809_vm0, %v2810_v30, %v4742_v59  ;;  %v2876_v30 = vshrl.u32 %v6110_v14, %v2870_v56  ;;  %v2884_v57 = vshll.u32 %v6112_v23, %v2869_v46 }
 0x1f2   :  { %v4792_v55 = vadd.s32 %v2811_v8, %v2807_v40  ;;  %v2446_v44 = vand.u32 2139095040, %v4782_v22  ;;  %v3663_v8 = vadd.s32 4294967294, %v2202_v11  ;;  %v4815_v27 = vadd.f32 %v4770_v47, %v2086_v61  ;;  %v4105_v47 = vld [vmem:[#allocation2 + $0x490] ss:$24 sps:$4 sm:$0xff]   ;;  %v4110_v61 = vld [vmem:[#allocation2 + $0x51c] ss:$24 sps:$4 sm:$0xff]  }
 0x1f3   :  { %1871 = vmatpush1.bf16.msra.mxu1 %v4072_v4  ;;  %v2350_v4 = vadd.s32 1, %v3669_v21  ;;  %v4797_v59 = vadd.f32 %v4627_v12, %v2085_v63  ;;  %v4096_v12 = vld [vmem:[#allocation2 + $0x4b8] ss:$24 sps:$4 sm:$0xff]  }
 0x1f4   :  { %1953 = vmatpush1.bf16.msra.mxu0 %v4075_v26  ;;  %1872 = vmatprep.subr.bf16.mxu1 %v4080_v29  ;;  %v4090_v26 = vld [vmem:[#allocation2 + $0x488] ss:$24 sps:$4 sm:$0xff]   ;;  %v4790_v29 = vshrl.u32 %v2298_v37, 30  ;;  %v4806_v37 = vshrl.u32 %v2867_v3, 5  ;;  %v4107_v3 = vld [vmem:[#allocation2 + $0x494] ss:$24 sps:$4 sm:$0xff]  }
 0x1f5   :  { %1954 = vmatprep.subr.bf16.mxu0 %v4083_v50  ;;  %v4098_v50 = vld [vmem:[#allocation2 + $0x4bc] ss:$24 sps:$4 sm:$0xff]   ;;  %6108 = vst [vmem:[#allocation19_spill] sm:$0xff] %v4797_v59  ;;  %vm2351_vm1 = vcmp.gt.s32.totalorder %v2350_v4, 0  ;;  %v4099_v63 = vld [vmem:[#allocation2 + $0x460] ss:$24 sps:$4 sm:$0xff]  }
 0x1f6   :  { %v2300_v40 = vshll.u32 %v4790_v29, 30  ;;  %v2447_v15 = vshrl.u32 %v2446_v44, 23  ;;  %6114 = vst [vmem:[#allocation20_spill] sm:$0xff] %v4815_v27  ;;  %v2961_v62 = vand.u32 2139095040, %v4797_v59  ;;  %v4821_v9 = vsel %vm2351_vm1, %v2350_v4, 0 }
 0x1f7   :  { %1873 = vmatpush1.bf16.msra.mxu1 %v4078_v52  ;;  %v6113_v52 = vmov 1326507024   ;;  %vm2887_vm2 = vcmp.lt.s32.totalorder %v4806_v37, 1  ;;  %vm2890_vm3 = vcmp.lt.s32.totalorder %v4806_v37, 4  ;;  %vm3664_vm4 = vcmp.lt.s32.totalorder %v3663_v8, 0 }
 0x1f8   :  { %1955 = vmatpush1.bf16.msra.mxu0 %v4081_v36  ;;  %1874 = vmatprep.subr.bf16.mxu1 %v4086_v43  ;;  %v6109_v36 = vmov 2475754826   ;;  %v2871_v4 = vshrl.u32 %v6107_v0, %v2870_v56  ;;  %vm2889_vm5 = vcmp.lt.s32.totalorder %v4806_v37, 3  ;;  %vm2888_vm6 = vcmp.lt.s32.totalorder %v4806_v37, 2 }
 0x1f9   :  { %1956 = vmatprep.subr.bf16.mxu0 %v4089_v38  ;;  %v2873_v43 = vshrl.u32 %v6109_v36, %v2870_v56  ;;  %v2875_v53 = vshll.u32 %v6109_v36, %v2869_v46  ;;  %v6111_v38 = vmov 2102212464   ;;  %v2190_v37 = vadd.s32 %v4559_v10, %v4567_v13  ;;  %v4134_v13 = vld [vmem:[#allocation2 + $0x5dc] ss:$24 sps:$4 sm:$0xff]  }
 0x1fa   :  { %v2881_v21 = vshll.u32 %v6111_v38, %v2869_v46 }
 0x1fb   :  { %1875 = vmatpush1.bf16.msra.mxu1 %v4084_v49  ;;  %v2882_v49 = vshrl.u32 %v6112_v23, %v2870_v56  ;;  %v2874_v11 = vor.u32 %v2873_v43, %v2872_v16  ;;  %v2877_v42 = vor.u32 %v2876_v30, %v2875_v53  ;;  %v4113_v53 = vld [vmem:[#allocation2 + $0x4c4] ss:$24 sps:$4 sm:$0xff]   ;;  %v3673_v30 = vadd.s32 4294967169, %v2447_v15 }
 0x1fc   :  { %1957 = vmatpush1.bf16.msra.mxu0 %v4087_v2  ;;  %1876 = vmatprep.subr.bf16.mxu1 %v4092_v48  ;;  %v2813_v2 = vadd.s32 536870912, %v4792_v55  ;;  %v2878_v48 = vshll.u32 %v6110_v14, %v2869_v46  ;;  %v4102_v46 = vld [vmem:[#allocation2 + $0x4e8] ss:$24 sps:$4 sm:$0xff]   ;;  %v4841_v15 = vand.u32 31, %v4821_v9 }
 0x1fd   :  { %1958 = vmatprep.subr.bf16.mxu0 %v4095_v24  ;;  %v2879_v24 = vshrl.u32 %v6111_v38, %v2870_v56  ;;  %v2883_v41 = vor.u32 %v2882_v49, %v2881_v21 }
 0x1fe   :  { %v4826_v44 = vshrl.u32 %v2813_v2, 30 }
 0x1ff   :  { %1877 = vmatpush1.bf16.msra.mxu1 %v4090_v26  ;;  %v2885_v26 = vshrl.u32 %v6113_v52, %v2870_v56  ;;  %v2880_v16 = vor.u32 %v2879_v24, %v2878_v48  ;;  %v2896_v56 = vsel %vm2890_vm3, %v2883_v41, 920167782  ;;  %v2891_v24 = vsel %vm2887_vm2, %v2871_v4, %v2874_v11 }
 0x200   :  { %1959 = vmatpush1.bf16.msra.mxu0 %v4093_v33  ;;  %1878 = vmatprep.subr.bf16.mxu1 %v4098_v50  ;;  %v6115_v33 = vand.u32 2147483647, %v4599_v5  ;;  %v2815_v48 = vshll.u32 %v4826_v44, 30  ;;  %v2962_v4 = vshrl.u32 %v2961_v62, 23 }
 0x201   :  { %1960 = vmatprep.subr.bf16.mxu0 %v4101_v45  ;;  %v4824_v45 = vsub.s32 %v4773_v54, %v2300_v40  ;;  %v2886_v43 = vor.u32 %v2885_v26, %v2884_v57  ;;  %v3064_v54 = vand.u32 2139095040, %v4815_v27  ;;  %v2892_v49 = vsel %vm2890_vm3, %v2880_v16, 2102212464  ;;  %v4108_v57 = vld [vmem:[#allocation2 + $0x518] ss:$24 sps:$4 sm:$0xff]  }
 0x202   :  { %v2862_v50 = vand.u32 8388607, %v6115_v33  ;;  %v4844_v40 = vsel %vm3664_vm4, 0, %v3663_v8  ;;  %v2897_v26 = vsel %vm2889_vm5, %v2880_v16, %v2896_v56  ;;  %v4119_v33 = vld [vmem:[#allocation2 + $0x4f4] ss:$24 sps:$4 sm:$0xff]   ;;  %vm2136_vm4 = vcmp.lt.s32.totalorder %v4496_v60, 0 }
 0x203   :  { %1879 = vmatpush1.bf16.msra.mxu1 %v4096_v12  ;;  %v2895_v12 = vsel %vm2887_vm2, %v2874_v11, %v2877_v42  ;;  %v2303_v2 = vsub.s32 0, %v4824_v45  ;;  %v2900_v8 = vsel %vm2890_vm3, %v2886_v43, 1326507024  ;;  %v4114_v56 = vld [vmem:[#allocation2 + $0x548] ss:$24 sps:$4 sm:$0xff]   ;;  %v2210_v43 = vsub.s32 4294967266, %v4844_v40 }
 0x204   :  { %1961 = vmatpush1.bf16.msra.mxu0 %v4099_v63  ;;  %1880 = vmatprep.subr.bf16.mxu1 %v4104_v25  ;;  %v2863_v21 = vor.u32 8388608, %v2862_v50  ;;  %v4111_v63 = vld [vmem:[#allocation2 + $0x4c0] ss:$24 sps:$4 sm:$0xff]   ;;  %v4116_v25 = vld [vmem:[#allocation2 + $0x54c] ss:$24 sps:$4 sm:$0xff]   ;;  %v2893_v50 = vsel %vm2889_vm5, %v2877_v42, %v2892_v49  ;;  %v2901_v11 = vsel %vm2889_vm5, %v2883_v41, %v2900_v8 }
 0x205   :  { %1962 = vmatprep.subr.bf16.mxu0 %v4107_v3  ;;  %v2899_v3 = vsel %vm2887_vm2, %v2877_v42, %v2880_v16  ;;  %v4122_v41 = vld [vmem:[#allocation2 + $0x57c] ss:$24 sps:$4 sm:$0xff]   ;;  %v2894_v62 = vsel %vm2888_vm6, %v2891_v24, %v2893_v50  ;;  %v2206_v24 = vsub.s32 32, %v4844_v40  ;;  %v4891_v8 = vadd.s32 127, %v2210_v43 }
 0x206   :  { %v2902_v16 = vsel %vm2888_vm6, %v2899_v3, %v2901_v11  ;;  %v4883_v3 = vshrl.u32 %v3064_v54, 23  ;;  %v2357_v11 = vshll.u32 %v6107_v0, %v4841_v15 }
 0x207   :  { %1881 = vmatpush1.bf16.msra.mxu1 %v4102_v46  ;;  %v2898_v46 = vsel %vm2888_vm6, %v2895_v12, %v2897_v26  ;;  %v4117_v12 = vld [vmem:[#allocation2 + $0x4f0] ss:$24 sps:$4 sm:$0xff]   ;;  %v4881_v26 = vsub.s32 32, %v4841_v15 }
 0x208   :  { %1963 = vmatpush1.bf16.msra.mxu0 %v4105_v47  ;;  %1882 = vmatprep.subr.bf16.mxu1 %v4110_v61  ;;  %v2903_v47 = vshll.u32 %v2863_v21, 8  ;;  %v2453_v61 = vadd.s32 1, %v3673_v30  ;;  %v4872_v30 = vsub.s32 %v4792_v55, %v2815_v48  ;;  %v3693_v55 = vadd.s32 4294967169, %v2962_v4  ;;  %v4120_v48 = vld [vmem:[#allocation2 + $0x578] ss:$24 sps:$4 sm:$0xff]  }
 0x209   :  { %1964 = vmatprep.subr.bf16.mxu0 %v4113_v53  ;;  %v4866_v53 = vmin.u32 %v2303_v2, %v4824_v45  ;;  %v4125_v2 = vld [vmem:[#allocation2 + $0x524] ss:$24 sps:$4 sm:$0xff]   ;;  %v2360_v4 = vshll.u32 %v6109_v36, %v4841_v15  ;;  %v2361_v43 = vshrl.u32 %v6110_v14, %v4881_v26 }
 0x20a   :  { %v4868_v42 = vmul.u32.u64.low %v2903_v47, %v2902_v16  ;;  %v4869_v49 = vmul.u32.u64.high %v2903_v47, %v2902_v16, %v4868_v42  ;;  %vm2454_vm7 = vcmp.gt.s32.totalorder %v2453_v61, 0  ;;  %v2818_v50 = vsub.s32 0, %v4872_v30 }
 0x20b   :  { %1883 = vmatpush1.bf16.msra.mxu1 %v4108_v57  ;;  %v4876_v21 = vmul.u32.u64.low %v2903_v47, %v2898_v46  ;;  %v4877_v57 = vmul.u32.u64.high %v2903_v47, %v2898_v46, %v4876_v21  ;;  %v2305_v54 = vclz %v4866_v53  ;;  %v4131_v46 = vld [vmem:[#allocation2 + $0x554] ss:$24 sps:$4 sm:$0xff]   ;;  %v2366_v16 = vshll.u32 %v6111_v38, %v4841_v15 }
 0x20c   :  { %1965 = vmatpush1.bf16.msra.mxu0 %v4111_v63  ;;  %1884 = vmatprep.subr.bf16.mxu1 %v4116_v25  ;;  %v4886_v63 = vshrl.u32 %v4821_v9, 5  ;;  %v4123_v25 = vld [vmem:[#allocation2 + $0x520] ss:$24 sps:$4 sm:$0xff]   ;;  %v4128_v9 = vld [vmem:[#allocation2 + $0x5ac] ss:$24 sps:$4 sm:$0xff]   ;;  %v2363_v53 = vshll.u32 %v6110_v14, %v4841_v15  ;;  %v2367_v42 = vshrl.u32 %v6112_v23, %v4881_v26  ;;  %v2455_v34 = vsel %vm2454_vm7, %v2453_v61, 0 }
 0x20d   :  { %1966 = vmatprep.subr.bf16.mxu0 %v4119_v33  ;;  %v2910_v33 = vmul.u32 %v2903_v47, %v2894_v62  ;;  %vm2912_vm8 = vc.u32 %v4869_v49, %v4876_v21  ;;  %v2913_v10 = vadd.s32 1, %v4877_v57  ;;  %v2358_v47 = vshrl.u32 %v6109_v36, %v4881_v26 }
 0x20e   :  { %v2364_v62 = vshrl.u32 %v6111_v38, %v4881_v26  ;;  %v2968_v31 = vadd.s32 1, %v3693_v55  ;;  %v2368_v51 = vor.u32 %v2367_v42, %v2366_v16  ;;  %vm2375_vm9 = vcmp.lt.s32.totalorder %v4886_v63, 4  ;;  %v4132_v55 = vld [vmem:[#allocation2 + $0x5d8] ss:$24 sps:$4 sm:$0xff]  }
 0x20f   :  { %1885 = vmatpush1.bf16.msra.mxu1 %v4114_v56  ;;  %v2914_v56 = vsel %vm2912_vm8, %v2913_v10, %v4877_v57  ;;  %v2370_v57 = vshrl.u32 %v6113_v52, %v4881_v26  ;;  %v4129_v10 = vld [vmem:[#allocation2 + $0x550] ss:$24 sps:$4 sm:$0xff]   ;;  %v3667_v7 = vadd.s32 4294967294, %v2305_v54  ;;  %v4932_v16 = vor.u32 %v2361_v43, %v2360_v4 }
 0x210   :  { %1967 = vmatpush1.bf16.msra.mxu0 %v4117_v12  ;;  %1886 = vmatprep.subr.bf16.mxu1 %v4122_v41  ;;  %v4126_v12 = vld [vmem:[#allocation2 + $0x5a8] ss:$24 sps:$4 sm:$0xff]   ;;  %v2915_v41 = vadd.s32 %v2914_v56, %v2910_v33  ;;  %v4137_v33 = vld [vmem:[#allocation2 + $0x584] ss:$24 sps:$4 sm:$0xff]   ;;  %v2207_v56 = vshll.u32 %v4759_v32, %v4844_v40  ;;  %v2365_v32 = vor.u32 %v2364_v62, %v2363_v53  ;;  %vm2372_vm10 = vcmp.lt.s32.totalorder %v4886_v63, 1 }
 0x211   :  { %1968 = vmatprep.subr.bf16.mxu0 %v4125_v2  ;;  %v2369_v2 = vshll.u32 %v6112_v23, %v4841_v15  ;;  %v6116_v15 = vand.u32 2147483647, %v4713_v28  ;;  %v4135_v40 = vld [vmem:[#allocation2 + $0x580] ss:$24 sps:$4 sm:$0xff]   ;;  %vm2374_vm11 = vcmp.lt.s32.totalorder %v4886_v63, 3  ;;  %v3697_v54 = vadd.s32 4294967169, %v4883_v3 }
 0x212   :  { %v2916_v6 = vadd.s32 536870912, %v2915_v41  ;;  %v2457_v4 = vand.u32 31, %v2455_v34  ;;  %vm2373_vm12 = vcmp.lt.s32.totalorder %v4886_v63, 2  ;;  %vm2969_vm13 = vcmp.gt.s32.totalorder %v2968_v31, 0 }
 0x213   :  { %1887 = vmatpush1.bf16.msra.mxu1 %v4120_v48  ;;  %v3686_v48 = vmin.u32 %v2818_v50, %v4872_v30  ;;  %v2347_v27 = vand.u32 8388607, %v6116_v15  ;;  %v2371_v61 = vor.u32 %v2370_v57, %v2369_v2  ;;  %vm3668_vm14 = vcmp.lt.s32.totalorder %v3667_v7, 0 }
 0x214   :  { %1969 = vmatpush1.bf16.msra.mxu0 %v4123_v25  ;;  %1888 = vmatprep.subr.bf16.mxu1 %v4128_v9  ;;  %v2208_v25 = vshrl.u32 %v2190_v37, %v2206_v24  ;;  %v2212_v9 = vshll.u32 %v4891_v8, 23  ;;  %v4928_v50 = vshrl.u32 %v2916_v6, 30  ;;  %v2381_v37 = vsel %vm2375_vm9, %v2368_v51, 920167782  ;;  %v4140_v24 = vld [vmem:[#allocation2 + $0x5b4] ss:$24 sps:$4 sm:$0xff]  }
 0x215   :  { %1970 = vmatprep.subr.bf16.mxu0 %v4131_v46  ;;  %v4930_v46 = vor.u32 %v2358_v47, %v2357_v11  ;;  %v2820_v42 = vclz %v3686_v48  ;;  %v2348_v8 = vor.u32 8388608, %v2347_v27  ;;  %v2382_v53 = vsel %vm2374_vm11, %v2365_v32, %v2381_v37  ;;  %v4138_v27 = vld [vmem:[#allocation2 + $0x5b0] ss:$24 sps:$4 sm:$0xff]  }
 0x216   :  { %v2918_v6 = vshll.u32 %v4928_v50, 30  ;;  %v2209_v11 = vor.u32 %v2208_v25, %v2207_v56  ;;  %v2213_v47 = vor.u32 4788187, %v2212_v9  ;;  %v2384_v2 = vsel %vm2372_vm10, %v4932_v16, %v2365_v32 }
 0x217   :  { %1889 = vmatpush1.bf16.msra.mxu1 %v4126_v12  ;;  %v2380_v43 = vsel %vm2372_vm10, %v4930_v46, %v4932_v16  ;;  %v3687_v3 = vadd.s32 4294967294, %v2820_v42  ;;  %v4143_v12 = vld [vmem:[#allocation2 + $0x5e4] ss:$24 sps:$4 sm:$0xff]   ;;  %v4961_v15 = vshrl.u32 %v2455_v34, 5  ;;  %v4965_v25 = vsel %vm2969_vm13, %v2968_v31, 0 }
 0x218   :  { %1971 = vmatpush1.bf16.msra.mxu0 %v4129_v10  ;;  %1890 = vmatprep.subr.bf16.mxu1 %v4134_v13  ;;  %v2385_v13 = vsel %vm2375_vm9, %v2371_v61, 1326507024  ;;  %v4949_v62 = vsub.s32 %v2915_v41, %v2918_v6  ;;  %v4956_v10 = vshll.u32 %v2348_v8, 8  ;;  %v2214_v48 = vand.u32 2147483647, %v2213_v47 }
 0x219   :  { %1972 = vmatprep.subr.bf16.mxu0 %v4137_v33  ;;  %v2386_v57 = vsel %vm2374_vm11, %v2368_v51, %v2385_v13  ;;  %v2216_v33 = vcvt.s32.f32 %v2209_v11  ;;  %v2383_v56 = vsel %vm2373_vm12, %v2380_v43, %v2382_v53  ;;  %v4963_v41 = vsub.s32 32, %v2457_v4  ;;  %v4141_v61 = vld [vmem:[#allocation2 + $0x5e0] ss:$24 sps:$4 sm:$0xff]  }
 0x21a   :  { %v4967_v9 = vadd.s32 1, %v3697_v54  ;;  %v2308_v51 = vsel %vm3668_vm14, 0, %v3667_v7  ;;  %vm3688_vm15 = vcmp.lt.s32.totalorder %v3687_v3, 0  ;;  %v2921_v34 = vsub.s32 0, %v4949_v62 }
 0x21b   :  { %1891 = vmatpush1.bf16.msra.mxu1 %v4132_v55  ;;  %v2356_v55 = vshrl.u32 %v6107_v0, %v4881_v26  ;;  %v2377_v31 = vsel %vm2375_vm9, %v2365_v32, 2102212464  ;;  %v4978_v42 = vmul.u32.u64.low %v4956_v10, %v2383_v56  ;;  %v4979_v37 = vmul.u32.u64.high %v4956_v10, %v2383_v56, %v4978_v42 }
 0x21c   :  { %1973 = vmatpush1.bf16.msra.mxu0 %v4135_v40  ;;  %v2387_v40 = vsel %vm2373_vm12, %v2384_v2, %v2386_v57  ;;  %v4983_v7 = vand.u32 31, %v4965_v25  ;;  %v2293_v26 = vadd.s32 %v4691_v39, %v4702_v17  ;;  %v2808_v6 = vadd.s32 %v4741_v58, %v4751_v19 }
 0x21d   :  { %1974 = vmatprep.subr.bf16.mxu0 %v4140_v24  ;;  %v4985_v24 = vmul.f32 %v2216_v33, %v2214_v48  ;;  %v2309_v8 = vsub.s32 32, %v2308_v51  ;;  %v2313_v54 = vsub.s32 4294967266, %v2308_v51  ;;  %v2310_v47 = vshll.u32 %v4824_v45, %v2308_v51 }
 0x21e   :  { %1893 = vmatmul.mubr.bf16.vlgmr.msra.gmra.mrb[8].mxu1 %v4459_v35  ;;  %v4992_v32 = vmul.u32.u64.low %v4956_v10, %v2387_v40  ;;  %v4993_v11 = vmul.u32.u64.high %v4956_v10, %v2387_v40, %v4992_v32  ;;  %v4997_v13 = vsel %vm3688_vm15, 0, %v3687_v3  ;;  %v2376_v43 = vsel %vm2372_vm10, %v2356_v55, %v4930_v46 }
 0x21f   :  { %v2378_v39 = vsel %vm2374_vm11, %v4932_v16, %v2377_v31  ;;  %v3690_v17 = vmin.u32 %v2921_v34, %v4949_v62  ;;  %v6086_v58 = vand.u32 2147483647, %v4782_v22  ;;  %v2469_v19 = vshll.u32 %v6111_v38, %v2457_v4 }
 0x220   :  { %1975 = vmatpush1.bf16.msra.mxu0 %v4138_v27  ;;  %v2470_v45 = vshrl.u32 %v6112_v23, %v4963_v41  ;;  %v2460_v53 = vshll.u32 %v6107_v0, %v2457_v4  ;;  %v2461_v27 = vshrl.u32 %v6109_v36, %v4963_v41  ;;  %v2463_v46 = vshll.u32 %v6109_v36, %v2457_v4 }
 0x221   :  { %1976 = vmatprep.subr.bf16.mxu0 %v4143_v12  ;;  %v2464_v3 = vshrl.u32 %v6110_v14, %v4963_v41  ;;  %v2218_v16 = vxor.u32 2147483648, %v4985_v24  ;;  %v2314_v12 = vadd.s32 127, %v2313_v54  ;;  %v2466_v2 = vshll.u32 %v6110_v14, %v2457_v4 }
 0x222   :  { %v2467_v57 = vshrl.u32 %v6111_v38, %v4963_v41  ;;  %v2311_v48 = vshrl.u32 %v2293_v26, %v2309_v8  ;;  %v2828_v33 = vsub.s32 4294967266, %v4997_v13  ;;  %v2472_v56 = vshll.u32 %v6112_v23, %v2457_v4 }
 0x223   :  { %v2379_v51 = vsel %vm2373_vm12, %v2376_v43, %v2378_v39  ;;  %v2450_v55 = vand.u32 8388607, %v6086_v58  ;;  %v2471_v40 = vor.u32 %v2470_v45, %v2469_v19  ;;  %vm3072_vm0 = vcmp.gt.s32.totalorder %v4967_v9, 0 }
 0x224   :  { %1977 = vmatpush1.bf16.msra.mxu0 %v4141_v61  ;;  %v2473_v61 = vshrl.u32 %v6113_v52, %v4963_v41  ;;  %v2923_v34 = vclz %v3690_v17  ;;  %v2462_v31 = vor.u32 %v2461_v27, %v2460_v53  ;;  %v2465_v26 = vor.u32 %v2464_v3, %v2463_v46 }
 0x225   :  { %vm2478_vm1 = vcmp.lt.s32.totalorder %v4961_v15, 4  ;;  %v2315_v4 = vshll.u32 %v2314_v12, 23  ;;  %vm2397_vm2 = vc.u32 %v4993_v11, %v4978_v42  ;;  %v2468_v8 = vor.u32 %v2467_v57, %v2466_v2 }
 0x226   :  { %vm2475_vm3 = vcmp.lt.s32.totalorder %v4961_v15, 1  ;;  %v2824_v63 = vsub.s32 32, %v4997_v13  ;;  %v2829_v54 = vadd.s32 127, %v2828_v33  ;;  %v2474_v32 = vor.u32 %v2473_v61, %v2472_v56 }
 0x227   :  { %1979 = vmatmul.mubr.bf16.vlgmr.msra.gmra.mrb[4].mxu0 %v4459_v35  ;;  %v2398_v35 = vadd.s32 1, %v4979_v37  ;;  %vm2477_vm5 = vcmp.lt.s32.totalorder %v4961_v15, 3  ;;  %v2312_v43 = vor.u32 %v2311_v48, %v2310_v47  ;;  %v2395_v39 = vmul.u32 %v4956_v10, %v2379_v51 }
 0x228   :  { %v2451_v17 = vor.u32 8388608, %v2450_v55  ;;  %v2484_v19 = vsel %vm2478_vm1, %v2471_v40, 920167782  ;;  %v3691_v45 = vadd.s32 4294967294, %v2923_v34  ;;  %vm2476_vm6 = vcmp.lt.s32.totalorder %v4961_v15, 2 }
 0x229   :  { %v2399_v53 = vsel %vm2397_vm2, %v2398_v35, %v4979_v37  ;;  %v2483_v27 = vsel %vm2475_vm3, %v2462_v31, %v2465_v26  ;;  %v2220_v46 = vsub.s32 4, %v4721_v20  ;;  %v2316_v3 = vor.u32 4788187, %v2315_v4 }
 0x22a   :  { %v2825_v47 = vshll.u32 %v4872_v30, %v4997_v13  ;;  %v2485_v10 = vsel %vm2477_vm5, %v2468_v8, %v2484_v19  ;;  %v2826_v12 = vshrl.u32 %v2808_v6, %v2824_v63  ;;  %v2830_v2 = vshll.u32 %v2829_v54, 23 }
 0x22b   :  { %v2487_v57 = vsel %vm2475_vm3, %v2465_v26, %v2468_v8  ;;  %v2488_v37 = vsel %vm2478_vm1, %v2474_v32, 1326507024  ;;  %v5054_v48 = vadd.s32 %v2399_v53, %v2395_v39  ;;  %v2486_v33 = vsel %vm2476_vm6, %v2483_v27, %v2485_v10 }
 0x22c   :  { %v2489_v56 = vsel %vm2477_vm5, %v2471_v40, %v2488_v37  ;;  %v2491_v30 = vshll.u32 %v2451_v17, 8  ;;  %v2319_v13 = vcvt.s32.f32 %v2312_v43  ;;  %vm3692_vm7 = vcmp.lt.s32.totalorder %v3691_v45, 0 }
 0x22d   :  { %v2459_v6 = vshrl.u32 %v6107_v0, %v4963_v41  ;;  %v2490_v61 = vsel %vm2476_vm6, %v2487_v57, %v2489_v56  ;;  %v2317_v51 = vand.u32 2147483647, %v2316_v3  ;;  %v2480_v35 = vsel %vm2478_vm1, %v2468_v8, 2102212464 }
 0x22e   :  { %v5066_v55 = vmul.u32.u64.low %v2491_v30, %v2490_v61  ;;  %v5067_v34 = vmul.u32.u64.high %v2491_v30, %v2490_v61, %v5066_v55  ;;  %v2827_v4 = vor.u32 %v2826_v12, %v2825_v47  ;;  %v2831_v63 = vor.u32 4788187, %v2830_v2 }
 0x22f   :  { %v5069_v54 = vmul.u32.u64.low %v2491_v30, %v2486_v33  ;;  %v5070_v40 = vmul.u32.u64.high %v2491_v30, %v2486_v33, %v5069_v54  ;;  %v5074_v32 = vshrl.u32 %v4965_v25, 5  ;;  %v5079_v41 = vsel %vm3072_vm0, %v4967_v9, 0 }
 0x230   :  { %v2926_v43 = vsel %vm3692_vm7, 0, %v3691_v45  ;;  %v2401_v8 = vadd.s32 536870912, %v5054_v48  ;;  %v5083_v39 = vsub.s32 32, %v4983_v7  ;;  %v6117_v17 = vand.u32 2147483647, %v4496_v60 }
 0x231   :  { %v2479_v25 = vsel %vm2475_vm3, %v2459_v6, %v2462_v31  ;;  %v2481_v53 = vsel %vm2477_vm5, %v2465_v26, %v2480_v35  ;;  %v2219_v9 = vsel %vm2136_vm4, %v2218_v16, %v4985_v24  ;;  %v5103_v45 = vsel %vm2136_vm4, %v2220_v46, %v4721_v20 }
 0x232   :  { %vm5087_vm8 = vcmp.le.f32.partialorder %v6117_v17, 0.7853982  ;;  %v5105_v27 = vmul.f32 %v2319_v13, %v2317_v51  ;;  %v2323_v3 = vsub.s32 4, %v4790_v29  ;;  %v2832_v47 = vand.u32 2147483647, %v2831_v63 }
 0x233   :  { %v2834_v31 = vcvt.s32.f32 %v2827_v4  ;;  %v2911_v26 = vadd.s32 %v4876_v21, %v4869_v49  ;;  %v2931_v10 = vsub.s32 4294967266, %v2926_v43  ;;  %v2927_v12 = vsub.s32 32, %v2926_v43 }
 0x234   :  { %v5110_v2 = vshrl.u32 %v2401_v8, 30  ;;  %v2482_v24 = vsel %vm2476_vm6, %v2479_v25, %v2481_v53  ;;  %v2501_v16 = vadd.s32 1, %v5070_v40  ;;  %vm2500_vm9 = vc.u32 %v5067_v34, %v5069_v54 }
 0x235   :  { %v6085_v20 = vand.u32 2147483647, %v4797_v59  ;;  %v2975_v46 = vshll.u32 %v6107_v0, %v4983_v7  ;;  %v2976_v49 = vshrl.u32 %v6109_v36, %v5083_v39  ;;  %v2978_v21 = vshll.u32 %v6109_v36, %v4983_v7 }
 0x236   :  { %v2979_v15 = vshrl.u32 %v6110_v14, %v5083_v39  ;;  %v2981_v57 = vshll.u32 %v6110_v14, %v4983_v7  ;;  %v2982_v37 = vshrl.u32 %v6111_v38, %v5083_v39  ;;  %vm2239_vm10 = vcmp.lt.s32.totalorder %v4502_v1, 0 }
 0x237   :  { %v2932_v33 = vadd.s32 127, %v2931_v10  ;;  %v2498_v56 = vmul.u32 %v2491_v30, %v2482_v24  ;;  %v2984_v13 = vshll.u32 %v6111_v38, %v4983_v7  ;;  %v2985_v6 = vshrl.u32 %v6112_v23, %v5083_v39 }
 0x238   :  { %v2928_v61 = vshll.u32 %v4949_v62, %v2926_v43  ;;  %v2929_v51 = vshrl.u32 %v2911_v26, %v2927_v12  ;;  %v2403_v35 = vshll.u32 %v5110_v2, 30  ;;  %v2502_v55 = vsel %vm2500_vm9, %v2501_v16, %v5070_v40 }
 0x239   :  { %v2965_v4 = vand.u32 8388607, %v6085_v20  ;;  %v2986_v30 = vor.u32 %v2985_v6, %v2984_v13  ;;  %v2987_v63 = vshll.u32 %v6112_v23, %v4983_v7  ;;  %v2988_v8 = vshrl.u32 %v6113_v52, %v5083_v39 }
 0x23a   :  { %v2977_v17 = vor.u32 %v2976_v49, %v2975_v46  ;;  %v2980_v62 = vor.u32 %v2979_v15, %v2978_v21  ;;  %v2983_v43 = vor.u32 %v2982_v37, %v2981_v57  ;;  %vm2993_vm11 = vcmp.lt.s32.totalorder %v5074_v32, 4 }
 0x23b   :  { %v2933_v25 = vshll.u32 %v2932_v33, 23  ;;  %v5148_v53 = vadd.s32 %v2502_v55, %v2498_v56  ;;  %vm2990_vm12 = vcmp.lt.s32.totalorder %v5074_v32, 1  ;;  %vm2992_vm13 = vcmp.lt.s32.totalorder %v5074_v32, 3 }
 0x23c   :  { %v2222_v40 = vsel %vm5087_vm8, %v4496_v60, %v2219_v9  ;;  %v6120_v7 = vand.u32 2147483647, %v4502_v1  ;;  %v2321_v10 = vxor.u32 2147483648, %v5105_v27  ;;  %v2838_v12 = vsub.s32 4, %v4826_v44 }
 0x23d   :  { %v2999_v24 = vsel %vm2993_vm11, %v2986_v30, 920167782  ;;  %v2835_v16 = vmul.f32 %v2834_v31, %v2832_v47  ;;  %v5166_v46 = vsub.s32 %v5054_v48, %v2403_v35  ;;  %v2966_v49 = vor.u32 8388608, %v2965_v4 }
 0x23e   :  { %vm5157_vm14 = vcmp.le.f32.partialorder %v6120_v7, 0.7853982  ;;  %v2989_v21 = vor.u32 %v2988_v8, %v2987_v63  ;;  %v2930_v9 = vor.u32 %v2929_v51, %v2928_v61  ;;  %vm2991_vm15 = vcmp.lt.s32.totalorder %v5074_v32, 2 }
 0x23f   :  { %v2998_v15 = vsel %vm2990_vm12, %v2977_v17, %v2980_v62  ;;  %v3000_v57 = vsel %vm2992_vm13, %v2983_v43, %v2999_v24  ;;  %4160 = vcosq.f32 %v2222_v40  ;;  %vm2754_vm0 = vcmp.lt.s32.totalorder %v4506_v18, 0  ;;  %v5232_v24 = vld [vmem:[%s6055_s4 + $0x1] ss:$4 sm:$0x3f] }
 0x240   :  { %v2934_v37 = vor.u32 4788187, %v2933_v25  ;;  %v2504_v47 = vadd.s32 536870912, %v5148_v53  ;;  %v2223_v48 = vsel %vm5087_vm8, 0, %v5103_v45  ;;  %4162 = vsinq.f32 %v2222_v40 }
 0x241   :  { %v2324_v31 = vsel %vm2239_vm10, %v2323_v3, %v4790_v29  ;;  %v2839_v33 = vsel %vm2754_vm0, %v2838_v12, %v4826_v44  ;;  %v3001_v56 = vsel %vm2991_vm15, %v2998_v15, %v3000_v57  ;;  %v3002_v13 = vsel %vm2990_vm12, %v2980_v62, %v2983_v43 }
 0x242   :  { %v3003_v6 = vsel %vm2993_vm11, %v2989_v21, 1326507024  ;;  %v5190_v19 = vshll.u32 %v2966_v49, 8  ;;  %v2322_v45 = vsel %vm2239_vm10, %v2321_v10, %v5105_v27  ;;  %v2836_v29 = vxor.u32 2147483648, %v2835_v16 }
 0x243   :  { %v2937_v3 = vcvt.s32.f32 %v2930_v9  ;;  %v2406_v61 = vsub.s32 0, %v5166_v46  ;;  %v2935_v44 = vand.u32 2147483647, %v2934_v37  ;;  %v5196_v51 = vshrl.u32 %v2504_v47, 30 }
 0x244   :  { %v2974_v35 = vshrl.u32 %v6107_v0, %v5083_v39  ;;  %v3004_v55 = vsel %vm2992_vm13, %v2986_v30, %v3003_v6  ;;  %v2995_v4 = vsel %vm2993_vm11, %v2983_v43, 2102212464  ;;  %v3075_v25 = vand.u32 31, %v5079_v41 }
 0x245   :  { %v3005_v63 = vsel %vm2991_vm15, %v3002_v13, %v3004_v55  ;;  %v5207_v27 = vmul.u32.u64.low %v5190_v19, %v3001_v56  ;;  %v5208_v8 = vmul.u32.u64.high %v5190_v19, %v3001_v56, %v5207_v27  ;;  %v5212_v40 = vand.u32 3, %v2223_v48 }
 0x246   :  { %v5215_v39 = vmul.u32.u64.low %v5190_v19, %v3005_v63  ;;  %v5216_v7 = vmul.u32.u64.high %v5190_v19, %v3005_v63, %v5215_v39  ;;  %v5219_v30 = vshrl.u32 %v5079_v41, 5  ;;  %v2326_v43 = vsel %vm5157_vm14, 0, %v2324_v31 }
 0x247   :  { %v6123_v10 = vand.u32 2147483647, %v4506_v18  ;;  %v2325_v49 = vsel %vm5157_vm14, %v4502_v1, %v2322_v45  ;;  %v2994_v21 = vsel %vm2990_vm12, %v2974_v35, %v2977_v17  ;;  %v2996_v9 = vsel %vm2992_vm13, %v2980_v62, %v2995_v4  ;;  %v6130_v35 = vld [vmem:[#allocation20_spill] sm:$0xff] }
 0x248   :  { %v2837_v15 = vsel %vm2754_vm0, %v2836_v29, %v2835_v16  ;;  %v2938_v57 = vmul.f32 %v2937_v3, %v2935_v44  ;;  %v3670_v37 = vmin.u32 %v2406_v61, %v5166_v46  ;;  %v2506_v47 = vshll.u32 %v5196_v51, 30  ;;  %v6129_v16 = vld [vmem:[#allocation9_spill] sm:$0xff] }
 0x249   :  { %vm5225_vm1 = vcmp.le.f32.partialorder %v6123_v10, 0.7853982  ;;  %v5247_v48 = vpop.eup %4160  ;;  %v5249_v26 = vsub.s32 32, %v3075_v25  ;;  %vm2232_vm2 = vcmp.eq.s32.totalorder %v5212_v40, 2  ;;  %v6126_v31 = vand.u32 2147483647, %v4599_v5 }
 0x24a   :  { %v2841_v41 = vsel %vm5225_vm1, 0, %v2839_v33  ;;  %vm2857_vm4 = vcmp.lt.s32.totalorder %v4599_v5, 0  ;;  %v5259_v62 = vpop.eup %4162  ;;  %v5263_v33 = vrot.slane %v5232_v24, %v6129_v16  ;;  %v5265_v56 = vand.u32 3, %v2326_v43 }
 0x24b   :  { %vm5254_vm3 = vcmp.le.f32.partialorder %v6126_v31, 0.7853982  ;;  %v2997_v13 = vsel %vm2991_vm15, %v2994_v21, %v2996_v9  ;;  %v3016_v6 = vadd.s32 1, %v5208_v8  ;;  %4164 = vcosq.f32 %v2325_v49 }
 0x24c   :  { %v2840_v45 = vsel %vm5225_vm1, %v4506_v18, %v2837_v15  ;;  %v5273_v29 = vand.u32 3, %v2841_v41  ;;  %vm3015_vm5 = vc.u32 %v5216_v7, %v5207_v27  ;;  %v2939_v3 = vxor.u32 2147483648, %v2938_v57 }
 0x24d   :  { %v2408_v61 = vclz %v3670_v37  ;;  %v5278_v44 = vsub.s32 %v5148_v53, %v2506_v47  ;;  %v6084_v32 = vand.u32 2147483647, %v6130_v35  ;;  %v3013_v55 = vmul.u32 %v5190_v19, %v2997_v13 }
 0x24e   :  { %v3078_v4 = vshll.u32 %v6107_v0, %v3075_v25  ;;  %v3079_v63 = vshrl.u32 %v6109_v36, %v5249_v26  ;;  %v3081_v39 = vshll.u32 %v6109_v36, %v3075_v25  ;;  %v3017_v43 = vsel %vm3015_vm5, %v3016_v6, %v5208_v8 }
 0x24f   :  { %v3082_v10 = vshrl.u32 %v6110_v14, %v5249_v26  ;;  %v3087_v12 = vshll.u32 %v6111_v38, %v3075_v25  ;;  %v3088_v53 = vshrl.u32 %v6112_v23, %v5249_v26  ;;  %v2233_v41 = vxor.u32 2147483648, %v5247_v48 }
 0x250   :  { %4166 = vsinq.f32 %v2325_v49  ;;  %v3084_v19 = vshll.u32 %v6110_v14, %v3075_v25  ;;  %v3085_v21 = vshrl.u32 %v6111_v38, %v5249_v26  ;;  %v2940_v9 = vsel %vm2857_vm4, %v2939_v3, %v2938_v57 }
 0x251   :  { %v3068_v8 = vand.u32 8388607, %v6084_v32  ;;  %v3090_v15 = vshll.u32 %v6112_v23, %v3075_v25  ;;  %v3091_v37 = vshrl.u32 %v6113_v52, %v5249_v26  ;;  %vm2229_vm6 = vcmp.eq.s32.totalorder %v5212_v40, 0 }
 0x252   :  { %v2230_v49 = vxor.u32 2147483648, %v5259_v62  ;;  %4168 = vcosq.f32 %v2840_v45  ;;  %v2509_v47 = vsub.s32 0, %v5278_v44  ;;  %v5306_v31 = vadd.s32 %v3017_v43, %v3013_v55 }
 0x253   :  { %v3671_v16 = vadd.s32 4294967294, %v2408_v61  ;;  %v3080_v13 = vor.u32 %v3079_v63, %v3078_v4  ;;  %v3083_v57 = vor.u32 %v3082_v10, %v3081_v39  ;;  %v3089_v6 = vor.u32 %v3088_v53, %v3087_v12 }
 0x254   :  { %v2943_v25 = vsel %vm5254_vm3, %v4599_v5, %v2940_v9  ;;  %v3086_v3 = vor.u32 %v3085_v21, %v3084_v19  ;;  %vm3093_vm7 = vcmp.lt.s32.totalorder %v5219_v30, 1  ;;  %vm3096_vm8 = vcmp.lt.s32.totalorder %v5219_v30, 4 }
 0x255   :  { %vm2228_vm9 = vcmp.lt.s32.totalorder %v5212_v40, 2  ;;  %v2234_v55 = vsel %vm2232_vm2, %v2233_v41, %v5259_v62  ;;  %4170 = vsinq.f32 %v2840_v45  ;;  %v3069_v61 = vor.u32 8388608, %v3068_v8  ;;  %v5317_v63 = vpop.eup %4164 }
 0x256   :  { %v3092_v4 = vor.u32 %v3091_v37, %v3090_v15  ;;  %v2941_v39 = vsub.s32 4, %v4928_v50  ;;  %v3674_v43 = vmin.u32 %v2509_v47, %v5278_v44  ;;  %v3019_v10 = vadd.s32 536870912, %v5306_v31 }
 0x257   :  { %vm3095_vm10 = vcmp.lt.s32.totalorder %v5219_v30, 3  ;;  %vm2332_vm11 = vcmp.eq.s32.totalorder %v5265_v56, 0  ;;  %vm2335_vm12 = vcmp.eq.s32.totalorder %v5265_v56, 2  ;;  %4172 = vcosq.f32 %v2943_v25 }
 0x258   :  { %vm3094_vm13 = vcmp.lt.s32.totalorder %v5219_v30, 2  ;;  %v3101_v62 = vsel %vm3093_vm7, %v3080_v13, %v3083_v57  ;;  %v3102_v45 = vsel %vm3096_vm8, %v3089_v6, 920167782  ;;  %4174 = vsinq.f32 %v2943_v25 }
 0x259   :  { %vm3672_vm14 = vcmp.lt.s32.totalorder %v3671_v16, 0  ;;  %v3077_v12 = vshrl.u32 %v6107_v0, %v5249_v26  ;;  %v3105_v53 = vsel %vm3093_vm7, %v3083_v57, %v3086_v3  ;;  %v3098_v41 = vsel %vm3096_vm8, %v3086_v3, 2102212464 }
 0x25a   :  { %v3103_v19 = vsel %vm3095_vm10, %v3086_v3, %v3102_v45  ;;  %v3106_v21 = vsel %vm3096_vm8, %v3092_v4, 1326507024  ;;  %v5340_v9 = vshll.u32 %v3069_v61, 8  ;;  %v4167_v8 = vpop.eup %4166  ;;  %v2511_v15 = vclz %v3674_v43 }
 0x25b   :  { %v5342_v37 = vshrl.u32 %v3019_v10, 30  ;;  %v3104_v26 = vsel %vm3094_vm13, %v3101_v62, %v3103_v19  ;;  %v3107_v47 = vsel %vm3095_vm10, %v3089_v6, %v3106_v21  ;;  %v2942_v25 = vsel %vm2857_vm4, %v2941_v39, %v4928_v50  ;;  %v6133_v19 = vld [vmem:[#allocation8_spill] sm:$0xff] }
 0x25c   :  { %v3108_v3 = vsel %vm3094_vm13, %v3105_v53, %v3107_v47  ;;  %v5354_v61 = vmul.u32.u64.low %v5340_v9, %v3104_v26  ;;  %v5355_v4 = vmul.u32.u64.high %v5340_v9, %v3104_v26, %v5354_v61  ;;  %v4169_v43 = vpop.eup %4168  ;;  %v3097_v10 = vsel %vm3093_vm7, %v3077_v12, %v3080_v13 }
 0x25d   :  { %6131 = vst [vmem:[#allocation9_spill] sm:$0xff] %v5342_v37  ;;  %v3099_v62 = vsel %vm3095_vm10, %v3083_v57, %v3098_v41  ;;  %v5363_v6 = vmul.u32.u64.low %v5340_v9, %v3108_v3  ;;  %v5364_v45 = vmul.u32.u64.high %v5340_v9, %v3108_v3, %v5363_v6  ;;  %v2231_v50 = vsel %vm2229_vm6, %v5247_v48, %v2230_v49 }
 0x25e   :  { %6132 = vst [vmem:[#allocation21_spill] sm:$0xff] %v5354_v61  ;;  %v2336_v39 = vxor.u32 2147483648, %v5317_v63  ;;  %v5371_v53 = vsel %vm3672_vm14, 0, %v3671_v16  ;;  %v5374_v21 = vsub.s32 4, %v6133_v19  ;;  %v2333_v13 = vxor.u32 2147483648, %v4167_v8  ;;  %v6135_v6 = vld [vmem:[#allocation17_spill] sm:$0xff] }
 0x25f   :  { %v2944_v57 = vsel %vm5254_vm3, 0, %v2942_v25  ;;  %v3675_v12 = vadd.s32 4294967294, %v2511_v15  ;;  %v3021_v41 = vshll.u32 %v5342_v37, 30  ;;  %v4171_v26 = vpop.eup %4170  ;;  %vm2226_vm15 = vweird.f32 %v4496_v60  ;;  %v5386_v16 = vld [vmem:[%s6055_s4 + $0x2] ss:$4 sm:$0x3f] }
 0x260   :  { %6134 = vst [vmem:[#allocation8_spill] sm:$0xff] %v5374_v21  ;;  %v3100_v48 = vsel %vm3094_vm13, %v3097_v10, %v3099_v62  ;;  %v3119_v49 = vadd.s32 1, %v5355_v4  ;;  %v5390_v17 = vrot.slane %v5386_v16, %v5374_v21  ;;  %v5395_v15 = vld [vmem:[%s6055_s4 + $0x3] ss:$4 sm:$0x3f]  ;;  %v2235_v47 = vsel %vm2228_vm9, %v2231_v50, %v2234_v55 }
 0x261   :  { %v5399_v30 = vrot.slane %v5395_v15, %v5374_v21  ;;  %vm2331_vm0 = vcmp.lt.s32.totalorder %v5265_v56, 2  ;;  %vm2846_vm1 = vcmp.lt.s32.totalorder %v5273_v29, 2  ;;  %vm2847_vm2 = vcmp.eq.s32.totalorder %v5273_v29, 0  ;;  %v4173_v3 = vpop.eup %4172  ;;  %v6136_v56 = vld [vmem:[#allocation13_spill] sm:$0xff] }
 0x262   :  { %vm2850_vm3 = vcmp.eq.s32.totalorder %v5273_v29, 2  ;;  %v2416_v25 = vsub.s32 4294967266, %v5371_v53  ;;  %v2851_v10 = vxor.u32 2147483648, %v4169_v43  ;;  %v2948_v62 = vand.u32 3, %v2944_v57  ;;  %v4175_v55 = vpop.eup %4174 }
 0x263   :  { %vm3118_vm4 = vc.u32 %v5364_v45, %v5354_v61  ;;  %v2081_v40 = vmul.f32 %v5390_v17, %v6135_v6  ;;  %v2334_v50 = vsel %vm2332_vm11, %v5317_v63, %v2333_v13  ;;  %v2337_v32 = vsel %vm2335_vm12, %v2336_v39, %v4167_v8 }
 0x264   :  { %v2848_v20 = vxor.u32 2147483648, %v4171_v26  ;;  %v3116_v58 = vmul.u32 %v5340_v9, %v3100_v48  ;;  %vm3676_vm5 = vcmp.lt.s32.totalorder %v3675_v12, 0  ;;  %v5419_v57 = vsub.s32 %v5306_v31, %v3021_v41 }
 0x265   :  { %v3120_v21 = vsel %vm3118_vm4, %v3119_v49, %v5355_v4  ;;  %v5423_v35 = vadd.f32 %v5399_v30, %v2081_v40  ;;  %v2954_v59 = vxor.u32 2147483648, %v4173_v3  ;;  %v2396_v37 = vadd.s32 %v4978_v42, %v4993_v11 }
 0x266   :  { %v2412_v63 = vsub.s32 32, %v5371_v53  ;;  %v2417_v13 = vadd.s32 127, %v2416_v25  ;;  %v2852_v8 = vsel %vm2850_vm3, %v2851_v10, %v4171_v26  ;;  %v2951_v9 = vxor.u32 2147483648, %v4175_v55 }
 0x267   :  { %vm2953_vm6 = vcmp.eq.s32.totalorder %v2948_v62, 2  ;;  %v2549_v31 = vand.u32 2139095040, %v5423_v35  ;;  %v2849_v4 = vsel %vm2847_vm2, %v4169_v43, %v2848_v20  ;;  %vm2950_vm7 = vcmp.eq.s32.totalorder %v2948_v62, 0 }
 0x268   :  { %v2514_v39 = vsel %vm3676_vm5, 0, %v3675_v12  ;;  %v5433_v41 = vadd.s32 %v3120_v21, %v3116_v58  ;;  %vm2949_vm8 = vcmp.lt.s32.totalorder %v2948_v62, 2  ;;  %v2413_v42 = vshll.u32 %v5166_v46, %v5371_v53  ;;  %v6137_v62 = vld [vmem:[#allocation14_spill] sm:$0xff] }
 0x269   :  { %v3024_v11 = vsub.s32 0, %v5419_v57  ;;  %v2550_v48 = vshrl.u32 %v2549_v31, 23  ;;  %v2955_v49 = vsel %vm2953_vm6, %v2954_v59, %v4175_v55  ;;  %v2414_v26 = vshrl.u32 %v2396_v37, %v2412_v63 }
 0x26a   :  { %v2418_v25 = vshll.u32 %v2417_v13, 23  ;;  %v2499_v10 = vadd.s32 %v5069_v54, %v5067_v34  ;;  %v2952_v40 = vsel %vm2950_vm7, %v4173_v3, %v2951_v9  ;;  %v2515_v61 = vsub.s32 32, %v2514_v39 }
 0x26b   :  { %v2519_v20 = vsub.s32 4294967266, %v2514_v39  ;;  %v3677_v43 = vadd.s32 4294967169, %v2550_v48  ;;  %v2236_v58 = vsel %vm2226_vm15, nan, %v2235_v47  ;;  %vm2329_vm9 = vweird.f32 %v4502_v1 }
 0x26c   :  { %vm2844_vm10 = vweird.f32 %v4506_v18  ;;  %v3122_v46 = vadd.s32 536870912, %v5433_v41  ;;  %v2338_v59 = vsel %vm2331_vm0, %v2334_v50, %v2337_v32  ;;  %v2853_v37 = vsel %vm2846_vm1, %v2849_v4, %v2852_v8  ;;  %v6139_v18 = vld [vmem:[#allocation16_spill] sm:$0xff] }
 0x26d   :  { %v3694_v34 = vmin.u32 %v3024_v11, %v5419_v57  ;;  %v2556_v54 = vadd.s32 1, %v3677_v43  ;;  %vm2947_vm11 = vweird.f32 %v4599_v5  ;;  %v2956_v60 = vsel %vm2949_vm8, %v2952_v40, %v2955_v49  ;;  %v6140_v40 = vld [vmem:[#allocation10_spill] sm:$0xff] }
 0x26e   :  { %v2415_v53 = vor.u32 %v2414_v26, %v2413_v42  ;;  %v2419_v21 = vor.u32 4788187, %v2418_v25  ;;  %v2516_v47 = vshll.u32 %v5278_v44, %v2514_v39  ;;  %v2517_v3 = vshrl.u32 %v2499_v10, %v2515_v61  ;;  %v6138_v61 = vld [vmem:[#allocation15_spill] sm:$0xff]  ;;  %v6141_v43 = vld [vmem:[#allocation18_spill] sm:$0xff] }
 0x26f   :  { %v2520_v55 = vadd.s32 127, %v2519_v20  ;;  %vm2557_vm12 = vcmp.gt.s32.totalorder %v2556_v54, 0  ;;  %v2339_v29 = vsel %vm2329_vm9, nan, %v2338_v59  ;;  %v2854_v63 = vsel %vm2844_vm10, nan, %v2853_v37 }
 0x270   :  { %v5458_v13 = vshrl.u32 %v3122_v46, 30  ;;  %v3026_v31 = vclz %v3694_v34  ;;  %v2558_v4 = vsel %vm2557_vm12, %v2556_v54, 0  ;;  %v5462_v44 = vsub.s32 5, %v6133_v19 }
 0x271   :  { %v1765_v12 = vpop.f32.mrb[12].mxu1  ;;  %v2957_v1 = vsel %vm2947_vm11, nan, %v2956_v60  ;;  %v2420_v11 = vand.u32 2147483647, %v2419_v21  ;;  %v2422_v48 = vcvt.s32.f32 %v2415_v53  ;;  %v5468_v26 = vor.u32 %v2517_v3, %v2516_v47 }
 0x272   :  { %v1766_v32 = vadd.f32 %v1765_v12, %v6136_v56  ;;  %v1767_v50 = vpop.f32.mrb[13].mxu1  ;;  %v2521_v25 = vshll.u32 %v2520_v55, 23  ;;  %v6095_v10 = vand.u32 2147483647, %v5423_v35  ;;  %v1999_v20 = vrot.slane %v5232_v24, %v6140_v40 }
 0x273   :  { %v1768_v8 = vadd.f32 %v1767_v50, %v6137_v62  ;;  %v1769_v9 = vpop.f32.mrb[14].mxu1  ;;  %v3124_v19 = vshll.u32 %v5458_v13, 30  ;;  %v2087_v46 = vmul.f32 %v5390_v17, %v6141_v43  ;;  %v2560_v59 = vand.u32 31, %v2558_v4 }
 0x274   :  { %v1770_v39 = vadd.f32 %v1769_v9, %v6138_v61  ;;  %v1771_v42 = vpop.f32.mrb[15].mxu1  ;;  %v3370_v5 = vmul.f32 0.03608439, %v2236_v58  ;;  %v3371_v37 = vmul.f32 0.03608439, %v2339_v29  ;;  %v5476_v34 = vadd.s32 4294967294, %v3026_v31 }
 0x275   :  { %v1772_v49 = vadd.f32 %v1771_v42, %v6139_v18  ;;  %v5480_v54 = vrot.slane %v5386_v16, %v5462_v44  ;;  %v3376_v60 = vmul.f32 0.03608439, %v2854_v63  ;;  %v3377_v53 = vmul.f32 0.03608439, %v2957_v1 }
 0x276   :  { %v2426_v21 = vsub.s32 4, %v5110_v2  ;;  %v2561_v12 = vsub.s32 32, %v2560_v59  ;;  %v5483_v47 = vmul.f32 %v2422_v48, %v2420_v11  ;;  %v5485_v3 = vor.u32 4788187, %v2521_v25 }
 0x277   :  { %v2525_v17 = vcvt.s32.f32 %v5468_v26  ;;  %v2553_v58 = vand.u32 8388607, %v6095_v10  ;;  %v5491_v16 = vsub.s32 %v5433_v41, %v3124_v19  ;;  %v5494_v50 = vadd.f32 %v5399_v30, %v2087_v46 }
 0x278   :  { %v5498_v29 = vrot.slane %v5395_v15, %v5462_v44  ;;  %vm3696_vm13 = vcmp.lt.s32.totalorder %v5476_v34, 0  ;;  %v2563_v9 = vshll.u32 %v6107_v0, %v2560_v59  ;;  %v2566_v31 = vshll.u32 %v6109_v36, %v2560_v59 }
 0x279   :  { %v1808_v24 = vpop.f32.mrb[8].mxu0  ;;  %v2564_v42 = vshrl.u32 %v6109_v36, %v2561_v12  ;;  %v2567_v15 = vshrl.u32 %v6110_v14, %v2561_v12  ;;  %v2554_v11 = vor.u32 8388608, %v2553_v58  ;;  %v2559_v48 = vshrl.u32 %v2558_v4, 5 }
 0x27a   :  { %v1809_v55 = vadd.f32 %v1808_v24, %v1766_v32  ;;  %v1810_v56 = vpop.f32.mrb[9].mxu0  ;;  %v2082_v32 = vmul.f32 %v5480_v54, %v6135_v6  ;;  %v3127_v40 = vsub.s32 0, %v5491_v16  ;;  %v2569_v19 = vshll.u32 %v6110_v14, %v2560_v59 }
 0x27b   :  { %v1811_v63 = vadd.f32 %v1810_v56, %v1768_v8  ;;  %v1812_v62 = vpop.f32.mrb[10].mxu0  ;;  %v2575_v24 = vshll.u32 %v6112_v23, %v2560_v59  ;;  %v2565_v56 = vor.u32 %v2564_v42, %v2563_v9  ;;  %vm2578_vm14 = vcmp.lt.s32.totalorder %v2559_v48, 1 }
 0x27c   :  { %v2022_v41 = vadd.f32 %v5263_v33, %v1809_v55  ;;  %v1813_v61 = vadd.f32 %v1812_v62, %v1770_v39  ;;  %v1814_v30 = vpop.f32.mrb[11].mxu0  ;;  %v2572_v39 = vshll.u32 %v6111_v38, %v2560_v59  ;;  %vm2581_vm15 = vcmp.lt.s32.totalorder %v2559_v48, 4 }
 0x27d   :  { %v2023_v1 = vadd.f32 %v1999_v20, %v1811_v63  ;;  %v1815_v8 = vadd.f32 %v1814_v30, %v1772_v49  ;;  %v2568_v63 = vor.u32 %v2567_v15, %v2566_v31  ;;  %v2570_v49 = vshrl.u32 %v6111_v38, %v2561_v12 }
 0x27e   :  { %v3382_v18 = vadd.f32 %v3370_v5, %v2022_v41  ;;  %v2028_v25 = vadd.f32 %v5263_v33, %v1813_v61  ;;  %v2562_v33 = vshrl.u32 %v6107_v0, %v2561_v12  ;;  %v2573_v5 = vshrl.u32 %v6112_v23, %v2561_v12 }
 0x27f   :  { %v3383_v6 = vadd.f32 %v3371_v37, %v2023_v1  ;;  %v2029_v46 = vadd.f32 %v1999_v20, %v1815_v8  ;;  %v2571_v37 = vor.u32 %v2570_v49, %v2569_v19  ;;  %v2576_v20 = vshrl.u32 %v6113_v52, %v2561_v12 }
 0x280   :  { %3394 = vst [vmem:[#allocation5] sm:$0xff] %v3382_v18  ;;  %v3388_v55 = vadd.f32 %v3376_v60, %v2028_v25  ;;  %v3167_v59 = vand.u32 2139095040, %v5494_v50  ;;  %v3698_v60 = vmin.u32 %v3127_v40, %v5491_v16  ;;  %v2574_v58 = vor.u32 %v2573_v5, %v2572_v39 }
 0x281   :  { %3395 = vst [vmem:[#allocation5 + $0x8] sm:$0xff] %v3383_v6  ;;  %v3389_v4 = vadd.f32 %v3377_v53, %v2029_v46  ;;  %vm2580_vm0 = vcmp.lt.s32.totalorder %v2559_v48, 3  ;;  %v2594_v62 = vshll.u32 %v2554_v11, 8  ;;  %v2577_v9 = vor.u32 %v2576_v20, %v2575_v24 }
 0x282   :  { %3400 = vst [vmem:[#allocation5 + $0x30] sm:$0xff] %v3388_v55  ;;  %vm2579_vm1 = vcmp.lt.s32.totalorder %v2559_v48, 2  ;;  %v2583_v53 = vsel %vm2581_vm15, %v2571_v37, 2102212464  ;;  %v2586_v31 = vsel %vm2578_vm14, %v2565_v56, %v2568_v63  ;;  %v2582_v41 = vsel %vm2578_vm14, %v2562_v33, %v2565_v56 }
 0x283   :  { %3401 = vst [vmem:[#allocation5 + $0x38] sm:$0xff] %v3389_v4  ;;  %v2584_v61 = vsel %vm2580_vm0, %v2568_v63, %v2583_v53  ;;  %v2587_v12 = vsel %vm2581_vm15, %v2574_v58, 920167782  ;;  %v2590_v30 = vsel %vm2578_vm14, %v2568_v63, %v2571_v37  ;;  %v3029_v42 = vsel %vm3696_vm13, 0, %v5476_v34 }
 0x284   :  { %v2588_v15 = vsel %vm2580_vm0, %v2571_v37, %v2587_v12  ;;  %v2591_v1 = vsel %vm2581_vm15, %v2577_v9, 1326507024  ;;  %v3168_v8 = vshrl.u32 %v3167_v59, 23  ;;  %v2523_v11 = vand.u32 2147483647, %v5485_v3 }
 0x285   :  { %v2589_v18 = vsel %vm2579_vm1, %v2586_v31, %v2588_v15  ;;  %v2592_v25 = vsel %vm2580_vm0, %v2574_v58, %v2591_v1  ;;  %v5534_v40 = vadd.f32 %v5498_v29, %v2082_v32  ;;  %v2585_v19 = vsel %vm2579_vm1, %v2582_v41, %v2584_v61 }
 0x286   :  { %v2593_v6 = vsel %vm2579_vm1, %v2590_v30, %v2592_v25  ;;  %v5538_v46 = vmul.u32.u64.low %v2594_v62, %v2589_v18  ;;  %v5539_v34 = vmul.u32.u64.high %v2594_v62, %v2589_v18, %v5538_v46  ;;  %v3034_v39 = vsub.s32 4294967266, %v3029_v42 }
 0x287   :  { %v3129_v24 = vclz %v3698_v60  ;;  %v5542_v55 = vmul.u32.u64.low %v2594_v62, %v2593_v6  ;;  %v5543_v56 = vmul.u32.u64.high %v2594_v62, %v2593_v6, %v5542_v55  ;;  %v6142_v3 = vand.u32 2147483647, %v4713_v28 }
 0x288   :  { %vm2342_vm3 = vcmp.lt.s32.totalorder %v4713_v28, 0  ;;  %v2424_v32 = vxor.u32 2147483648, %v5483_v47  ;;  %v3701_v48 = vadd.s32 4294967169, %v3168_v8  ;;  %v6145_v49 = vand.u32 2147483647, %v4782_v22 }
 0x289   :  { %vm5547_vm2 = vcmp.le.f32.partialorder %v6142_v3, 0.7853982  ;;  %v2526_v33 = vmul.f32 %v2525_v17, %v2523_v11  ;;  %v2601_v5 = vmul.u32 %v2594_v62, %v2585_v19  ;;  %v2652_v37 = vand.u32 2139095040, %v5534_v40 }
 0x28a   :  { %vm5555_vm4 = vcmp.le.f32.partialorder %v6145_v49, 0.7853982  ;;  %v2427_v20 = vsel %vm2342_vm3, %v2426_v21, %v5110_v2  ;;  %v3014_v59 = vadd.s32 %v5207_v27, %v5216_v7  ;;  %v3030_v60 = vsub.s32 32, %v3029_v42 }
 0x28b   :  { %v2604_v58 = vadd.s32 1, %v5539_v34  ;;  %v3035_v9 = vadd.s32 127, %v3034_v39  ;;  %v3699_v53 = vadd.s32 4294967294, %v3129_v24  ;;  %vm2603_vm5 = vc.u32 %v5543_v56, %v5538_v46 }
 0x28c   :  { %v2653_v26 = vshrl.u32 %v2652_v37, 23  ;;  %v2425_v17 = vsel %vm2342_vm3, %v2424_v32, %v5483_v47  ;;  %v2529_v62 = vsub.s32 4, %v5196_v51  ;;  %v3174_v21 = vadd.s32 1, %v3701_v48 }
 0x28d   :  { %v2605_v2 = vsel %vm2603_vm5, %v2604_v58, %v5539_v34  ;;  %v2527_v31 = vxor.u32 2147483648, %v2526_v33  ;;  %v2088_v7 = vmul.f32 %v5480_v54, %v6141_v43  ;;  %vm2445_vm6 = vcmp.lt.s32.totalorder %v4782_v22, 0 }
 0x28e   :  { %v2606_v27 = vadd.s32 %v2605_v2, %v2601_v5  ;;  %v3681_v41 = vadd.s32 4294967169, %v2653_v26  ;;  %v3031_v61 = vshll.u32 %v5419_v57, %v3029_v42  ;;  %v3032_v12 = vshrl.u32 %v3014_v59, %v3030_v60  ;;  %v6148_v5 = vld [vmem:[#allocation21_spill] sm:$0xff] }
 0x28f   :  { %v6094_v30 = vand.u32 2147483647, %v5534_v40  ;;  %v3036_v15 = vshll.u32 %v3035_v9, 23  ;;  %vm3700_vm7 = vcmp.lt.s32.totalorder %v3699_v53, 0  ;;  %v5585_v8 = vsel %vm5547_vm2, %v4713_v28, %v2425_v17 }
 0x290   :  { %v2607_v47 = vadd.s32 536870912, %v2606_v27  ;;  %v2659_v1 = vadd.s32 1, %v3681_v41  ;;  %v2429_v43 = vsel %vm5547_vm2, 0, %v2427_v20  ;;  %v5590_v54 = vsel %vm2445_vm6, %v2529_v62, %v5196_v51 }
 0x291   :  { %vm3175_vm8 = vcmp.gt.s32.totalorder %v3174_v21, 0  ;;  %v2528_v57 = vsel %vm2445_vm6, %v2527_v31, %v2526_v33  ;;  %v5595_v11 = vadd.f32 %v5498_v29, %v2088_v7  ;;  %v5597_v18 = vor.u32 %v3032_v12, %v3031_v61 }
 0x292   :  { %v5592_v42 = vshrl.u32 %v2607_v47, 30  ;;  %vm2660_vm9 = vcmp.gt.s32.totalorder %v2659_v1, 0  ;;  %v5599_v25 = vsel %vm3700_vm7, 0, %v3699_v53  ;;  %v2656_v19 = vand.u32 8388607, %v6094_v30 }
 0x293   :  { %v2661_v6 = vsel %vm2660_vm9, %v2659_v1, 0  ;;  %v5603_v34 = vor.u32 4788187, %v3036_v15  ;;  %v5606_v39 = vsel %vm3175_vm8, %v3174_v21, 0  ;;  %4176 = vcosq.f32 %v5585_v8 }
 0x294   :  { %v2609_v51 = vshll.u32 %v5592_v42, 30  ;;  %v2663_v24 = vand.u32 31, %v2661_v6  ;;  %v5609_v29 = vand.u32 3, %v2429_v43  ;;  %v5614_v55 = vsel %vm5555_vm4, %v4782_v22, %v2528_v57 }
 0x295   :  { %v3137_v63 = vsub.s32 4294967266, %v5599_v25  ;;  %v3270_v49 = vand.u32 2139095040, %v5595_v11  ;;  %v3040_v33 = vcvt.s32.f32 %v5597_v18  ;;  %v3117_v37 = vadd.s32 %v6148_v5, %v5364_v45 }
 0x296   :  { %v5620_v32 = vsub.s32 %v2606_v27, %v2609_v51  ;;  %v2664_v48 = vsub.s32 32, %v2663_v24  ;;  %v5627_v20 = vand.u32 31, %v5606_v39  ;;  %v2657_v59 = vor.u32 8388608, %v2656_v19 }
 0x297   :  { %v3038_v60 = vand.u32 2147483647, %v5603_v34  ;;  %v3133_v58 = vsub.s32 32, %v5599_v25  ;;  %v2666_v9 = vshll.u32 %v6107_v0, %v2663_v24  ;;  %v2669_v53 = vshll.u32 %v6109_v36, %v2663_v24 }
 0x298   :  { %v2662_v17 = vshrl.u32 %v2661_v6, 5  ;;  %v2667_v62 = vshrl.u32 %v6109_v36, %v2664_v48  ;;  %v2670_v45 = vshrl.u32 %v6110_v14, %v2664_v48  ;;  %v5637_v2 = vadd.s32 127, %v3137_v63 }
 0x299   :  { %v2612_v21 = vsub.s32 0, %v5620_v32  ;;  %v2672_v31 = vshll.u32 %v6110_v14, %v2663_v24  ;;  %v3271_v27 = vshrl.u32 %v3270_v49, 23  ;;  %v2665_v7 = vshrl.u32 %v6107_v0, %v2664_v48 }
 0x29a   :  { %v5642_v41 = vshll.u32 %v2657_v59, 8  ;;  %v3164_v61 = vand.u32 2147483647, %v5494_v50  ;;  %v5646_v12 = vsub.s32 32, %v5627_v20  ;;  %v2668_v15 = vor.u32 %v2667_v62, %v2666_v9 }
 0x29b   :  { %v2671_v47 = vor.u32 %v2670_v45, %v2669_v53  ;;  %v2673_v1 = vshrl.u32 %v6111_v38, %v2664_v48  ;;  %v2675_v43 = vshll.u32 %v6111_v38, %v2663_v24  ;;  %v2676_v57 = vshrl.u32 %v6112_v23, %v2664_v48 }
 0x29c   :  { %v2678_v19 = vshll.u32 %v6112_v23, %v2663_v24  ;;  %v2679_v6 = vshrl.u32 %v6113_v52, %v2664_v48  ;;  %vm2681_vm10 = vcmp.lt.s32.totalorder %v2662_v17, 1  ;;  %v3678_v51 = vmin.u32 %v2612_v21, %v5620_v32 }
 0x29d   :  { %v2674_v63 = vor.u32 %v2673_v1, %v2672_v31  ;;  %v3705_v49 = vadd.s32 4294967169, %v3271_v27  ;;  %v3181_v5 = vshll.u32 %v6107_v0, %v5627_v20  ;;  %v5656_v59 = vpop.eup %4176  ;;  %v2677_v9 = vor.u32 %v2676_v57, %v2675_v43 }
 0x29e   :  { %v2680_v53 = vor.u32 %v2679_v6, %v2678_v19  ;;  %vm2682_vm11 = vcmp.lt.s32.totalorder %v2662_v17, 2  ;;  %vm2684_vm12 = vcmp.lt.s32.totalorder %v2662_v17, 4  ;;  %vm2683_vm13 = vcmp.lt.s32.totalorder %v2662_v17, 3 }
 0x29f   :  { %v2685_v62 = vsel %vm2681_vm10, %v2665_v7, %v2668_v15  ;;  %v2686_v24 = vsel %vm2684_vm12, %v2674_v63, 2102212464  ;;  %v2689_v48 = vsel %vm2681_vm10, %v2668_v15, %v2671_v47  ;;  %v2690_v30 = vsel %vm2684_vm12, %v2677_v9, 920167782 }
 0x2a0   :  { %v2687_v45 = vsel %vm2683_vm13, %v2671_v47, %v2686_v24  ;;  %v2693_v21 = vsel %vm2681_vm10, %v2671_v47, %v2674_v63  ;;  %v2694_v31 = vsel %vm2684_vm12, %v2680_v53, 1326507024  ;;  %v3182_v27 = vshrl.u32 %v6109_v36, %v5646_v12 }
 0x2a1   :  { %v3184_v1 = vshll.u32 %v6109_v36, %v5627_v20  ;;  %v3185_v43 = vshrl.u32 %v6110_v14, %v5646_v12  ;;  %v3187_v7 = vshll.u32 %v6110_v14, %v5627_v20  ;;  %v2691_v57 = vsel %vm2683_vm13, %v2674_v63, %v2690_v30 }
 0x2a2   :  { %v2695_v19 = vsel %vm2683_vm13, %v2677_v9, %v2694_v31  ;;  %v3188_v15 = vshrl.u32 %v6111_v38, %v5646_v12  ;;  %v3190_v47 = vshll.u32 %v6111_v38, %v5627_v20  ;;  %v2614_v6 = vclz %v3678_v51 }
 0x2a3   :  { %v2688_v53 = vsel %vm2682_vm11, %v2685_v62, %v2687_v45  ;;  %v2692_v24 = vsel %vm2682_vm11, %v2689_v48, %v2691_v57  ;;  %v2696_v10 = vsel %vm2682_vm11, %v2693_v21, %v2695_v19  ;;  %v3135_v9 = vshrl.u32 %v3117_v37, %v3133_v58 }
 0x2a4   :  { %v5677_v3 = vmul.u32.u64.low %v5642_v41, %v2696_v10  ;;  %v5678_v26 = vmul.u32.u64.high %v5642_v41, %v2696_v10, %v5677_v3  ;;  %v5681_v30 = vmul.u32.u64.low %v5642_v41, %v2692_v24  ;;  %v5682_v63 = vmul.u32.u64.high %v5642_v41, %v2692_v24, %v5681_v30 }
 0x2a5   :  { %v3139_v31 = vshll.u32 %v5637_v2, 23  ;;  %v3177_v51 = vshrl.u32 %v5606_v39, 5  ;;  %v3171_v62 = vand.u32 8388607, %v3164_v61  ;;  %v3277_v48 = vadd.s32 1, %v3705_v49 }
 0x2a6   :  { %v3191_v17 = vshrl.u32 %v6112_v23, %v5646_v12  ;;  %v3193_v10 = vshll.u32 %v6112_v23, %v5627_v20  ;;  %v3194_v3 = vshrl.u32 %v6113_v52, %v5646_v12  ;;  %v3679_v45 = vadd.s32 4294967294, %v2614_v6 }
 0x2a7   :  { %v2704_v37 = vmul.u32 %v5642_v41, %v2688_v53  ;;  %v3183_v58 = vor.u32 %v3182_v27, %v3181_v5  ;;  %v3186_v2 = vor.u32 %v3185_v43, %v3184_v1  ;;  %vm2706_vm14 = vc.u32 %v5678_v26, %v5681_v30 }
 0x2a8   :  { %v2707_v39 = vadd.s32 1, %v5682_v63  ;;  %v3189_v49 = vor.u32 %v3188_v15, %v3187_v7  ;;  %v3192_v21 = vor.u32 %v3191_v17, %v3190_v47  ;;  %v3195_v57 = vor.u32 %v3194_v3, %v3193_v10 }
 0x2a9   :  { %vm3196_vm15 = vcmp.lt.s32.totalorder %v3177_v51, 1  ;;  %vm3198_vm0 = vcmp.lt.s32.totalorder %v3177_v51, 3  ;;  %vm3199_vm1 = vcmp.lt.s32.totalorder %v3177_v51, 4  ;;  %vm3278_vm2 = vcmp.gt.s32.totalorder %v3277_v48, 0 }
 0x2aa   :  { %v2708_v20 = vsel %vm2706_vm14, %v2707_v39, %v5682_v63  ;;  %v3172_v19 = vor.u32 8388608, %v3171_v62  ;;  %v3180_v41 = vshrl.u32 %v6107_v0, %v5646_v12  ;;  %vm3197_vm3 = vcmp.lt.s32.totalorder %v3177_v51, 2 }
 0x2ab   :  { %v2709_v5 = vadd.s32 %v2708_v20, %v2704_v37  ;;  %v3201_v27 = vsel %vm3199_vm1, %v3189_v49, 2102212464  ;;  %v3205_v1 = vsel %vm3199_vm1, %v3192_v21, 920167782  ;;  %v3204_v43 = vsel %vm3196_vm15, %v3183_v58, %v3186_v2 }
 0x2ac   :  { %v3206_v7 = vsel %vm3198_vm0, %v3189_v49, %v3205_v1  ;;  %v3208_v15 = vsel %vm3196_vm15, %v3186_v2, %v3189_v49  ;;  %v3209_v47 = vsel %vm3199_vm1, %v3195_v57, 1326507024  ;;  %vm3680_vm5 = vcmp.lt.s32.totalorder %v3679_v45, 0 }
 0x2ad   :  { %v2710_v6 = vadd.s32 536870912, %v2709_v5  ;;  %v3279_v53 = vsel %vm3278_vm2, %v3277_v48, 0  ;;  %v3210_v24 = vsel %vm3198_vm0, %v3192_v21, %v3209_v47  ;;  %v5710_v12 = vmul.f32 %v3040_v33, %v3038_v60 }
 0x2ae   :  { %v6149_v63 = vshll.u32 %v5491_v16, %v5599_v25  ;;  %v3211_v17 = vsel %vm3197_vm3, %v3208_v15, %v3210_v24  ;;  %v3212_v10 = vshll.u32 %v3172_v19, 8  ;;  %v3200_v48 = vsel %vm3196_vm15, %v3180_v41, %v3183_v58 }
 0x2af   :  { %v5718_v3 = vshrl.u32 %v2710_v6, 30  ;;  %v3202_v37 = vsel %vm3198_vm0, %v3186_v2, %v3201_v27  ;;  %v3207_v34 = vsel %vm3197_vm3, %v3204_v43, %v3206_v7  ;;  %v5723_v39 = vsel %vm3680_vm5, 0, %v3679_v45 }
 0x2b0   :  { %v5715_v62 = vor.u32 %v3135_v9, %v6149_v63  ;;  %v3281_v18 = vand.u32 31, %v3279_v53  ;;  %v5725_v33 = vmul.u32.u64.low %v3212_v10, %v3211_v17  ;;  %v5726_v60 = vmul.u32.u64.high %v3212_v10, %v3211_v17, %v5725_v33 }
 0x2b1   :  { %4178 = vsinq.f32 %v5585_v8  ;;  %v6150_v16 = vsel %vm5555_vm4, 0, %v5590_v54  ;;  %v5735_v9 = vor.u32 4788187, %v3139_v31  ;;  %v2712_v58 = vshll.u32 %v5718_v3, 30  ;;  %v6151_v8 = vld [vmem:[#allocation9_spill] sm:$0xff] }
 0x2b2   :  { %v5733_v25 = vand.u32 3, %v6150_v16  ;;  %v2439_v2 = vxor.u32 2147483648, %v5656_v59  ;;  %v3203_v45 = vsel %vm3197_vm3, %v3200_v48, %v3202_v37  ;;  %4180 = vcosq.f32 %v5614_v55 }
 0x2b3   :  { %v5740_v49 = vmul.u32.u64.low %v3212_v10, %v3207_v34  ;;  %v5741_v21 = vmul.u32.u64.high %v3212_v10, %v3207_v34, %v5740_v49  ;;  %v3044_v4 = vsub.s32 4, %v6151_v8  ;;  %v2622_v54 = vsub.s32 4294967266, %v5723_v39 }
 0x2b4   :  { %v5747_v57 = vsub.s32 %v2709_v5, %v2712_v58  ;;  %4182 = vsinq.f32 %v5614_v55  ;;  %v3042_v31 = vxor.u32 2147483648, %v5710_v12  ;;  %v3143_v20 = vcvt.s32.f32 %v5715_v62  ;;  %v6152_v58 = vld [vmem:[#allocation19_spill] sm:$0xff] }
 0x2b5   :  { %v3282_v51 = vsub.s32 32, %v3281_v18  ;;  %v3141_v19 = vand.u32 2147483647, %v5735_v9  ;;  %v3219_v27 = vmul.u32 %v3212_v10, %v3203_v45  ;;  %vm3221_vm4 = vc.u32 %v5726_v60, %v5740_v49 }
 0x2b6   :  { %v2715_v41 = vsub.s32 0, %v5747_v57  ;;  %v2602_v1 = vadd.s32 %v5538_v46, %v5543_v56  ;;  %v2618_v5 = vsub.s32 32, %v5723_v39  ;;  %v2619_v55 = vshll.u32 %v5620_v32, %v5723_v39 }
 0x2b7   :  { %v3222_v43 = vadd.s32 1, %v5741_v21  ;;  %v5762_v7 = vadd.s32 127, %v2622_v54  ;;  %v3267_v47 = vand.u32 2147483647, %v5595_v11  ;;  %v3284_v6 = vshll.u32 %v6107_v0, %v3281_v18 }
 0x2b8   :  { %v3682_v15 = vmin.u32 %v2715_v41, %v5747_v57  ;;  %v3285_v63 = vshrl.u32 %v6109_v36, %v3282_v51  ;;  %v3287_v46 = vshll.u32 %v6109_v36, %v3281_v18  ;;  %v3288_v56 = vshrl.u32 %v6110_v14, %v3282_v51 }
 0x2b9   :  { %v3223_v24 = vsel %vm3221_vm4, %v3222_v43, %v5741_v21  ;;  %v3293_v10 = vshll.u32 %v6111_v38, %v3281_v18  ;;  %v3294_v48 = vshrl.u32 %v6112_v23, %v3282_v51  ;;  %v2620_v37 = vshrl.u32 %v2602_v1, %v2618_v5 }
 0x2ba   :  { %v2717_v62 = vclz %v3682_v15  ;;  %v3224_v17 = vadd.s32 %v3223_v24, %v3219_v27  ;;  %v5773_v34 = vshrl.u32 %v3279_v53, 5  ;;  %v3290_v33 = vshll.u32 %v6110_v14, %v3281_v18 }
 0x2bb   :  { %v3291_v16 = vshrl.u32 %v6111_v38, %v3282_v51  ;;  %v5777_v9 = vpop.eup %4178  ;;  %vm2960_vm6 = vcmp.lt.s32.totalorder %v6152_v58, 0  ;;  %v2624_v36 = vshll.u32 %v5762_v7, 23  ;;  %v3274_v54 = vand.u32 8388607, %v3267_v47 }
 0x2bc   :  { %v3683_v45 = vadd.s32 4294967294, %v2717_v62  ;;  %v3225_v21 = vadd.s32 536870912, %v3224_v17  ;;  %v3283_v41 = vshrl.u32 %v6107_v0, %v3282_v51  ;;  %v3286_v27 = vor.u32 %v3285_v63, %v3284_v6  ;;  %v5786_v1 = vpop.eup %4180  ;;  %v6153_v0 = vld [vmem:[#allocation20_spill] sm:$0xff] }
 0x2bd   :  { %v3296_v53 = vshll.u32 %v6112_v23, %v3281_v18  ;;  %v3297_v14 = vshrl.u32 %v6113_v52, %v3282_v51  ;;  %v3289_v5 = vor.u32 %v3288_v56, %v3287_v46  ;;  %v3295_v43 = vor.u32 %v3294_v48, %v3293_v10 }
 0x2be   :  { %vm3684_vm7 = vcmp.lt.s32.totalorder %v3683_v45, 0  ;;  %v5788_v38 = vshrl.u32 %v3225_v21, 30  ;;  %v5790_v7 = vpop.eup %4182  ;;  %v3292_v24 = vor.u32 %v3291_v16, %v3290_v33  ;;  %vm3299_vm8 = vcmp.lt.s32.totalorder %v5773_v34, 1 }
 0x2bf   :  { %v2720_v15 = vsel %vm3684_vm7, 0, %v3683_v45  ;;  %vm3302_vm9 = vcmp.lt.s32.totalorder %v5773_v34, 4  ;;  %vm2438_vm10 = vcmp.eq.s32.totalorder %v5609_v29, 2  ;;  %vm3063_vm11 = vcmp.lt.s32.totalorder %v6153_v0, 0 }
 0x2c0   :  { %v2705_v52 = vadd.s32 %v5681_v30, %v5678_v26  ;;  %v2721_v23 = vsub.s32 32, %v2720_v15  ;;  %v2725_v18 = vsub.s32 4294967266, %v2720_v15  ;;  %vm3301_vm12 = vcmp.lt.s32.totalorder %v5773_v34, 3 }
 0x2c1   :  { %v6154_v51 = vand.u32 2147483647, %v6152_v58  ;;  %v3227_v63 = vshll.u32 %v5788_v38, 30  ;;  %v3275_v46 = vor.u32 8388608, %v3274_v54  ;;  %v3298_v56 = vor.u32 %v3297_v14, %v3296_v53 }
 0x2c2   :  { %v3304_v62 = vsel %vm3302_vm9, %v3292_v24, 2102212464  ;;  %v2726_v10 = vadd.s32 127, %v2725_v18  ;;  %vm3300_vm14 = vcmp.lt.s32.totalorder %v5773_v34, 2  ;;  %v3307_v26 = vsel %vm3299_vm8, %v3286_v27, %v3289_v5 }
 0x2c3   :  { %vm5801_vm13 = vcmp.le.f32.partialorder %v6154_v51, 0.7853982  ;;  %v3308_v30 = vsel %vm3302_vm9, %v3295_v43, 920167782  ;;  %v3144_v48 = vmul.f32 %v3143_v20, %v3141_v19  ;;  %v5813_v33 = vsub.s32 %v3224_v17, %v3227_v63 }
 0x2c4   :  { %v3303_v16 = vsel %vm3299_vm8, %v3283_v41, %v3286_v27  ;;  %v3309_v45 = vsel %vm3301_vm12, %v3292_v24, %v3308_v30  ;;  %v2722_v21 = vshll.u32 %v5747_v57, %v2720_v15  ;;  %v2723_v54 = vshrl.u32 %v2705_v52, %v2721_v23 }
 0x2c5   :  { %v2727_v53 = vshll.u32 %v2726_v10, 23  ;;  %v3305_v14 = vsel %vm3301_vm12, %v3289_v5, %v3304_v62  ;;  %vm2435_vm15 = vcmp.eq.s32.totalorder %v5609_v29, 0  ;;  %v3230_v18 = vsub.s32 0, %v5813_v33 }
 0x2c6   :  { %v3310_v20 = vsel %vm3300_vm14, %v3307_v26, %v3309_v45  ;;  %v3311_v19 = vsel %vm3299_vm8, %v3289_v5, %v3292_v24  ;;  %v3312_v17 = vsel %vm3302_vm9, %v3298_v56, 1326507024  ;;  %v2621_v57 = vor.u32 %v2620_v37, %v2619_v55 }
 0x2c7   :  { %v2625_v41 = vor.u32 4788187, %v2624_v36  ;;  %v3313_v27 = vsel %vm3301_vm12, %v3295_v43, %v3312_v17  ;;  %v3315_v15 = vshll.u32 %v3275_v46, 8  ;;  %v3043_v52 = vsel %vm2960_vm6, %v3042_v31, %v5710_v12 }
 0x2c8   :  { %v3145_v23 = vxor.u32 2147483648, %v3144_v48  ;;  %v3702_v5 = vmin.u32 %v3230_v18, %v5813_v33  ;;  %v3306_v24 = vsel %vm3300_vm14, %v3303_v16, %v3305_v14  ;;  %vm2434_vm0 = vcmp.lt.s32.totalorder %v5609_v29, 2 }
 0x2c9   :  { %v2724_v32 = vor.u32 %v2723_v54, %v2722_v21  ;;  %v3314_v39 = vsel %vm3300_vm14, %v3311_v19, %v3313_v27  ;;  %v5846_v55 = vmul.u32.u64.low %v3315_v15, %v3310_v20  ;;  %v5847_v37 = vmul.u32.u64.high %v3315_v15, %v3310_v20, %v5846_v55 }
 0x2ca   :  { %v2728_v36 = vor.u32 4788187, %v2727_v53  ;;  %v3232_v43 = vclz %v3702_v5  ;;  %v5850_v51 = vmul.u32.u64.low %v3315_v15, %v3314_v39  ;;  %v5851_v12 = vmul.u32.u64.high %v3315_v15, %v3314_v39, %v5850_v51 }
 0x2cb   :  { %v2436_v31 = vxor.u32 2147483648, %v5777_v9  ;;  %v6157_v63 = vand.u32 2147483647, %v6153_v0  ;;  %v2626_v56 = vand.u32 2147483647, %v2625_v41  ;;  %v2628_v34 = vcvt.s32.f32 %v2621_v57 }
 0x2cc   :  { %v2440_v62 = vsel %vm2438_vm10, %v2439_v2, %v5777_v9  ;;  %v3045_v10 = vsel %vm2960_vm6, %v3044_v4, %v6151_v8  ;;  %v3146_v26 = vsel %vm3063_vm11, %v3145_v23, %v3144_v48  ;;  %v3703_v30 = vadd.s32 4294967294, %v3232_v43 }
 0x2cd   :  { %vm5856_vm1 = vcmp.le.f32.partialorder %v6157_v63, 0.7853982  ;;  %v3046_v16 = vsel %vm5801_vm13, %v6152_v58, %v3043_v52  ;;  %v3220_v45 = vadd.s32 %v5740_v49, %v5726_v60  ;;  %v3322_v21 = vmul.u32 %v3315_v15, %v3306_v24 }
 0x2ce   :  { %v3325_v2 = vadd.s32 1, %v5847_v37  ;;  %vm2432_vm2 = vweird.f32 %v4713_v28  ;;  %vm2538_vm3 = vcmp.eq.s32.totalorder %v5733_v25, 0  ;;  %vm2541_vm5 = vcmp.eq.s32.totalorder %v5733_v25, 2 }
 0x2cf   :  { %v2729_v8 = vand.u32 2147483647, %v2728_v36  ;;  %v2731_v4 = vcvt.s32.f32 %v2724_v32  ;;  %vm3704_vm4 = vcmp.lt.s32.totalorder %v3703_v30, 0  ;;  %vm3324_vm6 = vc.u32 %v5851_v12, %v5846_v55 }
 0x2d0   :  { %v3149_v9 = vsel %vm5856_vm1, %v6153_v0, %v3146_v26  ;;  %v2629_v60 = vmul.f32 %v2628_v34, %v2626_v56  ;;  %v3235_v49 = vsel %vm3704_vm4, 0, %v3703_v30  ;;  %v3326_v48 = vsel %vm3324_vm6, %v3325_v2, %v5847_v37 }
 0x2d1   :  { %4184 = vcosq.f32 %v3046_v16  ;;  %v3236_v54 = vsub.s32 32, %v3235_v49  ;;  %v3237_v53 = vshll.u32 %v5813_v33, %v3235_v49  ;;  %v3240_v14 = vsub.s32 4294967266, %v3235_v49 }
 0x2d2   :  { %v2437_v18 = vsel %vm2435_vm15, %v5656_v59, %v2436_v31  ;;  %4186 = vsinq.f32 %v3046_v16  ;;  %v3147_v20 = vsub.s32 4, %v5458_v13  ;;  %v3327_v19 = vadd.s32 %v3326_v48, %v3322_v21 }
 0x2d3   :  { %4188 = vcosq.f32 %v3149_v9  ;;  %v2732_v17 = vmul.f32 %v2731_v4, %v2729_v8  ;;  %v3238_v57 = vshrl.u32 %v3220_v45, %v3236_v54  ;;  %v3241_v41 = vadd.s32 127, %v3240_v14 }
 0x2d4   :  { %v3047_v27 = vsel %vm5801_vm13, 0, %v3045_v10  ;;  %4190 = vsinq.f32 %v3149_v9  ;;  %v2630_v15 = vxor.u32 2147483648, %v2629_v60  ;;  %v3328_v52 = vadd.s32 536870912, %v3327_v19 }
 0x2d5   :  { %v2441_v33 = vsel %vm2434_vm0, %v2437_v18, %v2440_v62  ;;  %vm2548_vm7 = vcmp.lt.s32.totalorder %v5423_v35, 0  ;;  %v3239_v59 = vor.u32 %v3238_v57, %v3237_v53  ;;  %v3242_v23 = vshll.u32 %v3241_v41, 23 }
 0x2d6   :  { %v2539_v5 = vxor.u32 2147483648, %v5790_v7  ;;  %v2542_v24 = vxor.u32 2147483648, %v5786_v1  ;;  %v3148_v32 = vsel %vm3063_vm11, %v3147_v20, %v5458_v13  ;;  %v5902_v6 = vshrl.u32 %v3328_v52, 30 }
 0x2d7   :  { %v5904_v39 = vand.u32 3, %v3047_v27  ;;  %v2733_v37 = vxor.u32 2147483648, %v2732_v17  ;;  %v3243_v36 = vor.u32 4788187, %v3242_v23  ;;  %v3246_v29 = vcvt.s32.f32 %v3239_v59 }
 0x2d8   :  { %v6160_v43 = vand.u32 2147483647, %v5423_v35  ;;  %v2631_v31 = vsel %vm2548_vm7, %v2630_v15, %v2629_v60  ;;  %vm2651_vm9 = vcmp.lt.s32.totalorder %v5534_v40, 0  ;;  %v3330_v13 = vshll.u32 %v5902_v6, 30 }
 0x2d9   :  { %vm2537_vm10 = vcmp.lt.s32.totalorder %v5733_v25, 2  ;;  %v3150_v63 = vsel %vm5856_vm1, 0, %v3148_v32  ;;  %v3244_v56 = vand.u32 2147483647, %v3243_v36  ;;  %v5921_v34 = vsel %vm2432_vm2, nan, %v2441_v33 }
 0x2da   :  { %vm5908_vm8 = vcmp.le.f32.partialorder %v6160_v43, 0.7853982  ;;  %v2540_v62 = vsel %vm2538_vm3, %v5786_v1, %v2539_v5  ;;  %v2543_v10 = vsel %vm2541_vm5, %v2542_v24, %v5790_v7  ;;  %v5929_v26 = vsub.s32 %v3327_v19, %v3330_v13 }
 0x2db   :  { %v4185_v30 = vpop.eup %4184  ;;  %v2634_v46 = vsel %vm5908_vm8, %v5423_v35, %v2631_v31  ;;  %v6163_v16 = vand.u32 2147483647, %v5534_v40  ;;  %v2734_v1 = vsel %vm2651_vm9, %v2733_v37, %v2732_v17  ;;  %v3247_v45 = vmul.f32 %v3246_v29, %v3244_v56 }
 0x2dc   :  { %v4187_v21 = vpop.eup %4186  ;;  %vm2535_vm12 = vweird.f32 %v4782_v22  ;;  %vm3052_vm13 = vcmp.lt.s32.totalorder %v5904_v39, 2  ;;  %vm3053_vm14 = vcmp.eq.s32.totalorder %v5904_v39, 0  ;;  %v3154_v7 = vand.u32 3, %v3150_v63 }
 0x2dd   :  { %vm5936_vm11 = vcmp.le.f32.partialorder %v6163_v16, 0.7853982  ;;  %vm3166_vm15 = vcmp.lt.s32.totalorder %v5494_v50, 0  ;;  %v3333_v2 = vsub.s32 0, %v5929_v26  ;;  %v4189_v8 = vpop.eup %4188  ;;  %vm3056_vm0 = vcmp.eq.s32.totalorder %v5904_v39, 2 }
 0x2de   :  { %v2632_v4 = vsub.s32 4, %v5592_v42  ;;  %vm5951_vm1 = vcmp.le.f32.partialorder %v3164_v61, 0.7853982  ;;  %v3248_v60 = vxor.u32 2147483648, %v3247_v45  ;;  %v4191_v49 = vpop.eup %4190  ;;  %v2544_v48 = vsel %vm2537_vm10, %v2540_v62, %v2543_v10 }
 0x2df   :  { %4192 = vcosq.f32 %v2634_v46  ;;  %v2737_v54 = vsel %vm5936_vm11, %v5534_v40, %v2734_v1  ;;  %v3706_v53 = vmin.u32 %v3333_v2, %v5929_v26  ;;  %vm3050_vm2 = vweird.f32 %v6152_v58  ;;  %v4210_v58 = vld [vmem:[%s6055_s4 + $0x1] ss:$4 sm:$0x3f]  ;;  %s4277_s4 = smov [#allocation5]  }
 0x2e0   :  { %v3054_v14 = vxor.u32 2147483648, %v4187_v21  ;;  %v3057_v18 = vxor.u32 2147483648, %v4185_v30  ;;  %4194 = vsinq.f32 %v2634_v46  ;;  %v3249_v61 = vsel %vm3166_vm15, %v3248_v60, %v3247_v45  ;;  %s3411_s18 = sshll.u32 %s4277_s4, 4  ;;  %s3412_s18 = int_to_ptr.vmem [resolvable:$true] %s3411_s18 }
 0x2e1   :  { %vm3155_vm3 = vcmp.lt.s32.totalorder %v3154_v7, 2  ;;  %v3160_v20 = vxor.u32 2147483648, %v4189_v8  ;;  %v3252_v25 = vsel %vm5951_vm1, %v5494_v50, %v3249_v61  ;;  %v3335_v19 = vclz %v3706_v53  ;;  %s4233_s19 = scalar_lea.vmem %s3412_s18, 1536  ;;  %p4238_p9 = scmp.lt.s32.totalorder %s3412_s18, %s3412_s18 }
 0x2e2   :  { %v3157_v17 = vxor.u32 2147483648, %v4191_v49  ;;  %v2633_v57 = vsel %vm2548_vm7, %v2632_v4, %v5592_v42  ;;  %v2735_v41 = vsub.s32 4, %v5718_v3  ;;  %4196 = vcosq.f32 %v2737_v54  ;;  %p4234_p8 = scmp.ne.s32.totalorder %s3412_s18, %s4233_s19  ;;  %p4239_p10 = scmp.lt.s32.totalorder %s4233_s19, %s4233_s19 }
 0x2e3   :  { %vm3156_vm5 = vcmp.eq.s32.totalorder %v3154_v7, 0  ;;  %vm3159_vm4 = vcmp.eq.s32.totalorder %v3154_v7, 2  ;;  %4198 = vsinq.f32 %v2737_v54  ;;  %v3707_v27 = vadd.s32 4294967294, %v3335_v19 }
 0x2e4   :  { %v3055_v15 = vsel %vm3053_vm14, %v4185_v30, %v3054_v14  ;;  %v3058_v52 = vsel %vm3056_vm0, %v3057_v18, %v4187_v21  ;;  %v3250_v33 = vsub.s32 4, %v5788_v38  ;;  %4200 = vcosq.f32 %v3252_v25  ;;  %p4240_p11 = por %p4239_p10, %p4238_p9 }
 0x2e5   :  { %v2635_v59 = vsel %vm5908_vm8, 0, %v2633_v57  ;;  %4202 = vsinq.f32 %v3252_v25  ;;  %v3323_v42 = vadd.s32 %v5846_v55, %v5851_v12  ;;  %vm3708_vm6 = vcmp.lt.s32.totalorder %v3707_v27, 0 }
 0x2e6   :  { %v3158_v23 = vsel %vm3156_vm5, %v4189_v8, %v3157_v17  ;;  %v3161_v5 = vsel %vm3159_vm4, %v3160_v20, %v4191_v49  ;;  %v2736_v24 = vsel %vm2651_vm9, %v2735_v41, %v5718_v3  ;;  %v3338_v32 = vsel %vm3708_vm6, 0, %v3707_v27  ;;  %v6168_v8 = vld [vmem:[#allocation11_spill] sm:$0xff]  ;;  %p4241_p12 = pnand %p4240_p11, %p4234_p8 }
 0x2e7   :  { %vm3153_vm7 = vweird.f32 %v6153_v0  ;;  %v3339_v37 = vsub.s32 32, %v3338_v32  ;;  %v3340_v36 = vshll.u32 %v5929_v26, %v3338_v32  ;;  %v3343_v29 = vsub.s32 4294967266, %v3338_v32  ;;  %v6169_v0 = vld [vmem:[#allocation12_spill] sm:$0xff] }
 0x2e8   :  { %v2545_v43 = vsel %vm2535_vm12, nan, %v2544_v48  ;;  %v3059_v55 = vsel %vm3052_vm13, %v3055_v15, %v3058_v52  ;;  %v2639_v12 = vand.u32 3, %v2635_v59  ;;  %v3251_v51 = vsel %vm3166_vm15, %v3250_v33, %v5788_v38 }
 0x2e9   :  { %v4193_v31 = vpop.eup %4192  ;;  %v3162_v3 = vsel %vm3155_vm3, %v3158_v23, %v3161_v5  ;;  %v2738_v13 = vsel %vm5936_vm11, 0, %v2736_v24  ;;  %v3341_v63 = vshrl.u32 %v3323_v42, %v3339_v37  ;;  %v3344_v56 = vadd.s32 127, %v3343_v29 }
 0x2ea   :  { %v4195_v62 = vpop.eup %4194  ;;  %v3372_v22 = vmul.f32 0.03608439, %v5921_v34  ;;  %v3060_v39 = vsel %vm3050_vm2, nan, %v3059_v55  ;;  %v3253_v10 = vsel %vm5951_vm1, 0, %v3251_v51  ;;  %v3373_v46 = vmul.f32 0.03608439, %v2545_v43 }
 0x2eb   :  { %v3342_v26 = vor.u32 %v3341_v63, %v3340_v36  ;;  %v3345_v30 = vshll.u32 %v3344_v56, 23  ;;  %v3163_v16 = vsel %vm3153_vm7, nan, %v3162_v3  ;;  %v2645_v28 = vxor.u32 2147483648, %v4193_v31  ;;  %v6172_v56 = vld [vmem:[#allocation8_spill] sm:$0xff] }
 0x2ec   :  { %v4197_v38 = vpop.eup %4196  ;;  %v2742_v1 = vand.u32 3, %v2738_v13  ;;  %v2642_v21 = vxor.u32 2147483648, %v4195_v62  ;;  %vm2644_vm8 = vcmp.eq.s32.totalorder %v2639_v12, 2  ;;  %v2003_v4 = vrot.slane %v4210_v58, %v6168_v8 }
 0x2ed   :  { %v4199_v45 = vpop.eup %4198  ;;  %v3346_v7 = vor.u32 4788187, %v3345_v30  ;;  %v3349_v34 = vcvt.s32.f32 %v3342_v26  ;;  %v3378_v9 = vmul.f32 0.03608439, %v3060_v39  ;;  %vm2641_vm9 = vcmp.eq.s32.totalorder %v2639_v12, 0 }
 0x2ee   :  { %v4201_v2 = vpop.eup %4200  ;;  %v3257_v60 = vand.u32 3, %v3253_v10  ;;  %v2007_v48 = vrot.slane %v4210_v58, %v6169_v0  ;;  %v3379_v54 = vmul.f32 0.03608439, %v3163_v16  ;;  %vm2638_vm10 = vweird.f32 %v5423_v35 }
 0x2ef   :  { %v4203_v49 = vpop.eup %4202  ;;  %vm2640_vm11 = vcmp.lt.s32.totalorder %v2639_v12, 2  ;;  %v3347_v53 = vand.u32 2147483647, %v3346_v7  ;;  %v2646_v14 = vsel %vm2644_vm8, %v2645_v28, %v4195_v62  ;;  %vm2747_vm12 = vcmp.eq.s32.totalorder %v2742_v1, 2 }
 0x2f0   :  { %v2748_v18 = vxor.u32 2147483648, %v4197_v38  ;;  %vm3269_vm13 = vcmp.lt.s32.totalorder %v5595_v11, 0  ;;  %v2643_v61 = vsel %vm2641_vm9, %v4193_v31, %v2642_v21  ;;  %v2745_v20 = vxor.u32 2147483648, %v4199_v45 }
 0x2f1   :  { %v3263_v25 = vxor.u32 2147483648, %v4201_v2  ;;  %v3350_v19 = vmul.f32 %v3349_v34, %v3347_v53  ;;  %vm2744_vm14 = vcmp.eq.s32.totalorder %v2742_v1, 0  ;;  %v3260_v17 = vxor.u32 2147483648, %v4203_v49  ;;  %v1894_v41 = vpop.f32.mrb[8].mxu1 }
 0x2f2   :  { %vm3262_vm15 = vcmp.eq.s32.totalorder %v3257_v60, 2  ;;  %vm6011_vm0 = vcmp.le.f32.partialorder %v3267_v47, 0.7853982  ;;  %vm2743_vm1 = vcmp.lt.s32.totalorder %v2742_v1, 2  ;;  %vm3259_vm2 = vcmp.eq.s32.totalorder %v3257_v60, 0  ;;  %v1896_v33 = vpop.f32.mrb[9].mxu1 }
 0x2f3   :  { %v3351_v27 = vxor.u32 2147483648, %v3350_v19  ;;  %v3353_v15 = vsub.s32 4, %v5902_v6  ;;  %v2024_v52 = vadd.f32 %v2003_v4, %v1894_v41  ;;  %v2647_v59 = vsel %vm2640_vm11, %v2643_v61, %v2646_v14  ;;  %v1898_v5 = vpop.f32.mrb[10].mxu1 }
 0x2f4   :  { %v2749_v42 = vsel %vm2747_vm12, %v2748_v18, %v4199_v45  ;;  %vm3258_vm3 = vcmp.lt.s32.totalorder %v3257_v60, 2  ;;  %v2025_v23 = vadd.f32 %v2007_v48, %v1896_v33  ;;  %v2746_v47 = vsel %vm2744_vm14, %v4197_v38, %v2745_v20  ;;  %v1900_v29 = vpop.f32.mrb[11].mxu1 }
 0x2f5   :  { %v3264_v24 = vsel %vm3262_vm15, %v3263_v25, %v4203_v49  ;;  %v3352_v32 = vsel %vm3269_vm13, %v3351_v27, %v3350_v19  ;;  %v3384_v37 = vadd.f32 %v3372_v22, %v2024_v52  ;;  %v2030_v36 = vadd.f32 %v2003_v4, %v1898_v5 }
 0x2f6   :  { %v3261_v43 = vsel %vm3259_vm2, %v4201_v2, %v3260_v17  ;;  %v3355_v55 = vsel %vm6011_vm0, %v5595_v11, %v3352_v32  ;;  %v3385_v12 = vadd.f32 %v3373_v46, %v2025_v23  ;;  %v2031_v51 = vadd.f32 %v2007_v48, %v1900_v29 }
 0x2f7   :  { %v3354_v31 = vsel %vm3269_vm13, %v3353_v15, %v5902_v6  ;;  %4204 = vcosq.f32 %v3355_v55  ;;  %3396 = vst [vmem:[#allocation5 + $0x10] sm:$0xff] %v3384_v37  ;;  %v3390_v3 = vadd.f32 %v3378_v9, %v2030_v36  ;;  %vm2741_vm5 = vweird.f32 %v5534_v40 }
 0x2f8   :  { %v2750_v13 = vsel %vm2743_vm1, %v2746_v47, %v2749_v42  ;;  %4206 = vsinq.f32 %v3355_v55  ;;  %3397 = vst [vmem:[#allocation5 + $0x18] sm:$0xff] %v3385_v12  ;;  %v3391_v63 = vadd.f32 %v3379_v54, %v2031_v51  ;;  %v2011_v62 = vrot.slane %v4210_v58, %v6172_v56 }
 0x2f9   :  { %vm3256_vm4 = vweird.f32 %v5494_v50  ;;  %v3265_v22 = vsel %vm3258_vm3, %v3261_v43, %v3264_v24  ;;  %3402 = vst [vmem:[#allocation5 + $0x40] sm:$0xff] %v3390_v3  ;;  %v2648_v6 = vsel %vm2638_vm10, nan, %v2647_v59  ;;  %v2015_v39 = vrot.slane %v4210_v58, %v5462_v44 }
 0x2fa   :  { %v3356_v40 = vsel %vm6011_vm0, 0, %v3354_v31  ;;  %3403 = vst [vmem:[#allocation5 + $0x48] sm:$0xff] %v3391_v63  ;;  %v2751_v10 = vsel %vm2741_vm5, nan, %v2750_v13  ;;  %v1980_v26 = vpop.f32.mrb[4].mxu0  ;;  %v3266_v30 = vsel %vm3256_vm4, nan, %v3265_v22  ;;  %vm3359_vm9 = vweird.f32 %v5595_v11 }
 0x2fb   :  { %v2026_v38 = vadd.f32 %v2011_v62, %v1980_v26  ;;  %v3374_v46 = vmul.f32 0.03608439, %v2648_v6  ;;  %v1982_v16 = vpop.f32.mrb[5].mxu0  ;;  %v3360_v28 = vand.u32 3, %v3356_v40  ;;  %v3375_v1 = vmul.f32 0.03608439, %v2751_v10 }
 0x2fc   :  { %v2027_v50 = vadd.f32 %v2015_v39, %v1982_v16  ;;  %v1984_v45 = vpop.f32.mrb[6].mxu0  ;;  %v3380_v35 = vmul.f32 0.03608439, %v3266_v30 }
 0x2fd   :  { %v3386_v21 = vadd.f32 %v3374_v46, %v2026_v38  ;;  %v2032_v7 = vadd.f32 %v2011_v62, %v1984_v45  ;;  %v1986_v34 = vpop.f32.mrb[7].mxu0  ;;  %vm3365_vm6 = vcmp.eq.s32.totalorder %v3360_v28, 2  ;;  %vm3362_vm7 = vcmp.eq.s32.totalorder %v3360_v28, 0 }
 0x2fe   :  { %v3387_v2 = vadd.f32 %v3375_v1, %v2027_v50  ;;  %v2033_v44 = vadd.f32 %v2015_v39, %v1986_v34  ;;  %vm3361_vm8 = vcmp.lt.s32.totalorder %v3360_v28, 2 }
 0x2ff   :  { %3398 = vst [vmem:[#allocation5 + $0x20] sm:$0xff] %v3386_v21  ;;  %v3392_v8 = vadd.f32 %v3380_v35, %v2032_v7 }
 0x300   :  { %3399 = vst [vmem:[#allocation5 + $0x28] sm:$0xff] %v3387_v2 }
 0x301   :  { %v4205_v58 = vpop.eup %4204  ;;  %3404 = vst [vmem:[#allocation5 + $0x50] sm:$0xff] %v3392_v8 }
 0x302   :  { %v4207_v4 = vpop.eup %4206  ;;  %v3366_v9 = vxor.u32 2147483648, %v4205_v58 }
 0x303   :  { %v3363_v60 = vxor.u32 2147483648, %v4207_v4 }
 0x304   :  { %v3367_v49 = vsel %vm3365_vm6, %v3366_v9, %v4207_v4 }
 0x305   :  { %v3364_v0 = vsel %vm3362_vm7, %v4205_v58, %v3363_v60 }
 0x306   :  { %v3368_v48 = vsel %vm3361_vm8, %v3364_v0, %v3367_v49 }
 0x307   :  { %v3369_v54 = vsel %vm3359_vm9, nan, %v3368_v48 }
 0x308   :  { %v3381_v53 = vmul.f32 0.03608439, %v3369_v54 }
 0x30a   :  { %v3393_v14 = vadd.f32 %v3381_v53, %v2033_v44 }
 0x30c   :  { %3405 = vst [vmem:[#allocation5 + $0x58] sm:$0xff] %v3393_v14 }
 0x30d   :  { %4244 = shalt.err (!%p4241_p12)
}
 0x30e   :  { %s4245_s22 = scalar_lea.hbm %s6056_s5, 1536 }
 0x30f   :  { %p4246_p13 = scmp.ne.s32.totalorder %s6056_s5, %s4245_s22  ;;  %p4249_p0 = scmp.lt.u32.totalorder %s4245_s22, %s6056_s5 }
 0x311   :  { %p4251_p1 = pnand %p4249_p0, %p4246_p13 }
 0x313   :  { %4254 = shalt.err (!%p4251_p1)
}
 0x314   :  { %s4278_s27 = smov 768   ;;  %s4279_s28 = smov 48  }
 0x315   :  { %3417 = dma.vmem_to_hbm [thread:$0]  %s3412_s18, 1536, %s6056_s5, [#allocation4], %s4278_s27, %s4278_s27, %s4279_s28  }
 0x316   :  { %4257 = dma.done.wait [#allocation4], 1536  }
 0x317   :  { %4258 = vsyncadd [#allocation4], 4294965760 }
 0x318   :  { %3421 = vsyncpa [#allocation3], 1 }
 0x319   :  { %3422 = vsyncpa [#allocation4], 1 }

</bundles_post_ra>
